<compile_context>
chip_gen: v7x
topology: tpu7x:2x2x1
jax: 0.10.0
libtpu: 0.0.40
codegen_flags: <defaults>
</compile_context>

<pallas_src>
import functools

import jax
import jax.numpy as jnp
import numpy as np
from jax.experimental import pallas as pl
from jax.experimental.pallas import tpu as pltpu


_VMEM_LIMIT_BYTES = 32 * 1024 * 1024   # explicit: v5e scoped default is only 16 MiB


def _round_up(x, m):
    return ((x + m - 1) // m) * m


def _pick_chunk(T, cap):
    """Largest divisor of T that is <= cap (timesteps per grid step)."""
    # TODO(synk): support T with no good divisor (prime T) via grid=cdiv(T,Tc) +
    # in-kernel tail masking instead of requiring Tc | T.
    cap = max(1, min(T, cap))
    for tc in range(cap, 0, -1):
        if T % tc == 0:
            return tc
    return 1


def _vmem_chunk_cap(bytes_per_timestep, budget_bytes, hard_cap):
    return int(max(1, min(hard_cap, budget_bytes // max(1, bytes_per_timestep))))


# ---------------------------------------------------------------------------
# Kernel 1: bidirectional GRU with the input projection fused in.
# grid = (direction, chunk); direction axis is "parallel" (v7x core split).
# Per chunk: one (Tc*Bp,E)@(E,3H) prologue matmul into VMEM scratch, then Tc
# recurrent steps, each a single (Bp,H)@(H,3H) f32 MXU dot.
# ---------------------------------------------------------------------------
def gru_kernel(h0_ref, emb_ref, wih_ref, bih_ref, whh_ref, bhhn_ref,
               out_ref, h_sc, gi_sc):
    d = pl.program_id(0)          # direction: 0 = forward, 1 = backward
    c = pl.program_id(1)          # chunk index along the (arbitrary) time axis
    Tc, Bp, _ = emb_ref.shape
    H = out_ref.shape[-1]

    @pl.when(c == 0)
    def _():
        h_sc[...] = h0_ref[...]

    # Chunk prologue: fused input projection for all Tc timesteps in ONE MXU matmul.
    # bih already contains bih_{r,z,n} + bhh_{r,z} (folded in glue); bhh_n stays out.
    x = emb_ref[...].reshape(Tc * Bp, emb_ref.shape[-1])
    gi = jnp.dot(x, wih_ref[...], preferred_element_type=jnp.float32) + bih_ref[...]
    gi_sc[...] = gi.reshape(Tc, Bp, 3 * H)

    whh = whh_ref[...]                                     # (H, 3H), hoisted (f32)
    bhhn = jnp.broadcast_to(bhhn_ref[...], (Bp, H))        # hoisted broadcast

    def step(t, h):
        g = gi_sc[t]                                                   # (Bp, 3H)
        gh = jnp.dot(h, whh, preferred_element_type=jnp.float32)       # (Bp, 3H)
        r = jax.nn.sigmoid(g[:, :H] + gh[:, :H])
        z = jax.nn.sigmoid(g[:, H:2 * H] + gh[:, H:2 * H])
        n = jnp.tanh(g[:, 2 * H:] + r * (gh[:, 2 * H:] + bhhn))
        h = (1.0 - z) * n + z * h
        out_ref[t] = h
        return h

    @pl.when(d == 0)          # forward: walk the chunk in increasing time
    def _():
        h_sc[...] = jax.lax.fori_loop(0, Tc, lambda i, h: step(i, h),
                                      h_sc[...], unroll=True)

    @pl.when(d == 1)          # backward: walk the chunk in decreasing time
    def _():
        h_sc[...] = jax.lax.fori_loop(0, Tc, lambda i, h: step(Tc - 1 - i, h),
                                      h_sc[...], unroll=True)


def gru_pallas(embedded, h0, wih2, bih2, whh2, bhhn2, Tc):
    T, Bp, E = embedded.shape
    H = whh2.shape[1]
    H3 = 3 * H
    nc = T // Tc

    def tmap(d, c):
        # forward (d=0): chunk c ; backward (d=1): chunk nc-1-c (time-reversed walk)
        return c + d * (nc - 1 - 2 * c)

    return pl.pallas_call(
        gru_kernel,
        out_shape=jax.ShapeDtypeStruct((2, T, Bp, H), jnp.float32),
        grid_spec=pltpu.PrefetchScalarGridSpec(
            num_scalar_prefetch=0,
            grid=(2, nc),
            in_specs=[
                pl.BlockSpec((None, Bp, H), lambda d, c: (d, 0, 0)),          # h0
                pl.BlockSpec((Tc, Bp, E), lambda d, c: (tmap(d, c), 0, 0)),   # embedded
                pl.BlockSpec((None, E, H3), lambda d, c: (d, 0, 0)),          # W_ih (gate-fused)
                pl.BlockSpec((None, 1, H3), lambda d, c: (d, 0, 0)),          # b_ih (+ b_hh_{r,z})
                pl.BlockSpec((None, H, H3), lambda d, c: (d, 0, 0)),          # W_hh (gate-fused)
                pl.BlockSpec((None, 1, H), lambda d, c: (d, 0, 0)),           # b_hh_n
            ],
            out_specs=pl.BlockSpec((None, Tc, Bp, H),
                                   lambda d, c: (d, tmap(d, c), 0, 0)),
            scratch_shapes=[pltpu.VMEM((Bp, H), jnp.float32),        # carried hidden state
                            pltpu.VMEM((Tc, Bp, H3), jnp.float32)],  # chunk gate pre-acts
        ),
        compiler_params=pltpu.CompilerParams(
            dimension_semantics=("parallel", "arbitrary"),
            vmem_limit_bytes=_VMEM_LIMIT_BYTES),
    )(h0, embedded, wih2, bih2, whh2, bhhn2)


# ---------------------------------------------------------------------------
# Kernel 2: word attention.  Consumes the fwd/bwd GRU outputs directly (no XLA
# concat): squish = tanh(hf @ W_top + hb @ W_bot); per-timestep masked softmax
# over the BATCH dim (legacy nn.Softmax() on (T, B)); two resident (Bp, H)
# context accumulators.  Optional size-2 "parallel" axis over chunk halves.
# ---------------------------------------------------------------------------
def attn_kernel(hf_ref, hb_ref, wt_ref, wb_ref, p_ref, cf_ref, cb_ref,
                *, b_real, fast):
    k = pl.program_id(1)
    Tc, Bp, H = hf_ref.shape
    D = wt_ref.shape[-1]

    @pl.when(k == 0)
    def _():
        cf_ref[...] = jnp.zeros_like(cf_ref)
        cb_ref[...] = jnp.zeros_like(cb_ref)

    hf = hf_ref[...]
    hb = hb_ref[...]
    md = wt_ref.dtype                      # bf16 in the fast path, f32 otherwise
    sq = jnp.tanh(
        jnp.dot(hf.reshape(Tc * Bp, H).astype(md), wt_ref[...],
                preferred_element_type=jnp.float32)
        + jnp.dot(hb.reshape(Tc * Bp, H).astype(md), wb_ref[...],
                  preferred_element_type=jnp.float32)).reshape(Tc, Bp, D)
    logits = jnp.sum(sq * p_ref[...].reshape(1, 1, D), axis=-1)        # (Tc, Bp)

    # Softmax over the batch entries of each timestep; mask padded batch rows and
    # exp the MASKED logits (robust even if logit scales grow).
    valid = jax.lax.broadcasted_iota(jnp.int32, (Tc, Bp), 1) < b_real
    masked = jnp.where(valid, logits, -1e30)
    m = jnp.max(masked, axis=1, keepdims=True)
    e = jnp.exp(masked - m)                     # padded rows underflow to exactly 0
    attn = e * pl.reciprocal(jnp.sum(e, axis=1, keepdims=True), approx=fast)

    cf_ref[...] += jnp.sum(attn[:, :, None] * hf, axis=0)
    cb_ref[...] += jnp.sum(attn[:, :, None] * hb, axis=0)


def attention_pallas(gru_out, w_top, w_bot, proj, Tc, b_real, fast):
    _, T, Bp, H = gru_out.shape
    D = w_top.shape[-1]
    nc = T // Tc
    npar = 2 if nc % 2 == 0 else 1          # optional v7x core split over chunk halves
    nck = nc // npar

    kernel = functools.partial(attn_kernel, b_real=b_real, fast=fast)
    return pl.pallas_call(
        kernel,
        out_shape=(jax.ShapeDtypeStruct((npar, Bp, H), jnp.float32),
                   jax.ShapeDtypeStruct((npar, Bp, H), jnp.float32)),
        grid_spec=pltpu.PrefetchScalarGridSpec(
            num_scalar_prefetch=0,
            grid=(npar, nck),
            in_specs=[
                pl.BlockSpec((None, Tc, Bp, H), lambda p, k: (0, p * nck + k, 0, 0)),
                pl.BlockSpec((None, Tc, Bp, H), lambda p, k: (1, p * nck + k, 0, 0)),
                pl.BlockSpec((H, D), lambda p, k: (0, 0)),
                pl.BlockSpec((H, D), lambda p, k: (0, 0)),
                pl.BlockSpec((1, D), lambda p, k: (0, 0)),
            ],
            out_specs=[
                pl.BlockSpec((None, Bp, H), lambda p, k: (p, 0, 0)),
                pl.BlockSpec((None, Bp, H), lambda p, k: (p, 0, 0)),
            ],
        ),
        compiler_params=pltpu.CompilerParams(
            dimension_semantics=("parallel", "arbitrary"),
            vmem_limit_bytes=_VMEM_LIMIT_BYTES),
    )(gru_out, gru_out, w_top, w_bot, proj)


# ---------------------------------------------------------------------------
# Full forward (glue: embedding gather, weight/bias fusion, batch padding)
# ---------------------------------------------------------------------------
def make_forward(use_bf16_mxu=False):
    """use_bf16_mxu=True casts the projection / attention MXU operands to bf16
    (2x MXU throughput, halves streamed HBM/VMEM bytes).  The per-step recurrent
    dot stays f32: it is tiny and latency-bound, so casting it only adds serial
    VPU work."""

    @jax.jit
    def forward(tokens, h0, emb_table,
                wih_f, whh_f, bih_f, bhh_f,
                wih_b, whh_b, bih_b, bhh_b,
                W_word, proj_word):
        T, B = tokens.shape
        H = whh_f.shape[-1]
        E = emb_table.shape[-1]
        Bp = _round_up(max(B, 8), 8)                         # sublane-dense batch
        mxu_dtype = jnp.bfloat16 if use_bf16_mxu else jnp.float32
        esz = 2 if use_bf16_mxu else 4

        # Decoupled, VMEM-aware chunk sizes (double-buffered streamed blocks).
        gru_bytes_t = Bp * (2 * E * esz + 2 * H * 4 + 12 * H)
        attn_bytes_t = 4 * Bp * H * 4
        Tcg = _pick_chunk(T, _vmem_chunk_cap(gru_bytes_t, 8 << 20, hard_cap=16))
        Tca = _pick_chunk(T, _vmem_chunk_cap(attn_bytes_t, 16 << 20, hard_cap=1024))

        # nn.Embedding: data-dependent gather kept in glue.
        # TODO(synk): an in-kernel gather would need pl.ANY HBM refs + manual make_async_copy.
        embedded = emb_table.astype(mxu_dtype)[tokens]                  # (T, B, E)
        if Bp != B:
            embedded = jnp.pad(embedded, ((0, 0), (0, Bp - B), (0, 0)))
            h0p = jnp.pad(h0, ((0, 0), (0, Bp - B), (0, 0)))
        else:
            h0p = h0

        # Per-direction gate-fused weights; fold b_hh_{r,z} into the input-side bias
        # (PyTorch GRU: only b_hh_n sits inside r * (.)).
        def fuse(wih, whh, bih, bhh):
            wih_d = jnp.concatenate([wih[0], wih[1], wih[2]], axis=1)       # (E, 3H)
            whh_d = jnp.concatenate([whh[0], whh[1], whh[2]], axis=1)       # (H, 3H)
            bih_d = jnp.concatenate([bih[0] + bhh[0], bih[1] + bhh[1], bih[2]], axis=1)
            return wih_d, whh_d, bih_d, bhh[2]

        ff = fuse(wih_f, whh_f, bih_f, bhh_f)
        fb = fuse(wih_b, whh_b, bih_b, bhh_b)
        wih2 = jnp.stack([ff[0], fb[0]]).astype(mxu_dtype)     # (2, E, 3H)
        whh2 = jnp.stack([ff[1], fb[1]])                       # (2, H, 3H)  kept f32
        bih2 = jnp.stack([ff[2], fb[2]])                       # (2, 1, 3H)
        bhhn2 = jnp.stack([ff[3], fb[3]])                      # (2, 1, H)

        gru_out = gru_pallas(embedded, h0p, wih2, bih2, whh2, bhhn2, Tcg)  # (2,T,Bp,H)

        w_top = W_word[:H].astype(mxu_dtype)                   # multiplies forward half
        w_bot = W_word[H:].astype(mxu_dtype)                   # multiplies backward half
        ctx_f, ctx_b = attention_pallas(gru_out, w_top, w_bot, proj_word,
                                        Tca, B, use_bf16_mxu)
        word_attn_vectors = jnp.concatenate(
            [jnp.sum(ctx_f, axis=0), jnp.sum(ctx_b, axis=0)], axis=-1)[:B]  # (B, 2H)

        # h_n: forward final state is out_f[T-1]; backward final state is out_b[0].
        state_word = jnp.stack([gru_out[0, T - 1, :B], gru_out[1, 0, :B]], axis=0)
        return word_attn_vectors, state_word

    return forward


# ---------------------------------------------------------------------------
# Pure-JAX f32 reference (same math, no Pallas) for the correctness check
# ---------------------------------------------------------------------------
def reference_forward(tokens, h0, emb_table,
                      wih_f, whh_f, bih_f, bhh_f,
                      wih_b, whh_b, bih_b, bhh_b,
                      W_word, proj_word):
    embedded = emb_table[tokens]
    T = embedded.shape[0]

    def cell(x, h, wih, whh, bih, bhh):
        r = jax.nn.sigmoid(x @ wih[0] + bih[0] + h @ whh[0] + bhh[0])
        z = jax.nn.sigmoid(x @ wih[1] + bih[1] + h @ whh[1] + bhh[1])
        n = jnp.tanh(x @ wih[2] + bih[2] + r * (h @ whh[2] + bhh[2]))
        return (1.0 - z) * n + z * h

    hf, hb = h0[0], h0[1]
    outs_f, outs_b = [], [None] * T
    for t in range(T):
        hf = cell(embedded[t], hf, wih_f, whh_f, bih_f, bhh_f)
        outs_f.append(hf)
    for t in range(T - 1, -1, -1):
        hb = cell(embedded[t], hb, wih_b, whh_b, bih_b, bhh_b)
        outs_b[t] = hb
    output_word = jnp.concatenate([jnp.stack(outs_f), jnp.stack(outs_b)], axis=-1)

    squish = jnp.tanh(output_word @ W_word)                           # (T, B, 2H)
    logits = jnp.einsum('tbd,d->tb', squish, proj_word[0])            # (T, B)
    attn = jax.nn.softmax(logits, axis=1)                             # legacy dim=1 (batch)
    ctx = jnp.sum(attn[:, :, None] * output_word, axis=0)             # (B, 2H)
    state = jnp.stack([outs_f[-1], outs_b[0]], axis=0)
    return ctx, state


if __name__ == "__main__":
    T, B = 8, 2                 # seq_len, batch
    num_tokens, E, H = 50, 32, 32

    key = jax.random.PRNGKey(0)
    ks = jax.random.split(key, 12)

    def uni(k, shape, a):
        return jax.random.uniform(k, shape, jnp.float32, -a, a)

    s = 1.0 / float(np.sqrt(H))
    tokens = jax.random.randint(ks[0], (T, B), 0, num_tokens, dtype=jnp.int32)
    emb_table = jax.random.normal(ks[1], (num_tokens, E), jnp.float32)
    wih_f = uni(ks[2], (3, E, H), s); whh_f = uni(ks[3], (3, H, H), s)
    bih_f = uni(ks[4], (3, 1, H), s); bhh_f = uni(ks[5], (3, 1, H), s)
    wih_b = uni(ks[6], (3, E, H), s); whh_b = uni(ks[7], (3, H, H), s)
    bih_b = uni(ks[8], (3, 1, H), s); bhh_b = uni(ks[9], (3, 1, H), s)
    W_word = uni(ks[10], (2 * H, 2 * H), 0.1)
    proj_word = uni(ks[11], (1, 2 * H), 0.1)     # weight_proj_word stored transposed
    h0 = jnp.zeros((2, B, H), jnp.float32)       # init_hidden()

    args = (tokens, h0, emb_table,
            wih_f, whh_f, bih_f, bhh_f,
            wih_b, whh_b, bih_b, bhh_b,
            W_word, proj_word)

    ctx_ref, state_ref = reference_forward(*args)

    # Strict check: f32 MXU operands everywhere.
    forward_f32 = make_forward(use_bf16_mxu=False)
    ctx, state = forward_f32(*args)
    jax.block_until_ready((ctx, state))
    np.testing.assert_allclose(np.asarray(ctx), np.asarray(ctx_ref), rtol=2e-3, atol=2e-3)
    np.testing.assert_allclose(np.asarray(state), np.asarray(state_ref), rtol=2e-3, atol=2e-3)
    assert ctx.shape == (B, 2 * H) and state.shape == (2, B, H)

    # Fast path: bf16 MXU operands for the projection/attention matmuls
    # (tolerance relaxed for bf16 operand rounding vs. the f32 reference).
    forward_bf16 = make_forward(use_bf16_mxu=True)
    ctx2, state2 = forward_bf16(*args)
    jax.block_until_ready((ctx2, state2))
    np.testing.assert_allclose(np.asarray(ctx2), np.asarray(ctx_ref), rtol=3e-2, atol=3e-2)
    np.testing.assert_allclose(np.asarray(state2), np.asarray(state_ref), rtol=3e-2, atol=3e-2)

    print("KERNEL_OK")
</pallas_src>

<mosaic_0001>
module attributes {stable_mosaic.version = 11 : i64} {
  func.func @attn_kernel(%arg0: i32, %arg1: i32, %arg2: memref<1x8x8x32xf32, #tpu.memory_space<vmem>>, %arg3: memref<1x8x8x32xf32, #tpu.memory_space<vmem>>, %arg4: memref<32x64xf32, #tpu.memory_space<vmem>>, %arg5: memref<32x64xf32, #tpu.memory_space<vmem>>, %arg6: memref<1x64xf32, #tpu.memory_space<vmem>>, %arg7: memref<1x8x32xf32, #tpu.memory_space<vmem>>, %arg8: memref<1x8x32xf32, #tpu.memory_space<vmem>>) attributes {dimension_semantics = [#tpu.dimension_semantics<parallel>, #tpu.dimension_semantics<arbitrary>], iteration_bounds = array<i64: 1, 1>, scalar_prefetch = 0 : i64, scratch_operands = 0 : i64, tpu.core_type = #tpu.core_type<tc>, window_params = [{transform_indices = @transform_0, window_bounds = array<i64: 1, 8, 8, 32>}, {transform_indices = @transform_1, window_bounds = array<i64: 1, 8, 8, 32>}, {pipeline_mode = #tpu.pipeline_mode<synchronous>, transform_indices = @transform_2, window_bounds = array<i64: 32, 64>}, {pipeline_mode = #tpu.pipeline_mode<synchronous>, transform_indices = @transform_3, window_bounds = array<i64: 32, 64>}, {pipeline_mode = #tpu.pipeline_mode<synchronous>, transform_indices = @transform_4, window_bounds = array<i64: 1, 64>}, {transform_indices = @transform_5, window_bounds = array<i64: 1, 8, 32>}, {transform_indices = @transform_6, window_bounds = array<i64: 1, 8, 32>}]} {
    %c0_i32 = arith.constant 0 : i32
    %0 = arith.cmpi eq, %arg1, %c0_i32 : i32
    %1 = arith.extui %0 : i1 to i32
    %c0_i32_0 = arith.constant 0 : i32
    %2 = arith.cmpi ne, %1, %c0_i32_0 : i32
    scf.if %2 {
      %cst_33 = arith.constant 0.000000e+00 : f32
      %56 = vector.broadcast %cst_33 : f32 to vector<8x32xf32>
      %c0_34 = arith.constant 0 : index
      %c0_35 = arith.constant 0 : index
      %c0_36 = arith.constant 0 : index
      %57 = vector.load %arg7[%c0_34, %c0_35, %c0_36] : memref<1x8x32xf32, #tpu.memory_space<vmem>>, vector<1x8x32xf32>
      %58 = vector.shape_cast %57 : vector<1x8x32xf32> to vector<8x32xf32>
      %59 = vector.shape_cast %56 : vector<8x32xf32> to vector<1x8x32xf32>
      tpu.vector_store %arg7[%c0_34, %c0_35, %c0_36], %59 {strides = array<i32>} : memref<1x8x32xf32, #tpu.memory_space<vmem>>, vector<1x8x32xf32>,
      %cst_37 = arith.constant 0.000000e+00 : f32
      %60 = vector.broadcast %cst_37 : f32 to vector<8x32xf32>
      %c0_38 = arith.constant 0 : index
      %c0_39 = arith.constant 0 : index
      %c0_40 = arith.constant 0 : index
      %61 = vector.load %arg8[%c0_38, %c0_39, %c0_40] : memref<1x8x32xf32, #tpu.memory_space<vmem>>, vector<1x8x32xf32>
      %62 = vector.shape_cast %61 : vector<1x8x32xf32> to vector<8x32xf32>
      %63 = vector.shape_cast %60 : vector<8x32xf32> to vector<1x8x32xf32>
      tpu.vector_store %arg8[%c0_38, %c0_39, %c0_40], %63 {strides = array<i32>} : memref<1x8x32xf32, #tpu.memory_space<vmem>>, vector<1x8x32xf32>,
    } else {
    }
    %c0 = arith.constant 0 : index
    %c0_1 = arith.constant 0 : index
    %c0_2 = arith.constant 0 : index
    %c0_3 = arith.constant 0 : index
    %3 = vector.load %arg2[%c0, %c0_1, %c0_2, %c0_3] : memref<1x8x8x32xf32, #tpu.memory_space<vmem>>, vector<1x8x8x32xf32>
    %4 = vector.shape_cast %3 : vector<1x8x8x32xf32> to vector<8x8x32xf32>
    %c0_4 = arith.constant 0 : index
    %c0_5 = arith.constant 0 : index
    %c0_6 = arith.constant 0 : index
    %c0_7 = arith.constant 0 : index
    %5 = vector.load %arg3[%c0_4, %c0_5, %c0_6, %c0_7] : memref<1x8x8x32xf32, #tpu.memory_space<vmem>>, vector<1x8x8x32xf32>
    %6 = vector.shape_cast %5 : vector<1x8x8x32xf32> to vector<8x8x32xf32>
    %7 = vector.shape_cast %4 : vector<8x8x32xf32> to vector<64x32xf32>
    %c0_8 = arith.constant 0 : index
    %c0_9 = arith.constant 0 : index
    %8 = vector.load %arg4[%c0_8, %c0_9] : memref<32x64xf32, #tpu.memory_space<vmem>>, vector<32x64xf32>
    %cst = arith.constant dense<0.000000e+00> : vector<64x64xf32>
    %9 = tpu.matmul %7, %8, %cst {dimension_numbers = #tpu.dot_dimension_numbers<[1], [0], [0], [1], [0, 0, 1, 1], [], []>} : vector<64x32xf32>, vector<32x64xf32>, vector<64x64xf32> -> vector<64x64xf32>
    %10 = vector.shape_cast %6 : vector<8x8x32xf32> to vector<64x32xf32>
    %c0_10 = arith.constant 0 : index
    %c0_11 = arith.constant 0 : index
    %11 = vector.load %arg5[%c0_10, %c0_11] : memref<32x64xf32, #tpu.memory_space<vmem>>, vector<32x64xf32>
    %cst_12 = arith.constant dense<0.000000e+00> : vector<64x64xf32>
    %12 = tpu.matmul %10, %11, %cst_12 {dimension_numbers = #tpu.dot_dimension_numbers<[1], [0], [0], [1], [0, 0, 1, 1], [], []>} : vector<64x32xf32>, vector<32x64xf32>, vector<64x64xf32> -> vector<64x64xf32>
    %13 = arith.addf %9, %12 : vector<64x64xf32>
    %14 = math.tanh %13 : vector<64x64xf32>
    %15 = vector.shape_cast %14 : vector<64x64xf32> to vector<8x8x64xf32>
    %c0_13 = arith.constant 0 : index
    %c0_14 = arith.constant 0 : index
    %16 = vector.load %arg6[%c0_13, %c0_14] : memref<1x64xf32, #tpu.memory_space<vmem>>, vector<1x64xf32>
    %17 = vector.shape_cast %16 : vector<1x64xf32> to vector<1x1x64xf32>
    %18 = vector.broadcast %17 : vector<1x1x64xf32> to vector<8x8x64xf32>
    %19 = arith.mulf %15, %18 : vector<8x8x64xf32>
    %cst_15 = arith.constant dense<0.000000e+00> : vector<8x8xf32>
    %20 = vector.multi_reduction <add>, %19, %cst_15 [2] : vector<8x8x64xf32> to vector<8x8xf32>
    %21 = tpu.iota {dimensions = array<i32: 1>} : vector<8x8xi32>
    %c2_i32 = arith.constant 2 : i32
    %22 = vector.broadcast %c2_i32 : i32 to vector<8x8xi32>
    %23 = arith.cmpi slt, %21, %22 : vector<8x8xi32>
    %cst_16 = arith.constant -1.000000e+30 : f32
    %24 = vector.broadcast %cst_16 : f32 to vector<8x8xf32>
    %25 = arith.select %23, %20, %24 : vector<8x8xi1>, vector<8x8xf32>
    %cst_17 = arith.constant dense<0xFF800000> : vector<8xf32>
    %26 = vector.multi_reduction <maximumf>, %25, %cst_17 [1] : vector<8x8xf32> to vector<8xf32>
    %27 = vector.shape_cast %26 : vector<8xf32> to vector<8x1xf32>
    %28 = vector.broadcast %27 : vector<8x1xf32> to vector<8x8xf32>
    %29 = arith.subf %25, %28 : vector<8x8xf32>
    %30 = math.exp %29 : vector<8x8xf32>
    %cst_18 = arith.constant dense<0.000000e+00> : vector<8xf32>
    %31 = vector.multi_reduction <add>, %30, %cst_18 [1] : vector<8x8xf32> to vector<8xf32>
    %32 = vector.shape_cast %31 : vector<8xf32> to vector<8x1xf32>
    %33 = tpu.reciprocal %32 : vector<8x1xf32> -> vector<8x1xf32>
    %34 = vector.broadcast %33 : vector<8x1xf32> to vector<8x8xf32>
    %35 = arith.mulf %30, %34 : vector<8x8xf32>
    %c0_19 = arith.constant 0 : index
    %c0_20 = arith.constant 0 : index
    %c0_21 = arith.constant 0 : index
    %36 = vector.load %arg7[%c0_19, %c0_20, %c0_21] : memref<1x8x32xf32, #tpu.memory_space<vmem>>, vector<1x8x32xf32>
    %37 = vector.shape_cast %36 : vector<1x8x32xf32> to vector<8x32xf32>
    %38 = vector.shape_cast %35 : vector<8x8xf32> to vector<8x8x1xf32>
    %39 = vector.broadcast %38 : vector<8x8x1xf32> to vector<8x8x32xf32>
    %40 = arith.mulf %39, %4 : vector<8x8x32xf32>
    %cst_22 = arith.constant dense<0.000000e+00> : vector<8x32xf32>
    %41 = vector.multi_reduction <add>, %40, %cst_22 [0] : vector<8x8x32xf32> to vector<8x32xf32>
    %42 = arith.addf %37, %41 : vector<8x32xf32>
    %c0_23 = arith.constant 0 : index
    %c0_24 = arith.constant 0 : index
    %c0_25 = arith.constant 0 : index
    %43 = vector.load %arg7[%c0_23, %c0_24, %c0_25] : memref<1x8x32xf32, #tpu.memory_space<vmem>>, vector<1x8x32xf32>
    %44 = vector.shape_cast %43 : vector<1x8x32xf32> to vector<8x32xf32>
    %45 = vector.shape_cast %42 : vector<8x32xf32> to vector<1x8x32xf32>
    tpu.vector_store %arg7[%c0_23, %c0_24, %c0_25], %45 {strides = array<i32>} : memref<1x8x32xf32, #tpu.memory_space<vmem>>, vector<1x8x32xf32>,
    %c0_26 = arith.constant 0 : index
    %c0_27 = arith.constant 0 : index
    %c0_28 = arith.constant 0 : index
    %46 = vector.load %arg8[%c0_26, %c0_27, %c0_28] : memref<1x8x32xf32, #tpu.memory_space<vmem>>, vector<1x8x32xf32>
    %47 = vector.shape_cast %46 : vector<1x8x32xf32> to vector<8x32xf32>
    %48 = vector.shape_cast %35 : vector<8x8xf32> to vector<8x8x1xf32>
    %49 = vector.broadcast %48 : vector<8x8x1xf32> to vector<8x8x32xf32>
    %50 = arith.mulf %49, %6 : vector<8x8x32xf32>
    %cst_29 = arith.constant dense<0.000000e+00> : vector<8x32xf32>
    %51 = vector.multi_reduction <add>, %50, %cst_29 [0] : vector<8x8x32xf32> to vector<8x32xf32>
    %52 = arith.addf %47, %51 : vector<8x32xf32>
    %c0_30 = arith.constant 0 : index
    %c0_31 = arith.constant 0 : index
    %c0_32 = arith.constant 0 : index
    %53 = vector.load %arg8[%c0_30, %c0_31, %c0_32] : memref<1x8x32xf32, #tpu.memory_space<vmem>>, vector<1x8x32xf32>
    %54 = vector.shape_cast %53 : vector<1x8x32xf32> to vector<8x32xf32>
    %55 = vector.shape_cast %52 : vector<8x32xf32> to vector<1x8x32xf32>
    tpu.vector_store %arg8[%c0_30, %c0_31, %c0_32], %55 {strides = array<i32>} : memref<1x8x32xf32, #tpu.memory_space<vmem>>, vector<1x8x32xf32>,
    return
  }
  func.func @transform_0(%arg0: i32, %arg1: i32) -> (i32, i32, i32, i32) {
    %c1_i32 = arith.constant 1 : i32
    %0 = arith.muli %arg0, %c1_i32 : i32
    %1 = arith.addi %0, %arg1 : i32
    %c0_i32 = arith.constant 0 : i32
    %c0_i32_0 = arith.constant 0 : i32
    %c0_i32_1 = arith.constant 0 : i32
    %c0_i32_2 = arith.constant 0 : i32
    return %c0_i32, %1, %c0_i32_0, %c0_i32_1 : i32, i32, i32, i32
  }
  func.func @transform_1(%arg0: i32, %arg1: i32) -> (i32, i32, i32, i32) {
    %c1_i32 = arith.constant 1 : i32
    %0 = arith.muli %arg0, %c1_i32 : i32
    %1 = arith.addi %0, %arg1 : i32
    %c1_i32_0 = arith.constant 1 : i32
    %c0_i32 = arith.constant 0 : i32
    %c0_i32_1 = arith.constant 0 : i32
    %c0_i32_2 = arith.constant 0 : i32
    return %c1_i32_0, %1, %c0_i32, %c0_i32_1 : i32, i32, i32, i32
  }
  func.func @transform_2(%arg0: i32, %arg1: i32) -> (i32, i32) {
    %c0_i32 = arith.constant 0 : i32
    %c0_i32_0 = arith.constant 0 : i32
    %c0_i32_1 = arith.constant 0 : i32
    return %c0_i32, %c0_i32_0 : i32, i32
  }
  func.func @transform_3(%arg0: i32, %arg1: i32) -> (i32, i32) {
    %c0_i32 = arith.constant 0 : i32
    %c0_i32_0 = arith.constant 0 : i32
    %c0_i32_1 = arith.constant 0 : i32
    return %c0_i32, %c0_i32_0 : i32, i32
  }
  func.func @transform_4(%arg0: i32, %arg1: i32) -> (i32, i32) {
    %c0_i32 = arith.constant 0 : i32
    %c0_i32_0 = arith.constant 0 : i32
    %c0_i32_1 = arith.constant 0 : i32
    return %c0_i32, %c0_i32_0 : i32, i32
  }
  func.func @transform_5(%arg0: i32, %arg1: i32) -> (i32, i32, i32) {
    %c0_i32 = arith.constant 0 : i32
    %c0_i32_0 = arith.constant 0 : i32
    %c0_i32_1 = arith.constant 0 : i32
    return %arg0, %c0_i32, %c0_i32_0 : i32, i32, i32
  }
  func.func @transform_6(%arg0: i32, %arg1: i32) -> (i32, i32, i32) {
    %c0_i32 = arith.constant 0 : i32
    %c0_i32_0 = arith.constant 0 : i32
    %c0_i32_1 = arith.constant 0 : i32
    return %arg0, %c0_i32, %c0_i32_0 : i32, i32, i32
  }
}

module attributes {stable_mosaic.version = 11 : i64} {
  func.func @gru_kernel(%arg0: i32, %arg1: i32, %arg2: memref<1x8x32xf32, #tpu.memory_space<vmem>>, %arg3: memref<8x8x32xf32, #tpu.memory_space<vmem>>, %arg4: memref<1x32x96xf32, #tpu.memory_space<vmem>>, %arg5: memref<1x1x96xf32, #tpu.memory_space<vmem>>, %arg6: memref<1x32x96xf32, #tpu.memory_space<vmem>>, %arg7: memref<1x1x32xf32, #tpu.memory_space<vmem>>, %arg8: memref<1x8x8x32xf32, #tpu.memory_space<vmem>>, %arg9: memref<8x32xf32, #tpu.memory_space<vmem>>, %arg10: memref<8x8x96xf32, #tpu.memory_space<vmem>>) attributes {dimension_semantics = [#tpu.dimension_semantics<parallel>, #tpu.dimension_semantics<arbitrary>], iteration_bounds = array<i64: 2, 1>, scalar_prefetch = 0 : i64, scratch_operands = 2 : i64, tpu.core_type = #tpu.core_type<tc>, window_params = [{transform_indices = @transform_0, window_bounds = array<i64: 1, 8, 32>}, {transform_indices = @transform_1, window_bounds = array<i64: 8, 8, 32>}, {transform_indices = @transform_2, window_bounds = array<i64: 1, 32, 96>}, {transform_indices = @transform_3, window_bounds = array<i64: 1, 1, 96>}, {transform_indices = @transform_4, window_bounds = array<i64: 1, 32, 96>}, {transform_indices = @transform_5, window_bounds = array<i64: 1, 1, 32>}, {transform_indices = @transform_6, window_bounds = array<i64: 1, 8, 8, 32>}]} {
    %c0_i32 = arith.constant 0 : i32
    %0 = arith.cmpi eq, %arg1, %c0_i32 : i32
    %1 = arith.extui %0 : i1 to i32
    %c0_i32_0 = arith.constant 0 : i32
    %2 = arith.cmpi ne, %1, %c0_i32_0 : i32
    scf.if %2 {
      %c0_21 = arith.constant 0 : index
      %c0_22 = arith.constant 0 : index
      %c0_23 = arith.constant 0 : index
      %26 = vector.load %arg2[%c0_21, %c0_22, %c0_23] : memref<1x8x32xf32, #tpu.memory_space<vmem>>, vector<1x8x32xf32>
      %27 = vector.shape_cast %26 : vector<1x8x32xf32> to vector<8x32xf32>
      %c0_24 = arith.constant 0 : index
      %c0_25 = arith.constant 0 : index
      %28 = vector.load %arg9[%c0_24, %c0_25] : memref<8x32xf32, #tpu.memory_space<vmem>>, vector<8x32xf32>
      tpu.vector_store %arg9[%c0_24, %c0_25], %27 {strides = array<i32>} : memref<8x32xf32, #tpu.memory_space<vmem>>, vector<8x32xf32>,
    } else {
    }
    %c0 = arith.constant 0 : index
    %c0_1 = arith.constant 0 : index
    %c0_2 = arith.constant 0 : index
    %3 = vector.load %arg3[%c0, %c0_1, %c0_2] : memref<8x8x32xf32, #tpu.memory_space<vmem>>, vector<8x8x32xf32>
    %4 = vector.shape_cast %3 : vector<8x8x32xf32> to vector<64x32xf32>
    %c0_3 = arith.constant 0 : index
    %c0_4 = arith.constant 0 : index
    %c0_5 = arith.constant 0 : index
    %5 = vector.load %arg4[%c0_3, %c0_4, %c0_5] : memref<1x32x96xf32, #tpu.memory_space<vmem>>, vector<1x32x96xf32>
    %6 = vector.shape_cast %5 : vector<1x32x96xf32> to vector<32x96xf32>
    %cst = arith.constant dense<0.000000e+00> : vector<64x96xf32>
    %7 = tpu.matmul %4, %6, %cst {dimension_numbers = #tpu.dot_dimension_numbers<[1], [0], [0], [1], [0, 0, 1, 1], [], []>} : vector<64x32xf32>, vector<32x96xf32>, vector<64x96xf32> -> vector<64x96xf32>
    %c0_6 = arith.constant 0 : index
    %c0_7 = arith.constant 0 : index
    %c0_8 = arith.constant 0 : index
    %8 = vector.load %arg5[%c0_6, %c0_7, %c0_8] : memref<1x1x96xf32, #tpu.memory_space<vmem>>, vector<1x1x96xf32>
    %9 = vector.shape_cast %8 : vector<1x1x96xf32> to vector<1x96xf32>
    %10 = vector.broadcast %9 : vector<1x96xf32> to vector<64x96xf32>
    %11 = arith.addf %7, %10 : vector<64x96xf32>
    %12 = vector.shape_cast %11 : vector<64x96xf32> to vector<8x8x96xf32>
    %c0_9 = arith.constant 0 : index
    %c0_10 = arith.constant 0 : index
    %c0_11 = arith.constant 0 : index
    %13 = vector.load %arg10[%c0_9, %c0_10, %c0_11] : memref<8x8x96xf32, #tpu.memory_space<vmem>>, vector<8x8x96xf32>
    tpu.vector_store %arg10[%c0_9, %c0_10, %c0_11], %12 {strides = array<i32>} : memref<8x8x96xf32, #tpu.memory_space<vmem>>, vector<8x8x96xf32>,
    %c0_12 = arith.constant 0 : index
    %c0_13 = arith.constant 0 : index
    %c0_14 = arith.constant 0 : index
    %14 = vector.load %arg6[%c0_12, %c0_13, %c0_14] : memref<1x32x96xf32, #tpu.memory_space<vmem>>, vector<1x32x96xf32>
    %15 = vector.shape_cast %14 : vector<1x32x96xf32> to vector<32x96xf32>
    %c0_15 = arith.constant 0 : index
    %c0_16 = arith.constant 0 : index
    %c0_17 = arith.constant 0 : index
    %16 = vector.load %arg7[%c0_15, %c0_16, %c0_17] : memref<1x1x32xf32, #tpu.memory_space<vmem>>, vector<1x1x32xf32>
    %17 = vector.shape_cast %16 : vector<1x1x32xf32> to vector<1x32xf32>
    %18 = vector.shape_cast %17 : vector<1x32xf32> to vector<1x32xf32>
    %19 = vector.broadcast %18 : vector<1x32xf32> to vector<8x32xf32>
    %c0_i32_18 = arith.constant 0 : i32
    %20 = arith.cmpi eq, %arg0, %c0_i32_18 : i32
    %21 = arith.extui %20 : i1 to i32
    %c0_i32_19 = arith.constant 0 : i32
    %22 = arith.cmpi ne, %21, %c0_i32_19 : i32
    scf.if %22 {
      %c0_21 = arith.constant 0 : index
      %c0_22 = arith.constant 0 : index
      %26 = vector.load %arg9[%c0_21, %c0_22] : memref<8x32xf32, #tpu.memory_space<vmem>>, vector<8x32xf32>
      %c0_i32_23 = arith.constant 0 : i32
      %27 = arith.index_cast %c0_i32_23 : i32 to index
      %c0_24 = arith.constant 0 : index
      %c0_25 = arith.constant 0 : index
      %28 = vector.load %arg10[%27, %c0_24, %c0_25] : memref<8x8x96xf32, #tpu.memory_space<vmem>>, vector<1x8x96xf32>
      %29 = vector.shape_cast %28 : vector<1x8x96xf32> to vector<8x96xf32>
      %cst_26 = arith.constant dense<0.000000e+00> : vector<8x96xf32>
      %30 = tpu.matmul %26, %15, %cst_26 {dimension_numbers = #tpu.dot_dimension_numbers<[1], [0], [0], [1], [0, 0, 1, 1], [], []>} : vector<8x32xf32>, vector<32x96xf32>, vector<8x96xf32> -> vector<8x96xf32>
      %31 = vector.extract_strided_slice %29 {offsets = [0, 0], sizes = [8, 32], strides = [1, 1]} : vector<8x96xf32> to vector<8x32xf32>
      %32 = vector.extract_strided_slice %30 {offsets = [0, 0], sizes = [8, 32], strides = [1, 1]} : vector<8x96xf32> to vector<8x32xf32>
      %33 = arith.addf %31, %32 : vector<8x32xf32>
      %34 = arith.negf %33 : vector<8x32xf32>
      %35 = math.exp %34 : vector<8x32xf32>
      %cst_27 = arith.constant 1.000000e+00 : f32
      %36 = vector.broadcast %cst_27 : f32 to vector<8x32xf32>
      %37 = arith.addf %36, %35 : vector<8x32xf32>
      %38 = arith.divf %36, %37 : vector<8x32xf32>
      %39 = vector.extract_strided_slice %29 {offsets = [0, 32], sizes = [8, 32], strides = [1, 1]} : vector<8x96xf32> to vector<8x32xf32>
      %40 = vector.extract_strided_slice %30 {offsets = [0, 32], sizes = [8, 32], strides = [1, 1]} : vector<8x96xf32> to vector<8x32xf32>
      %41 = arith.addf %39, %40 : vector<8x32xf32>
      %42 = arith.negf %41 : vector<8x32xf32>
      %43 = math.exp %42 : vector<8x32xf32>
      %cst_28 = arith.constant 1.000000e+00 : f32
      %44 = vector.broadcast %cst_28 : f32 to vector<8x32xf32>
      %45 = arith.addf %44, %43 : vector<8x32xf32>
      %46 = arith.divf %44, %45 : vector<8x32xf32>
      %47 = vector.extract_strided_slice %29 {offsets = [0, 64], sizes = [8, 32], strides = [1, 1]} : vector<8x96xf32> to vector<8x32xf32>
      %48 = vector.extract_strided_slice %30 {offsets = [0, 64], sizes = [8, 32], strides = [1, 1]} : vector<8x96xf32> to vector<8x32xf32>
      %49 = arith.addf %48, %19 : vector<8x32xf32>
      %50 = arith.mulf %38, %49 : vector<8x32xf32>
      %51 = arith.addf %47, %50 : vector<8x32xf32>
      %52 = math.tanh %51 : vector<8x32xf32>
      %cst_29 = arith.constant 1.000000e+00 : f32
      %53 = vector.broadcast %cst_29 : f32 to vector<8x32xf32>
      %54 = arith.subf %53, %46 : vector<8x32xf32>
      %55 = arith.mulf %54, %52 : vector<8x32xf32>
      %56 = arith.mulf %46, %26 : vector<8x32xf32>
      %57 = arith.addf %55, %56 : vector<8x32xf32>
      %c0_30 = arith.constant 0 : index
      %58 = arith.index_cast %c0_i32_23 : i32 to index
      %c0_31 = arith.constant 0 : index
      %c0_32 = arith.constant 0 : index
      %59 = vector.load %arg8[%c0_30, %58, %c0_31, %c0_32] : memref<1x8x8x32xf32, #tpu.memory_space<vmem>>, vector<1x1x8x32xf32>
      %60 = vector.shape_cast %59 : vector<1x1x8x32xf32> to vector<8x32xf32>
      %61 = vector.shape_cast %57 : vector<8x32xf32> to vector<1x1x8x32xf32>
      tpu.vector_store %arg8[%c0_30, %58, %c0_31, %c0_32], %61 {strides = array<i32>} : memref<1x8x8x32xf32, #tpu.memory_space<vmem>>, vector<1x1x8x32xf32>,
      %c1_i32_33 = arith.constant 1 : i32
      %62 = arith.index_cast %c1_i32_33 : i32 to index
      %c0_34 = arith.constant 0 : index
      %c0_35 = arith.constant 0 : index
      %63 = vector.load %arg10[%62, %c0_34, %c0_35] : memref<8x8x96xf32, #tpu.memory_space<vmem>>, vector<1x8x96xf32>
      %64 = vector.shape_cast %63 : vector<1x8x96xf32> to vector<8x96xf32>
      %cst_36 = arith.constant dense<0.000000e+00> : vector<8x96xf32>
      %65 = tpu.matmul %57, %15, %cst_36 {dimension_numbers = #tpu.dot_dimension_numbers<[1], [0], [0], [1], [0, 0, 1, 1], [], []>} : vector<8x32xf32>, vector<32x96xf32>, vector<8x96xf32> -> vector<8x96xf32>
      %66 = vector.extract_strided_slice %64 {offsets = [0, 0], sizes = [8, 32], strides = [1, 1]} : vector<8x96xf32> to vector<8x32xf32>
      %67 = vector.extract_strided_slice %65 {offsets = [0, 0], sizes = [8, 32], strides = [1, 1]} : vector<8x96xf32> to vector<8x32xf32>
      %68 = arith.addf %66, %67 : vector<8x32xf32>
      %69 = arith.negf %68 : vector<8x32xf32>
      %70 = math.exp %69 : vector<8x32xf32>
      %cst_37 = arith.constant 1.000000e+00 : f32
      %71 = vector.broadcast %cst_37 : f32 to vector<8x32xf32>
      %72 = arith.addf %71, %70 : vector<8x32xf32>
      %73 = arith.divf %71, %72 : vector<8x32xf32>
      %74 = vector.extract_strided_slice %64 {offsets = [0, 32], sizes = [8, 32], strides = [1, 1]} : vector<8x96xf32> to vector<8x32xf32>
      %75 = vector.extract_strided_slice %65 {offsets = [0, 32], sizes = [8, 32], strides = [1, 1]} : vector<8x96xf32> to vector<8x32xf32>
      %76 = arith.addf %74, %75 : vector<8x32xf32>
      %77 = arith.negf %76 : vector<8x32xf32>
      %78 = math.exp %77 : vector<8x32xf32>
      %cst_38 = arith.constant 1.000000e+00 : f32
      %79 = vector.broadcast %cst_38 : f32 to vector<8x32xf32>
      %80 = arith.addf %79, %78 : vector<8x32xf32>
      %81 = arith.divf %79, %80 : vector<8x32xf32>
      %82 = vector.extract_strided_slice %64 {offsets = [0, 64], sizes = [8, 32], strides = [1, 1]} : vector<8x96xf32> to vector<8x32xf32>
      %83 = vector.extract_strided_slice %65 {offsets = [0, 64], sizes = [8, 32], strides = [1, 1]} : vector<8x96xf32> to vector<8x32xf32>
      %84 = arith.addf %83, %19 : vector<8x32xf32>
      %85 = arith.mulf %73, %84 : vector<8x32xf32>
      %86 = arith.addf %82, %85 : vector<8x32xf32>
      %87 = math.tanh %86 : vector<8x32xf32>
      %cst_39 = arith.constant 1.000000e+00 : f32
      %88 = vector.broadcast %cst_39 : f32 to vector<8x32xf32>
      %89 = arith.subf %88, %81 : vector<8x32xf32>
      %90 = arith.mulf %89, %87 : vector<8x32xf32>
      %91 = arith.mulf %81, %57 : vector<8x32xf32>
      %92 = arith.addf %90, %91 : vector<8x32xf32>
      %c0_40 = arith.constant 0 : index
      %93 = arith.index_cast %c1_i32_33 : i32 to index
      %c0_41 = arith.constant 0 : index
      %c0_42 = arith.constant 0 : index
      %94 = vector.load %arg8[%c0_40, %93, %c0_41, %c0_42] : memref<1x8x8x32xf32, #tpu.memory_space<vmem>>, vector<1x1x8x32xf32>
      %95 = vector.shape_cast %94 : vector<1x1x8x32xf32> to vector<8x32xf32>
      %96 = vector.shape_cast %92 : vector<8x32xf32> to vector<1x1x8x32xf32>
      tpu.vector_store %arg8[%c0_40, %93, %c0_41, %c0_42], %96 {strides = array<i32>} : memref<1x8x8x32xf32, #tpu.memory_space<vmem>>, vector<1x1x8x32xf32>,
      %c2_i32 = arith.constant 2 : i32
      %97 = arith.index_cast %c2_i32 : i32 to index
      %c0_43 = arith.constant 0 : index
      %c0_44 = arith.constant 0 : index
      %98 = vector.load %arg10[%97, %c0_43, %c0_44] : memref<8x8x96xf32, #tpu.memory_space<vmem>>, vector<1x8x96xf32>
      %99 = vector.shape_cast %98 : vector<1x8x96xf32> to vector<8x96xf32>
      %cst_45 = arith.constant dense<0.000000e+00> : vector<8x96xf32>
      %100 = tpu.matmul %92, %15, %cst_45 {dimension_numbers = #tpu.dot_dimension_numbers<[1], [0], [0], [1], [0, 0, 1, 1], [], []>} : vector<8x32xf32>, vector<32x96xf32>, vector<8x96xf32> -> vector<8x96xf32>
      %101 = vector.extract_strided_slice %99 {offsets = [0, 0], sizes = [8, 32], strides = [1, 1]} : vector<8x96xf32> to vector<8x32xf32>
      %102 = vector.extract_strided_slice %100 {offsets = [0, 0], sizes = [8, 32], strides = [1, 1]} : vector<8x96xf32> to vector<8x32xf32>
      %103 = arith.addf %101, %102 : vector<8x32xf32>
      %104 = arith.negf %103 : vector<8x32xf32>
      %105 = math.exp %104 : vector<8x32xf32>
      %cst_46 = arith.constant 1.000000e+00 : f32
      %106 = vector.broadcast %cst_46 : f32 to vector<8x32xf32>
      %107 = arith.addf %106, %105 : vector<8x32xf32>
      %108 = arith.divf %106, %107 : vector<8x32xf32>
      %109 = vector.extract_strided_slice %99 {offsets = [0, 32], sizes = [8, 32], strides = [1, 1]} : vector<8x96xf32> to vector<8x32xf32>
      %110 = vector.extract_strided_slice %100 {offsets = [0, 32], sizes = [8, 32], strides = [1, 1]} : vector<8x96xf32> to vector<8x32xf32>
      %111 = arith.addf %109, %110 : vector<8x32xf32>
      %112 = arith.negf %111 : vector<8x32xf32>
      %113 = math.exp %112 : vector<8x32xf32>
      %cst_47 = arith.constant 1.000000e+00 : f32
      %114 = vector.broadcast %cst_47 : f32 to vector<8x32xf32>
      %115 = arith.addf %114, %113 : vector<8x32xf32>
      %116 = arith.divf %114, %115 : vector<8x32xf32>
      %117 = vector.extract_strided_slice %99 {offsets = [0, 64], sizes = [8, 32], strides = [1, 1]} : vector<8x96xf32> to vector<8x32xf32>
      %118 = vector.extract_strided_slice %100 {offsets = [0, 64], sizes = [8, 32], strides = [1, 1]} : vector<8x96xf32> to vector<8x32xf32>
      %119 = arith.addf %118, %19 : vector<8x32xf32>
      %120 = arith.mulf %108, %119 : vector<8x32xf32>
      %121 = arith.addf %117, %120 : vector<8x32xf32>
      %122 = math.tanh %121 : vector<8x32xf32>
      %cst_48 = arith.constant 1.000000e+00 : f32
      %123 = vector.broadcast %cst_48 : f32 to vector<8x32xf32>
      %124 = arith.subf %123, %116 : vector<8x32xf32>
      %125 = arith.mulf %124, %122 : vector<8x32xf32>
      %126 = arith.mulf %116, %92 : vector<8x32xf32>
      %127 = arith.addf %125, %126 : vector<8x32xf32>
      %c0_49 = arith.constant 0 : index
      %128 = arith.index_cast %c2_i32 : i32 to index
      %c0_50 = arith.constant 0 : index
      %c0_51 = arith.constant 0 : index
      %129 = vector.load %arg8[%c0_49, %128, %c0_50, %c0_51] : memref<1x8x8x32xf32, #tpu.memory_space<vmem>>, vector<1x1x8x32xf32>
      %130 = vector.shape_cast %129 : vector<1x1x8x32xf32> to vector<8x32xf32>
      %131 = vector.shape_cast %127 : vector<8x32xf32> to vector<1x1x8x32xf32>
      tpu.vector_store %arg8[%c0_49, %128, %c0_50, %c0_51], %131 {strides = array<i32>} : memref<1x8x8x32xf32, #tpu.memory_space<vmem>>, vector<1x1x8x32xf32>,
      %c3_i32 = arith.constant 3 : i32
      %132 = arith.index_cast %c3_i32 : i32 to index
      %c0_52 = arith.constant 0 : index
      %c0_53 = arith.constant 0 : index
      %133 = vector.load %arg10[%132, %c0_52, %c0_53] : memref<8x8x96xf32, #tpu.memory_space<vmem>>, vector<1x8x96xf32>
      %134 = vector.shape_cast %133 : vector<1x8x96xf32> to vector<8x96xf32>
      %cst_54 = arith.constant dense<0.000000e+00> : vector<8x96xf32>
      %135 = tpu.matmul %127, %15, %cst_54 {dimension_numbers = #tpu.dot_dimension_numbers<[1], [0], [0], [1], [0, 0, 1, 1], [], []>} : vector<8x32xf32>, vector<32x96xf32>, vector<8x96xf32> -> vector<8x96xf32>
      %136 = vector.extract_strided_slice %134 {offsets = [0, 0], sizes = [8, 32], strides = [1, 1]} : vector<8x96xf32> to vector<8x32xf32>
      %137 = vector.extract_strided_slice %135 {offsets = [0, 0], sizes = [8, 32], strides = [1, 1]} : vector<8x96xf32> to vector<8x32xf32>
      %138 = arith.addf %136, %137 : vector<8x32xf32>
      %139 = arith.negf %138 : vector<8x32xf32>
      %140 = math.exp %139 : vector<8x32xf32>
      %cst_55 = arith.constant 1.000000e+00 : f32
      %141 = vector.broadcast %cst_55 : f32 to vector<8x32xf32>
      %142 = arith.addf %141, %140 : vector<8x32xf32>
      %143 = arith.divf %141, %142 : vector<8x32xf32>
      %144 = vector.extract_strided_slice %134 {offsets = [0, 32], sizes = [8, 32], strides = [1, 1]} : vector<8x96xf32> to vector<8x32xf32>
      %145 = vector.extract_strided_slice %135 {offsets = [0, 32], sizes = [8, 32], strides = [1, 1]} : vector<8x96xf32> to vector<8x32xf32>
      %146 = arith.addf %144, %145 : vector<8x32xf32>
      %147 = arith.negf %146 : vector<8x32xf32>
      %148 = math.exp %147 : vector<8x32xf32>
      %cst_56 = arith.constant 1.000000e+00 : f32
      %149 = vector.broadcast %cst_56 : f32 to vector<8x32xf32>
      %150 = arith.addf %149, %148 : vector<8x32xf32>
      %151 = arith.divf %149, %150 : vector<8x32xf32>
      %152 = vector.extract_strided_slice %134 {offsets = [0, 64], sizes = [8, 32], strides = [1, 1]} : vector<8x96xf32> to vector<8x32xf32>
      %153 = vector.extract_strided_slice %135 {offsets = [0, 64], sizes = [8, 32], strides = [1, 1]} : vector<8x96xf32> to vector<8x32xf32>
      %154 = arith.addf %153, %19 : vector<8x32xf32>
      %155 = arith.mulf %143, %154 : vector<8x32xf32>
      %156 = arith.addf %152, %155 : vector<8x32xf32>
      %157 = math.tanh %156 : vector<8x32xf32>
      %cst_57 = arith.constant 1.000000e+00 : f32
      %158 = vector.broadcast %cst_57 : f32 to vector<8x32xf32>
      %159 = arith.subf %158, %151 : vector<8x32xf32>
      %160 = arith.mulf %159, %157 : vector<8x32xf32>
      %161 = arith.mulf %151, %127 : vector<8x32xf32>
      %162 = arith.addf %160, %161 : vector<8x32xf32>
      %c0_58 = arith.constant 0 : index
      %163 = arith.index_cast %c3_i32 : i32 to index
      %c0_59 = arith.constant 0 : index
      %c0_60 = arith.constant 0 : index
      %164 = vector.load %arg8[%c0_58, %163, %c0_59, %c0_60] : memref<1x8x8x32xf32, #tpu.memory_space<vmem>>, vector<1x1x8x32xf32>
      %165 = vector.shape_cast %164 : vector<1x1x8x32xf32> to vector<8x32xf32>
      %166 = vector.shape_cast %162 : vector<8x32xf32> to vector<1x1x8x32xf32>
      tpu.vector_store %arg8[%c0_58, %163, %c0_59, %c0_60], %166 {strides = array<i32>} : memref<1x8x8x32xf32, #tpu.memory_space<vmem>>, vector<1x1x8x32xf32>,
      %c4_i32 = arith.constant 4 : i32
      %167 = arith.index_cast %c4_i32 : i32 to index
      %c0_61 = arith.constant 0 : index
      %c0_62 = arith.constant 0 : index
      %168 = vector.load %arg10[%167, %c0_61, %c0_62] : memref<8x8x96xf32, #tpu.memory_space<vmem>>, vector<1x8x96xf32>
      %169 = vector.shape_cast %168 : vector<1x8x96xf32> to vector<8x96xf32>
      %cst_63 = arith.constant dense<0.000000e+00> : vector<8x96xf32>
      %170 = tpu.matmul %162, %15, %cst_63 {dimension_numbers = #tpu.dot_dimension_numbers<[1], [0], [0], [1], [0, 0, 1, 1], [], []>} : vector<8x32xf32>, vector<32x96xf32>, vector<8x96xf32> -> vector<8x96xf32>
      %171 = vector.extract_strided_slice %169 {offsets = [0, 0], sizes = [8, 32], strides = [1, 1]} : vector<8x96xf32> to vector<8x32xf32>
      %172 = vector.extract_strided_slice %170 {offsets = [0, 0], sizes = [8, 32], strides = [1, 1]} : vector<8x96xf32> to vector<8x32xf32>
      %173 = arith.addf %171, %172 : vector<8x32xf32>
      %174 = arith.negf %173 : vector<8x32xf32>
      %175 = math.exp %174 : vector<8x32xf32>
      %cst_64 = arith.constant 1.000000e+00 : f32
      %176 = vector.broadcast %cst_64 : f32 to vector<8x32xf32>
      %177 = arith.addf %176, %175 : vector<8x32xf32>
      %178 = arith.divf %176, %177 : vector<8x32xf32>
      %179 = vector.extract_strided_slice %169 {offsets = [0, 32], sizes = [8, 32], strides = [1, 1]} : vector<8x96xf32> to vector<8x32xf32>
      %180 = vector.extract_strided_slice %170 {offsets = [0, 32], sizes = [8, 32], strides = [1, 1]} : vector<8x96xf32> to vector<8x32xf32>
      %181 = arith.addf %179, %180 : vector<8x32xf32>
      %182 = arith.negf %181 : vector<8x32xf32>
      %183 = math.exp %182 : vector<8x32xf32>
      %cst_65 = arith.constant 1.000000e+00 : f32
      %184 = vector.broadcast %cst_65 : f32 to vector<8x32xf32>
      %185 = arith.addf %184, %183 : vector<8x32xf32>
      %186 = arith.divf %184, %185 : vector<8x32xf32>
      %187 = vector.extract_strided_slice %169 {offsets = [0, 64], sizes = [8, 32], strides = [1, 1]} : vector<8x96xf32> to vector<8x32xf32>
      %188 = vector.extract_strided_slice %170 {offsets = [0, 64], sizes = [8, 32], strides = [1, 1]} : vector<8x96xf32> to vector<8x32xf32>
      %189 = arith.addf %188, %19 : vector<8x32xf32>
      %190 = arith.mulf %178, %189 : vector<8x32xf32>
      %191 = arith.addf %187, %190 : vector<8x32xf32>
      %192 = math.tanh %191 : vector<8x32xf32>
      %cst_66 = arith.constant 1.000000e+00 : f32
      %193 = vector.broadcast %cst_66 : f32 to vector<8x32xf32>
      %194 = arith.subf %193, %186 : vector<8x32xf32>
      %195 = arith.mulf %194, %192 : vector<8x32xf32>
      %196 = arith.mulf %186, %162 : vector<8x32xf32>
      %197 = arith.addf %195, %196 : vector<8x32xf32>
      %c0_67 = arith.constant 0 : index
      %198 = arith.index_cast %c4_i32 : i32 to index
      %c0_68 = arith.constant 0 : index
      %c0_69 = arith.constant 0 : index
      %199 = vector.load %arg8[%c0_67, %198, %c0_68, %c0_69] : memref<1x8x8x32xf32, #tpu.memory_space<vmem>>, vector<1x1x8x32xf32>
      %200 = vector.shape_cast %199 : vector<1x1x8x32xf32> to vector<8x32xf32>
      %201 = vector.shape_cast %197 : vector<8x32xf32> to vector<1x1x8x32xf32>
      tpu.vector_store %arg8[%c0_67, %198, %c0_68, %c0_69], %201 {strides = array<i32>} : memref<1x8x8x32xf32, #tpu.memory_space<vmem>>, vector<1x1x8x32xf32>,
      %c5_i32 = arith.constant 5 : i32
      %202 = arith.index_cast %c5_i32 : i32 to index
      %c0_70 = arith.constant 0 : index
      %c0_71 = arith.constant 0 : index
      %203 = vector.load %arg10[%202, %c0_70, %c0_71] : memref<8x8x96xf32, #tpu.memory_space<vmem>>, vector<1x8x96xf32>
      %204 = vector.shape_cast %203 : vector<1x8x96xf32> to vector<8x96xf32>
      %cst_72 = arith.constant dense<0.000000e+00> : vector<8x96xf32>
      %205 = tpu.matmul %197, %15, %cst_72 {dimension_numbers = #tpu.dot_dimension_numbers<[1], [0], [0], [1], [0, 0, 1, 1], [], []>} : vector<8x32xf32>, vector<32x96xf32>, vector<8x96xf32> -> vector<8x96xf32>
      %206 = vector.extract_strided_slice %204 {offsets = [0, 0], sizes = [8, 32], strides = [1, 1]} : vector<8x96xf32> to vector<8x32xf32>
      %207 = vector.extract_strided_slice %205 {offsets = [0, 0], sizes = [8, 32], strides = [1, 1]} : vector<8x96xf32> to vector<8x32xf32>
      %208 = arith.addf %206, %207 : vector<8x32xf32>
      %209 = arith.negf %208 : vector<8x32xf32>
      %210 = math.exp %209 : vector<8x32xf32>
      %cst_73 = arith.constant 1.000000e+00 : f32
      %211 = vector.broadcast %cst_73 : f32 to vector<8x32xf32>
      %212 = arith.addf %211, %210 : vector<8x32xf32>
      %213 = arith.divf %211, %212 : vector<8x32xf32>
      %214 = vector.extract_strided_slice %204 {offsets = [0, 32], sizes = [8, 32], strides = [1, 1]} : vector<8x96xf32> to vector<8x32xf32>
      %215 = vector.extract_strided_slice %205 {offsets = [0, 32], sizes = [8, 32], strides = [1, 1]} : vector<8x96xf32> to vector<8x32xf32>
      %216 = arith.addf %214, %215 : vector<8x32xf32>
      %217 = arith.negf %216 : vector<8x32xf32>
      %218 = math.exp %217 : vector<8x32xf32>
      %cst_74 = arith.constant 1.000000e+00 : f32
      %219 = vector.broadcast %cst_74 : f32 to vector<8x32xf32>
      %220 = arith.addf %219, %218 : vector<8x32xf32>
      %221 = arith.divf %219, %220 : vector<8x32xf32>
      %222 = vector.extract_strided_slice %204 {offsets = [0, 64], sizes = [8, 32], strides = [1, 1]} : vector<8x96xf32> to vector<8x32xf32>
      %223 = vector.extract_strided_slice %205 {offsets = [0, 64], sizes = [8, 32], strides = [1, 1]} : vector<8x96xf32> to vector<8x32xf32>
      %224 = arith.addf %223, %19 : vector<8x32xf32>
      %225 = arith.mulf %213, %224 : vector<8x32xf32>
      %226 = arith.addf %222, %225 : vector<8x32xf32>
      %227 = math.tanh %226 : vector<8x32xf32>
      %cst_75 = arith.constant 1.000000e+00 : f32
      %228 = vector.broadcast %cst_75 : f32 to vector<8x32xf32>
      %229 = arith.subf %228, %221 : vector<8x32xf32>
      %230 = arith.mulf %229, %227 : vector<8x32xf32>
      %231 = arith.mulf %221, %197 : vector<8x32xf32>
      %232 = arith.addf %230, %231 : vector<8x32xf32>
      %c0_76 = arith.constant 0 : index
      %233 = arith.index_cast %c5_i32 : i32 to index
      %c0_77 = arith.constant 0 : index
      %c0_78 = arith.constant 0 : index
      %234 = vector.load %arg8[%c0_76, %233, %c0_77, %c0_78] : memref<1x8x8x32xf32, #tpu.memory_space<vmem>>, vector<1x1x8x32xf32>
      %235 = vector.shape_cast %234 : vector<1x1x8x32xf32> to vector<8x32xf32>
      %236 = vector.shape_cast %232 : vector<8x32xf32> to vector<1x1x8x32xf32>
      tpu.vector_store %arg8[%c0_76, %233, %c0_77, %c0_78], %236 {strides = array<i32>} : memref<1x8x8x32xf32, #tpu.memory_space<vmem>>, vector<1x1x8x32xf32>,
      %c6_i32 = arith.constant 6 : i32
      %237 = arith.index_cast %c6_i32 : i32 to index
      %c0_79 = arith.constant 0 : index
      %c0_80 = arith.constant 0 : index
      %238 = vector.load %arg10[%237, %c0_79, %c0_80] : memref<8x8x96xf32, #tpu.memory_space<vmem>>, vector<1x8x96xf32>
      %239 = vector.shape_cast %238 : vector<1x8x96xf32> to vector<8x96xf32>
      %cst_81 = arith.constant dense<0.000000e+00> : vector<8x96xf32>
      %240 = tpu.matmul %232, %15, %cst_81 {dimension_numbers = #tpu.dot_dimension_numbers<[1], [0], [0], [1], [0, 0, 1, 1], [], []>} : vector<8x32xf32>, vector<32x96xf32>, vector<8x96xf32> -> vector<8x96xf32>
      %241 = vector.extract_strided_slice %239 {offsets = [0, 0], sizes = [8, 32], strides = [1, 1]} : vector<8x96xf32> to vector<8x32xf32>
      %242 = vector.extract_strided_slice %240 {offsets = [0, 0], sizes = [8, 32], strides = [1, 1]} : vector<8x96xf32> to vector<8x32xf32>
      %243 = arith.addf %241, %242 : vector<8x32xf32>
      %244 = arith.negf %243 : vector<8x32xf32>
      %245 = math.exp %244 : vector<8x32xf32>
      %cst_82 = arith.constant 1.000000e+00 : f32
      %246 = vector.broadcast %cst_82 : f32 to vector<8x32xf32>
      %247 = arith.addf %246, %245 : vector<8x32xf32>
      %248 = arith.divf %246, %247 : vector<8x32xf32>
      %249 = vector.extract_strided_slice %239 {offsets = [0, 32], sizes = [8, 32], strides = [1, 1]} : vector<8x96xf32> to vector<8x32xf32>
      %250 = vector.extract_strided_slice %240 {offsets = [0, 32], sizes = [8, 32], strides = [1, 1]} : vector<8x96xf32> to vector<8x32xf32>
      %251 = arith.addf %249, %250 : vector<8x32xf32>
      %252 = arith.negf %251 : vector<8x32xf32>
      %253 = math.exp %252 : vector<8x32xf32>
      %cst_83 = arith.constant 1.000000e+00 : f32
      %254 = vector.broadcast %cst_83 : f32 to vector<8x32xf32>
      %255 = arith.addf %254, %253 : vector<8x32xf32>
      %256 = arith.divf %254, %255 : vector<8x32xf32>
      %257 = vector.extract_strided_slice %239 {offsets = [0, 64], sizes = [8, 32], strides = [1, 1]} : vector<8x96xf32> to vector<8x32xf32>
      %258 = vector.extract_strided_slice %240 {offsets = [0, 64], sizes = [8, 32], strides = [1, 1]} : vector<8x96xf32> to vector<8x32xf32>
      %259 = arith.addf %258, %19 : vector<8x32xf32>
      %260 = arith.mulf %248, %259 : vector<8x32xf32>
      %261 = arith.addf %257, %260 : vector<8x32xf32>
      %262 = math.tanh %261 : vector<8x32xf32>
      %cst_84 = arith.constant 1.000000e+00 : f32
      %263 = vector.broadcast %cst_84 : f32 to vector<8x32xf32>
      %264 = arith.subf %263, %256 : vector<8x32xf32>
      %265 = arith.mulf %264, %262 : vector<8x32xf32>
      %266 = arith.mulf %256, %232 : vector<8x32xf32>
      %267 = arith.addf %265, %266 : vector<8x32xf32>
      %c0_85 = arith.constant 0 : index
      %268 = arith.index_cast %c6_i32 : i32 to index
      %c0_86 = arith.constant 0 : index
      %c0_87 = arith.constant 0 : index
      %269 = vector.load %arg8[%c0_85, %268, %c0_86, %c0_87] : memref<1x8x8x32xf32, #tpu.memory_space<vmem>>, vector<1x1x8x32xf32>
      %270 = vector.shape_cast %269 : vector<1x1x8x32xf32> to vector<8x32xf32>
      %271 = vector.shape_cast %267 : vector<8x32xf32> to vector<1x1x8x32xf32>
      tpu.vector_store %arg8[%c0_85, %268, %c0_86, %c0_87], %271 {strides = array<i32>} : memref<1x8x8x32xf32, #tpu.memory_space<vmem>>, vector<1x1x8x32xf32>,
      %c7_i32 = arith.constant 7 : i32
      %272 = arith.index_cast %c7_i32 : i32 to index
      %c0_88 = arith.constant 0 : index
      %c0_89 = arith.constant 0 : index
      %273 = vector.load %arg10[%272, %c0_88, %c0_89] : memref<8x8x96xf32, #tpu.memory_space<vmem>>, vector<1x8x96xf32>
      %274 = vector.shape_cast %273 : vector<1x8x96xf32> to vector<8x96xf32>
      %cst_90 = arith.constant dense<0.000000e+00> : vector<8x96xf32>
      %275 = tpu.matmul %267, %15, %cst_90 {dimension_numbers = #tpu.dot_dimension_numbers<[1], [0], [0], [1], [0, 0, 1, 1], [], []>} : vector<8x32xf32>, vector<32x96xf32>, vector<8x96xf32> -> vector<8x96xf32>
      %276 = vector.extract_strided_slice %274 {offsets = [0, 0], sizes = [8, 32], strides = [1, 1]} : vector<8x96xf32> to vector<8x32xf32>
      %277 = vector.extract_strided_slice %275 {offsets = [0, 0], sizes = [8, 32], strides = [1, 1]} : vector<8x96xf32> to vector<8x32xf32>
      %278 = arith.addf %276, %277 : vector<8x32xf32>
      %279 = arith.negf %278 : vector<8x32xf32>
      %280 = math.exp %279 : vector<8x32xf32>
      %cst_91 = arith.constant 1.000000e+00 : f32
      %281 = vector.broadcast %cst_91 : f32 to vector<8x32xf32>
      %282 = arith.addf %281, %280 : vector<8x32xf32>
      %283 = arith.divf %281, %282 : vector<8x32xf32>
      %284 = vector.extract_strided_slice %274 {offsets = [0, 32], sizes = [8, 32], strides = [1, 1]} : vector<8x96xf32> to vector<8x32xf32>
      %285 = vector.extract_strided_slice %275 {offsets = [0, 32], sizes = [8, 32], strides = [1, 1]} : vector<8x96xf32> to vector<8x32xf32>
      %286 = arith.addf %284, %285 : vector<8x32xf32>
      %287 = arith.negf %286 : vector<8x32xf32>
      %288 = math.exp %287 : vector<8x32xf32>
      %cst_92 = arith.constant 1.000000e+00 : f32
      %289 = vector.broadcast %cst_92 : f32 to vector<8x32xf32>
      %290 = arith.addf %289, %288 : vector<8x32xf32>
      %291 = arith.divf %289, %290 : vector<8x32xf32>
      %292 = vector.extract_strided_slice %274 {offsets = [0, 64], sizes = [8, 32], strides = [1, 1]} : vector<8x96xf32> to vector<8x32xf32>
      %293 = vector.extract_strided_slice %275 {offsets = [0, 64], sizes = [8, 32], strides = [1, 1]} : vector<8x96xf32> to vector<8x32xf32>
      %294 = arith.addf %293, %19 : vector<8x32xf32>
      %295 = arith.mulf %283, %294 : vector<8x32xf32>
      %296 = arith.addf %292, %295 : vector<8x32xf32>
      %297 = math.tanh %296 : vector<8x32xf32>
      %cst_93 = arith.constant 1.000000e+00 : f32
      %298 = vector.broadcast %cst_93 : f32 to vector<8x32xf32>
      %299 = arith.subf %298, %291 : vector<8x32xf32>
      %300 = arith.mulf %299, %297 : vector<8x32xf32>
      %301 = arith.mulf %291, %267 : vector<8x32xf32>
      %302 = arith.addf %300, %301 : vector<8x32xf32>
      %c0_94 = arith.constant 0 : index
      %303 = arith.index_cast %c7_i32 : i32 to index
      %c0_95 = arith.constant 0 : index
      %c0_96 = arith.constant 0 : index
      %304 = vector.load %arg8[%c0_94, %303, %c0_95, %c0_96] : memref<1x8x8x32xf32, #tpu.memory_space<vmem>>, vector<1x1x8x32xf32>
      %305 = vector.shape_cast %304 : vector<1x1x8x32xf32> to vector<8x32xf32>
      %306 = vector.shape_cast %302 : vector<8x32xf32> to vector<1x1x8x32xf32>
      tpu.vector_store %arg8[%c0_94, %303, %c0_95, %c0_96], %306 {strides = array<i32>} : memref<1x8x8x32xf32, #tpu.memory_space<vmem>>, vector<1x1x8x32xf32>,
      %c8_i32 = arith.constant 8 : i32
      %c0_97 = arith.constant 0 : index
      %c0_98 = arith.constant 0 : index
      %307 = vector.load %arg9[%c0_97, %c0_98] : memref<8x32xf32, #tpu.memory_space<vmem>>, vector<8x32xf32>
      tpu.vector_store %arg9[%c0_97, %c0_98], %302 {strides = array<i32>} : memref<8x32xf32, #tpu.memory_space<vmem>>, vector<8x32xf32>,
    } else {
    }
    %c1_i32 = arith.constant 1 : i32
    %23 = arith.cmpi eq, %arg0, %c1_i32 : i32
    %24 = arith.extui %23 : i1 to i32
    %c0_i32_20 = arith.constant 0 : i32
    %25 = arith.cmpi ne, %24, %c0_i32_20 : i32
    scf.if %25 {
      %c0_21 = arith.constant 0 : index
      %c0_22 = arith.constant 0 : index
      %26 = vector.load %arg9[%c0_21, %c0_22] : memref<8x32xf32, #tpu.memory_space<vmem>>, vector<8x32xf32>
      %c0_i32_23 = arith.constant 0 : i32
      %c7_i32 = arith.constant 7 : i32
      %27 = arith.subi %c7_i32, %c0_i32_23 : i32
      %28 = arith.index_cast %27 : i32 to index
      %c0_24 = arith.constant 0 : index
      %c0_25 = arith.constant 0 : index
      %29 = vector.load %arg10[%28, %c0_24, %c0_25] : memref<8x8x96xf32, #tpu.memory_space<vmem>>, vector<1x8x96xf32>
      %30 = vector.shape_cast %29 : vector<1x8x96xf32> to vector<8x96xf32>
      %cst_26 = arith.constant dense<0.000000e+00> : vector<8x96xf32>
      %31 = tpu.matmul %26, %15, %cst_26 {dimension_numbers = #tpu.dot_dimension_numbers<[1], [0], [0], [1], [0, 0, 1, 1], [], []>} : vector<8x32xf32>, vector<32x96xf32>, vector<8x96xf32> -> vector<8x96xf32>
      %32 = vector.extract_strided_slice %30 {offsets = [0, 0], sizes = [8, 32], strides = [1, 1]} : vector<8x96xf32> to vector<8x32xf32>
      %33 = vector.extract_strided_slice %31 {offsets = [0, 0], sizes = [8, 32], strides = [1, 1]} : vector<8x96xf32> to vector<8x32xf32>
      %34 = arith.addf %32, %33 : vector<8x32xf32>
      %35 = arith.negf %34 : vector<8x32xf32>
      %36 = math.exp %35 : vector<8x32xf32>
      %cst_27 = arith.constant 1.000000e+00 : f32
      %37 = vector.broadcast %cst_27 : f32 to vector<8x32xf32>
      %38 = arith.addf %37, %36 : vector<8x32xf32>
      %39 = arith.divf %37, %38 : vector<8x32xf32>
      %40 = vector.extract_strided_slice %30 {offsets = [0, 32], sizes = [8, 32], strides = [1, 1]} : vector<8x96xf32> to vector<8x32xf32>
      %41 = vector.extract_strided_slice %31 {offsets = [0, 32], sizes = [8, 32], strides = [1, 1]} : vector<8x96xf32> to vector<8x32xf32>
      %42 = arith.addf %40, %41 : vector<8x32xf32>
      %43 = arith.negf %42 : vector<8x32xf32>
      %44 = math.exp %43 : vector<8x32xf32>
      %cst_28 = arith.constant 1.000000e+00 : f32
      %45 = vector.broadcast %cst_28 : f32 to vector<8x32xf32>
      %46 = arith.addf %45, %44 : vector<8x32xf32>
      %47 = arith.divf %45, %46 : vector<8x32xf32>
      %48 = vector.extract_strided_slice %30 {offsets = [0, 64], sizes = [8, 32], strides = [1, 1]} : vector<8x96xf32> to vector<8x32xf32>
      %49 = vector.extract_strided_slice %31 {offsets = [0, 64], sizes = [8, 32], strides = [1, 1]} : vector<8x96xf32> to vector<8x32xf32>
      %50 = arith.addf %49, %19 : vector<8x32xf32>
      %51 = arith.mulf %39, %50 : vector<8x32xf32>
      %52 = arith.addf %48, %51 : vector<8x32xf32>
      %53 = math.tanh %52 : vector<8x32xf32>
      %cst_29 = arith.constant 1.000000e+00 : f32
      %54 = vector.broadcast %cst_29 : f32 to vector<8x32xf32>
      %55 = arith.subf %54, %47 : vector<8x32xf32>
      %56 = arith.mulf %55, %53 : vector<8x32xf32>
      %57 = arith.mulf %47, %26 : vector<8x32xf32>
      %58 = arith.addf %56, %57 : vector<8x32xf32>
      %c0_30 = arith.constant 0 : index
      %59 = arith.index_cast %27 : i32 to index
      %c0_31 = arith.constant 0 : index
      %c0_32 = arith.constant 0 : index
      %60 = vector.load %arg8[%c0_30, %59, %c0_31, %c0_32] : memref<1x8x8x32xf32, #tpu.memory_space<vmem>>, vector<1x1x8x32xf32>
      %61 = vector.shape_cast %60 : vector<1x1x8x32xf32> to vector<8x32xf32>
      %62 = vector.shape_cast %58 : vector<8x32xf32> to vector<1x1x8x32xf32>
      tpu.vector_store %arg8[%c0_30, %59, %c0_31, %c0_32], %62 {strides = array<i32>} : memref<1x8x8x32xf32, #tpu.memory_space<vmem>>, vector<1x1x8x32xf32>,
      %c1_i32_33 = arith.constant 1 : i32
      %c7_i32_34 = arith.constant 7 : i32
      %63 = arith.subi %c7_i32_34, %c1_i32_33 : i32
      %64 = arith.index_cast %63 : i32 to index
      %c0_35 = arith.constant 0 : index
      %c0_36 = arith.constant 0 : index
      %65 = vector.load %arg10[%64, %c0_35, %c0_36] : memref<8x8x96xf32, #tpu.memory_space<vmem>>, vector<1x8x96xf32>
      %66 = vector.shape_cast %65 : vector<1x8x96xf32> to vector<8x96xf32>
      %cst_37 = arith.constant dense<0.000000e+00> : vector<8x96xf32>
      %67 = tpu.matmul %58, %15, %cst_37 {dimension_numbers = #tpu.dot_dimension_numbers<[1], [0], [0], [1], [0, 0, 1, 1], [], []>} : vector<8x32xf32>, vector<32x96xf32>, vector<8x96xf32> -> vector<8x96xf32>
      %68 = vector.extract_strided_slice %66 {offsets = [0, 0], sizes = [8, 32], strides = [1, 1]} : vector<8x96xf32> to vector<8x32xf32>
      %69 = vector.extract_strided_slice %67 {offsets = [0, 0], sizes = [8, 32], strides = [1, 1]} : vector<8x96xf32> to vector<8x32xf32>
      %70 = arith.addf %68, %69 : vector<8x32xf32>
      %71 = arith.negf %70 : vector<8x32xf32>
      %72 = math.exp %71 : vector<8x32xf32>
      %cst_38 = arith.constant 1.000000e+00 : f32
      %73 = vector.broadcast %cst_38 : f32 to vector<8x32xf32>
      %74 = arith.addf %73, %72 : vector<8x32xf32>
      %75 = arith.divf %73, %74 : vector<8x32xf32>
      %76 = vector.extract_strided_slice %66 {offsets = [0, 32], sizes = [8, 32], strides = [1, 1]} : vector<8x96xf32> to vector<8x32xf32>
      %77 = vector.extract_strided_slice %67 {offsets = [0, 32], sizes = [8, 32], strides = [1, 1]} : vector<8x96xf32> to vector<8x32xf32>
      %78 = arith.addf %76, %77 : vector<8x32xf32>
      %79 = arith.negf %78 : vector<8x32xf32>
      %80 = math.exp %79 : vector<8x32xf32>
      %cst_39 = arith.constant 1.000000e+00 : f32
      %81 = vector.broadcast %cst_39 : f32 to vector<8x32xf32>
      %82 = arith.addf %81, %80 : vector<8x32xf32>
      %83 = arith.divf %81, %82 : vector<8x32xf32>
      %84 = vector.extract_strided_slice %66 {offsets = [0, 64], sizes = [8, 32], strides = [1, 1]} : vector<8x96xf32> to vector<8x32xf32>
      %85 = vector.extract_strided_slice %67 {offsets = [0, 64], sizes = [8, 32], strides = [1, 1]} : vector<8x96xf32> to vector<8x32xf32>
      %86 = arith.addf %85, %19 : vector<8x32xf32>
      %87 = arith.mulf %75, %86 : vector<8x32xf32>
      %88 = arith.addf %84, %87 : vector<8x32xf32>
      %89 = math.tanh %88 : vector<8x32xf32>
      %cst_40 = arith.constant 1.000000e+00 : f32
      %90 = vector.broadcast %cst_40 : f32 to vector<8x32xf32>
      %91 = arith.subf %90, %83 : vector<8x32xf32>
      %92 = arith.mulf %91, %89 : vector<8x32xf32>
      %93 = arith.mulf %83, %58 : vector<8x32xf32>
      %94 = arith.addf %92, %93 : vector<8x32xf32>
      %c0_41 = arith.constant 0 : index
      %95 = arith.index_cast %63 : i32 to index
      %c0_42 = arith.constant 0 : index
      %c0_43 = arith.constant 0 : index
      %96 = vector.load %arg8[%c0_41, %95, %c0_42, %c0_43] : memref<1x8x8x32xf32, #tpu.memory_space<vmem>>, vector<1x1x8x32xf32>
      %97 = vector.shape_cast %96 : vector<1x1x8x32xf32> to vector<8x32xf32>
      %98 = vector.shape_cast %94 : vector<8x32xf32> to vector<1x1x8x32xf32>
      tpu.vector_store %arg8[%c0_41, %95, %c0_42, %c0_43], %98 {strides = array<i32>} : memref<1x8x8x32xf32, #tpu.memory_space<vmem>>, vector<1x1x8x32xf32>,
      %c2_i32 = arith.constant 2 : i32
      %c7_i32_44 = arith.constant 7 : i32
      %99 = arith.subi %c7_i32_44, %c2_i32 : i32
      %100 = arith.index_cast %99 : i32 to index
      %c0_45 = arith.constant 0 : index
      %c0_46 = arith.constant 0 : index
      %101 = vector.load %arg10[%100, %c0_45, %c0_46] : memref<8x8x96xf32, #tpu.memory_space<vmem>>, vector<1x8x96xf32>
      %102 = vector.shape_cast %101 : vector<1x8x96xf32> to vector<8x96xf32>
      %cst_47 = arith.constant dense<0.000000e+00> : vector<8x96xf32>
      %103 = tpu.matmul %94, %15, %cst_47 {dimension_numbers = #tpu.dot_dimension_numbers<[1], [0], [0], [1], [0, 0, 1, 1], [], []>} : vector<8x32xf32>, vector<32x96xf32>, vector<8x96xf32> -> vector<8x96xf32>
      %104 = vector.extract_strided_slice %102 {offsets = [0, 0], sizes = [8, 32], strides = [1, 1]} : vector<8x96xf32> to vector<8x32xf32>
      %105 = vector.extract_strided_slice %103 {offsets = [0, 0], sizes = [8, 32], strides = [1, 1]} : vector<8x96xf32> to vector<8x32xf32>
      %106 = arith.addf %104, %105 : vector<8x32xf32>
      %107 = arith.negf %106 : vector<8x32xf32>
      %108 = math.exp %107 : vector<8x32xf32>
      %cst_48 = arith.constant 1.000000e+00 : f32
      %109 = vector.broadcast %cst_48 : f32 to vector<8x32xf32>
      %110 = arith.addf %109, %108 : vector<8x32xf32>
      %111 = arith.divf %109, %110 : vector<8x32xf32>
      %112 = vector.extract_strided_slice %102 {offsets = [0, 32], sizes = [8, 32], strides = [1, 1]} : vector<8x96xf32> to vector<8x32xf32>
      %113 = vector.extract_strided_slice %103 {offsets = [0, 32], sizes = [8, 32], strides = [1, 1]} : vector<8x96xf32> to vector<8x32xf32>
      %114 = arith.addf %112, %113 : vector<8x32xf32>
      %115 = arith.negf %114 : vector<8x32xf32>
      %116 = math.exp %115 : vector<8x32xf32>
      %cst_49 = arith.constant 1.000000e+00 : f32
      %117 = vector.broadcast %cst_49 : f32 to vector<8x32xf32>
      %118 = arith.addf %117, %116 : vector<8x32xf32>
      %119 = arith.divf %117, %118 : vector<8x32xf32>
      %120 = vector.extract_strided_slice %102 {offsets = [0, 64], sizes = [8, 32], strides = [1, 1]} : vector<8x96xf32> to vector<8x32xf32>
      %121 = vector.extract_strided_slice %103 {offsets = [0, 64], sizes = [8, 32], strides = [1, 1]} : vector<8x96xf32> to vector<8x32xf32>
      %122 = arith.addf %121, %19 : vector<8x32xf32>
      %123 = arith.mulf %111, %122 : vector<8x32xf32>
      %124 = arith.addf %120, %123 : vector<8x32xf32>
      %125 = math.tanh %124 : vector<8x32xf32>
      %cst_50 = arith.constant 1.000000e+00 : f32
      %126 = vector.broadcast %cst_50 : f32 to vector<8x32xf32>
      %127 = arith.subf %126, %119 : vector<8x32xf32>
      %128 = arith.mulf %127, %125 : vector<8x32xf32>
      %129 = arith.mulf %119, %94 : vector<8x32xf32>
      %130 = arith.addf %128, %129 : vector<8x32xf32>
      %c0_51 = arith.constant 0 : index
      %131 = arith.index_cast %99 : i32 to index
      %c0_52 = arith.constant 0 : index
      %c0_53 = arith.constant 0 : index
      %132 = vector.load %arg8[%c0_51, %131, %c0_52, %c0_53] : memref<1x8x8x32xf32, #tpu.memory_space<vmem>>, vector<1x1x8x32xf32>
      %133 = vector.shape_cast %132 : vector<1x1x8x32xf32> to vector<8x32xf32>
      %134 = vector.shape_cast %130 : vector<8x32xf32> to vector<1x1x8x32xf32>
      tpu.vector_store %arg8[%c0_51, %131, %c0_52, %c0_53], %134 {strides = array<i32>} : memref<1x8x8x32xf32, #tpu.memory_space<vmem>>, vector<1x1x8x32xf32>,
      %c3_i32 = arith.constant 3 : i32
      %c7_i32_54 = arith.constant 7 : i32
      %135 = arith.subi %c7_i32_54, %c3_i32 : i32
      %136 = arith.index_cast %135 : i32 to index
      %c0_55 = arith.constant 0 : index
      %c0_56 = arith.constant 0 : index
      %137 = vector.load %arg10[%136, %c0_55, %c0_56] : memref<8x8x96xf32, #tpu.memory_space<vmem>>, vector<1x8x96xf32>
      %138 = vector.shape_cast %137 : vector<1x8x96xf32> to vector<8x96xf32>
      %cst_57 = arith.constant dense<0.000000e+00> : vector<8x96xf32>
      %139 = tpu.matmul %130, %15, %cst_57 {dimension_numbers = #tpu.dot_dimension_numbers<[1], [0], [0], [1], [0, 0, 1, 1], [], []>} : vector<8x32xf32>, vector<32x96xf32>, vector<8x96xf32> -> vector<8x96xf32>
      %140 = vector.extract_strided_slice %138 {offsets = [0, 0], sizes = [8, 32], strides = [1, 1]} : vector<8x96xf32> to vector<8x32xf32>
      %141 = vector.extract_strided_slice %139 {offsets = [0, 0], sizes = [8, 32], strides = [1, 1]} : vector<8x96xf32> to vector<8x32xf32>
      %142 = arith.addf %140, %141 : vector<8x32xf32>
      %143 = arith.negf %142 : vector<8x32xf32>
      %144 = math.exp %143 : vector<8x32xf32>
      %cst_58 = arith.constant 1.000000e+00 : f32
      %145 = vector.broadcast %cst_58 : f32 to vector<8x32xf32>
      %146 = arith.addf %145, %144 : vector<8x32xf32>
      %147 = arith.divf %145, %146 : vector<8x32xf32>
      %148 = vector.extract_strided_slice %138 {offsets = [0, 32], sizes = [8, 32], strides = [1, 1]} : vector<8x96xf32> to vector<8x32xf32>
      %149 = vector.extract_strided_slice %139 {offsets = [0, 32], sizes = [8, 32], strides = [1, 1]} : vector<8x96xf32> to vector<8x32xf32>
      %150 = arith.addf %148, %149 : vector<8x32xf32>
      %151 = arith.negf %150 : vector<8x32xf32>
      %152 = math.exp %151 : vector<8x32xf32>
      %cst_59 = arith.constant 1.000000e+00 : f32
      %153 = vector.broadcast %cst_59 : f32 to vector<8x32xf32>
      %154 = arith.addf %153, %152 : vector<8x32xf32>
      %155 = arith.divf %153, %154 : vector<8x32xf32>
      %156 = vector.extract_strided_slice %138 {offsets = [0, 64], sizes = [8, 32], strides = [1, 1]} : vector<8x96xf32> to vector<8x32xf32>
      %157 = vector.extract_strided_slice %139 {offsets = [0, 64], sizes = [8, 32], strides = [1, 1]} : vector<8x96xf32> to vector<8x32xf32>
      %158 = arith.addf %157, %19 : vector<8x32xf32>
      %159 = arith.mulf %147, %158 : vector<8x32xf32>
      %160 = arith.addf %156, %159 : vector<8x32xf32>
      %161 = math.tanh %160 : vector<8x32xf32>
      %cst_60 = arith.constant 1.000000e+00 : f32
      %162 = vector.broadcast %cst_60 : f32 to vector<8x32xf32>
      %163 = arith.subf %162, %155 : vector<8x32xf32>
      %164 = arith.mulf %163, %161 : vector<8x32xf32>
      %165 = arith.mulf %155, %130 : vector<8x32xf32>
      %166 = arith.addf %164, %165 : vector<8x32xf32>
      %c0_61 = arith.constant 0 : index
      %167 = arith.index_cast %135 : i32 to index
      %c0_62 = arith.constant 0 : index
      %c0_63 = arith.constant 0 : index
      %168 = vector.load %arg8[%c0_61, %167, %c0_62, %c0_63] : memref<1x8x8x32xf32, #tpu.memory_space<vmem>>, vector<1x1x8x32xf32>
      %169 = vector.shape_cast %168 : vector<1x1x8x32xf32> to vector<8x32xf32>
      %170 = vector.shape_cast %166 : vector<8x32xf32> to vector<1x1x8x32xf32>
      tpu.vector_store %arg8[%c0_61, %167, %c0_62, %c0_63], %170 {strides = array<i32>} : memref<1x8x8x32xf32, #tpu.memory_space<vmem>>, vector<1x1x8x32xf32>,
      %c4_i32 = arith.constant 4 : i32
      %c7_i32_64 = arith.constant 7 : i32
      %171 = arith.subi %c7_i32_64, %c4_i32 : i32
      %172 = arith.index_cast %171 : i32 to index
      %c0_65 = arith.constant 0 : index
      %c0_66 = arith.constant 0 : index
      %173 = vector.load %arg10[%172, %c0_65, %c0_66] : memref<8x8x96xf32, #tpu.memory_space<vmem>>, vector<1x8x96xf32>
      %174 = vector.shape_cast %173 : vector<1x8x96xf32> to vector<8x96xf32>
      %cst_67 = arith.constant dense<0.000000e+00> : vector<8x96xf32>
      %175 = tpu.matmul %166, %15, %cst_67 {dimension_numbers = #tpu.dot_dimension_numbers<[1], [0], [0], [1], [0, 0, 1, 1], [], []>} : vector<8x32xf32>, vector<32x96xf32>, vector<8x96xf32> -> vector<8x96xf32>
      %176 = vector.extract_strided_slice %174 {offsets = [0, 0], sizes = [8, 32], strides = [1, 1]} : vector<8x96xf32> to vector<8x32xf32>
      %177 = vector.extract_strided_slice %175 {offsets = [0, 0], sizes = [8, 32], strides = [1, 1]} : vector<8x96xf32> to vector<8x32xf32>
      %178 = arith.addf %176, %177 : vector<8x32xf32>
      %179 = arith.negf %178 : vector<8x32xf32>
      %180 = math.exp %179 : vector<8x32xf32>
      %cst_68 = arith.constant 1.000000e+00 : f32
      %181 = vector.broadcast %cst_68 : f32 to vector<8x32xf32>
      %182 = arith.addf %181, %180 : vector<8x32xf32>
      %183 = arith.divf %181, %182 : vector<8x32xf32>
      %184 = vector.extract_strided_slice %174 {offsets = [0, 32], sizes = [8, 32], strides = [1, 1]} : vector<8x96xf32> to vector<8x32xf32>
      %185 = vector.extract_strided_slice %175 {offsets = [0, 32], sizes = [8, 32], strides = [1, 1]} : vector<8x96xf32> to vector<8x32xf32>
      %186 = arith.addf %184, %185 : vector<8x32xf32>
      %187 = arith.negf %186 : vector<8x32xf32>
      %188 = math.exp %187 : vector<8x32xf32>
      %cst_69 = arith.constant 1.000000e+00 : f32
      %189 = vector.broadcast %cst_69 : f32 to vector<8x32xf32>
      %190 = arith.addf %189, %188 : vector<8x32xf32>
      %191 = arith.divf %189, %190 : vector<8x32xf32>
      %192 = vector.extract_strided_slice %174 {offsets = [0, 64], sizes = [8, 32], strides = [1, 1]} : vector<8x96xf32> to vector<8x32xf32>
      %193 = vector.extract_strided_slice %175 {offsets = [0, 64], sizes = [8, 32], strides = [1, 1]} : vector<8x96xf32> to vector<8x32xf32>
      %194 = arith.addf %193, %19 : vector<8x32xf32>
      %195 = arith.mulf %183, %194 : vector<8x32xf32>
      %196 = arith.addf %192, %195 : vector<8x32xf32>
      %197 = math.tanh %196 : vector<8x32xf32>
      %cst_70 = arith.constant 1.000000e+00 : f32
      %198 = vector.broadcast %cst_70 : f32 to vector<8x32xf32>
      %199 = arith.subf %198, %191 : vector<8x32xf32>
      %200 = arith.mulf %199, %197 : vector<8x32xf32>
      %201 = arith.mulf %191, %166 : vector<8x32xf32>
      %202 = arith.addf %200, %201 : vector<8x32xf32>
      %c0_71 = arith.constant 0 : index
      %203 = arith.index_cast %171 : i32 to index
      %c0_72 = arith.constant 0 : index
      %c0_73 = arith.constant 0 : index
      %204 = vector.load %arg8[%c0_71, %203, %c0_72, %c0_73] : memref<1x8x8x32xf32, #tpu.memory_space<vmem>>, vector<1x1x8x32xf32>
      %205 = vector.shape_cast %204 : vector<1x1x8x32xf32> to vector<8x32xf32>
      %206 = vector.shape_cast %202 : vector<8x32xf32> to vector<1x1x8x32xf32>
      tpu.vector_store %arg8[%c0_71, %203, %c0_72, %c0_73], %206 {strides = array<i32>} : memref<1x8x8x32xf32, #tpu.memory_space<vmem>>, vector<1x1x8x32xf32>,
      %c5_i32 = arith.constant 5 : i32
      %c7_i32_74 = arith.constant 7 : i32
      %207 = arith.subi %c7_i32_74, %c5_i32 : i32
      %208 = arith.index_cast %207 : i32 to index
      %c0_75 = arith.constant 0 : index
      %c0_76 = arith.constant 0 : index
      %209 = vector.load %arg10[%208, %c0_75, %c0_76] : memref<8x8x96xf32, #tpu.memory_space<vmem>>, vector<1x8x96xf32>
      %210 = vector.shape_cast %209 : vector<1x8x96xf32> to vector<8x96xf32>
      %cst_77 = arith.constant dense<0.000000e+00> : vector<8x96xf32>
      %211 = tpu.matmul %202, %15, %cst_77 {dimension_numbers = #tpu.dot_dimension_numbers<[1], [0], [0], [1], [0, 0, 1, 1], [], []>} : vector<8x32xf32>, vector<32x96xf32>, vector<8x96xf32> -> vector<8x96xf32>
      %212 = vector.extract_strided_slice %210 {offsets = [0, 0], sizes = [8, 32], strides = [1, 1]} : vector<8x96xf32> to vector<8x32xf32>
      %213 = vector.extract_strided_slice %211 {offsets = [0, 0], sizes = [8, 32], strides = [1, 1]} : vector<8x96xf32> to vector<8x32xf32>
      %214 = arith.addf %212, %213 : vector<8x32xf32>
      %215 = arith.negf %214 : vector<8x32xf32>
      %216 = math.exp %215 : vector<8x32xf32>
      %cst_78 = arith.constant 1.000000e+00 : f32
      %217 = vector.broadcast %cst_78 : f32 to vector<8x32xf32>
      %218 = arith.addf %217, %216 : vector<8x32xf32>
      %219 = arith.divf %217, %218 : vector<8x32xf32>
      %220 = vector.extract_strided_slice %210 {offsets = [0, 32], sizes = [8, 32], strides = [1, 1]} : vector<8x96xf32> to vector<8x32xf32>
      %221 = vector.extract_strided_slice %211 {offsets = [0, 32], sizes = [8, 32], strides = [1, 1]} : vector<8x96xf32> to vector<8x32xf32>
      %222 = arith.addf %220, %221 : vector<8x32xf32>
      %223 = arith.negf %222 : vector<8x32xf32>
      %224 = math.exp %223 : vector<8x32xf32>
      %cst_79 = arith.constant 1.000000e+00 : f32
      %225 = vector.broadcast %cst_79 : f32 to vector<8x32xf32>
      %226 = arith.addf %225, %224 : vector<8x32xf32>
      %227 = arith.divf %225, %226 : vector<8x32xf32>
      %228 = vector.extract_strided_slice %210 {offsets = [0, 64], sizes = [8, 32], strides = [1, 1]} : vector<8x96xf32> to vector<8x32xf32>
      %229 = vector.extract_strided_slice %211 {offsets = [0, 64], sizes = [8, 32], strides = [1, 1]} : vector<8x96xf32> to vector<8x32xf32>
      %230 = arith.addf %229, %19 : vector<8x32xf32>
      %231 = arith.mulf %219, %230 : vector<8x32xf32>
      %232 = arith.addf %228, %231 : vector<8x32xf32>
      %233 = math.tanh %232 : vector<8x32xf32>
      %cst_80 = arith.constant 1.000000e+00 : f32
      %234 = vector.broadcast %cst_80 : f32 to vector<8x32xf32>
      %235 = arith.subf %234, %227 : vector<8x32xf32>
      %236 = arith.mulf %235, %233 : vector<8x32xf32>
      %237 = arith.mulf %227, %202 : vector<8x32xf32>
      %238 = arith.addf %236, %237 : vector<8x32xf32>
      %c0_81 = arith.constant 0 : index
      %239 = arith.index_cast %207 : i32 to index
      %c0_82 = arith.constant 0 : index
      %c0_83 = arith.constant 0 : index
      %240 = vector.load %arg8[%c0_81, %239, %c0_82, %c0_83] : memref<1x8x8x32xf32, #tpu.memory_space<vmem>>, vector<1x1x8x32xf32>
      %241 = vector.shape_cast %240 : vector<1x1x8x32xf32> to vector<8x32xf32>
      %242 = vector.shape_cast %238 : vector<8x32xf32> to vector<1x1x8x32xf32>
      tpu.vector_store %arg8[%c0_81, %239, %c0_82, %c0_83], %242 {strides = array<i32>} : memref<1x8x8x32xf32, #tpu.memory_space<vmem>>, vector<1x1x8x32xf32>,
      %c6_i32 = arith.constant 6 : i32
      %c7_i32_84 = arith.constant 7 : i32
      %243 = arith.subi %c7_i32_84, %c6_i32 : i32
      %244 = arith.index_cast %243 : i32 to index
      %c0_85 = arith.constant 0 : index
      %c0_86 = arith.constant 0 : index
      %245 = vector.load %arg10[%244, %c0_85, %c0_86] : memref<8x8x96xf32, #tpu.memory_space<vmem>>, vector<1x8x96xf32>
      %246 = vector.shape_cast %245 : vector<1x8x96xf32> to vector<8x96xf32>
      %cst_87 = arith.constant dense<0.000000e+00> : vector<8x96xf32>
      %247 = tpu.matmul %238, %15, %cst_87 {dimension_numbers = #tpu.dot_dimension_numbers<[1], [0], [0], [1], [0, 0, 1, 1], [], []>} : vector<8x32xf32>, vector<32x96xf32>, vector<8x96xf32> -> vector<8x96xf32>
      %248 = vector.extract_strided_slice %246 {offsets = [0, 0], sizes = [8, 32], strides = [1, 1]} : vector<8x96xf32> to vector<8x32xf32>
      %249 = vector.extract_strided_slice %247 {offsets = [0, 0], sizes = [8, 32], strides = [1, 1]} : vector<8x96xf32> to vector<8x32xf32>
      %250 = arith.addf %248, %249 : vector<8x32xf32>
      %251 = arith.negf %250 : vector<8x32xf32>
      %252 = math.exp %251 : vector<8x32xf32>
      %cst_88 = arith.constant 1.000000e+00 : f32
      %253 = vector.broadcast %cst_88 : f32 to vector<8x32xf32>
      %254 = arith.addf %253, %252 : vector<8x32xf32>
      %255 = arith.divf %253, %254 : vector<8x32xf32>
      %256 = vector.extract_strided_slice %246 {offsets = [0, 32], sizes = [8, 32], strides = [1, 1]} : vector<8x96xf32> to vector<8x32xf32>
      %257 = vector.extract_strided_slice %247 {offsets = [0, 32], sizes = [8, 32], strides = [1, 1]} : vector<8x96xf32> to vector<8x32xf32>
      %258 = arith.addf %256, %257 : vector<8x32xf32>
      %259 = arith.negf %258 : vector<8x32xf32>
      %260 = math.exp %259 : vector<8x32xf32>
      %cst_89 = arith.constant 1.000000e+00 : f32
      %261 = vector.broadcast %cst_89 : f32 to vector<8x32xf32>
      %262 = arith.addf %261, %260 : vector<8x32xf32>
      %263 = arith.divf %261, %262 : vector<8x32xf32>
      %264 = vector.extract_strided_slice %246 {offsets = [0, 64], sizes = [8, 32], strides = [1, 1]} : vector<8x96xf32> to vector<8x32xf32>
      %265 = vector.extract_strided_slice %247 {offsets = [0, 64], sizes = [8, 32], strides = [1, 1]} : vector<8x96xf32> to vector<8x32xf32>
      %266 = arith.addf %265, %19 : vector<8x32xf32>
      %267 = arith.mulf %255, %266 : vector<8x32xf32>
      %268 = arith.addf %264, %267 : vector<8x32xf32>
      %269 = math.tanh %268 : vector<8x32xf32>
      %cst_90 = arith.constant 1.000000e+00 : f32
      %270 = vector.broadcast %cst_90 : f32 to vector<8x32xf32>
      %271 = arith.subf %270, %263 : vector<8x32xf32>
      %272 = arith.mulf %271, %269 : vector<8x32xf32>
      %273 = arith.mulf %263, %238 : vector<8x32xf32>
      %274 = arith.addf %272, %273 : vector<8x32xf32>
      %c0_91 = arith.constant 0 : index
      %275 = arith.index_cast %243 : i32 to index
      %c0_92 = arith.constant 0 : index
      %c0_93 = arith.constant 0 : index
      %276 = vector.load %arg8[%c0_91, %275, %c0_92, %c0_93] : memref<1x8x8x32xf32, #tpu.memory_space<vmem>>, vector<1x1x8x32xf32>
      %277 = vector.shape_cast %276 : vector<1x1x8x32xf32> to vector<8x32xf32>
      %278 = vector.shape_cast %274 : vector<8x32xf32> to vector<1x1x8x32xf32>
      tpu.vector_store %arg8[%c0_91, %275, %c0_92, %c0_93], %278 {strides = array<i32>} : memref<1x8x8x32xf32, #tpu.memory_space<vmem>>, vector<1x1x8x32xf32>,
      %c7_i32_94 = arith.constant 7 : i32
      %c7_i32_95 = arith.constant 7 : i32
      %279 = arith.subi %c7_i32_95, %c7_i32_94 : i32
      %280 = arith.index_cast %279 : i32 to index
      %c0_96 = arith.constant 0 : index
      %c0_97 = arith.constant 0 : index
      %281 = vector.load %arg10[%280, %c0_96, %c0_97] : memref<8x8x96xf32, #tpu.memory_space<vmem>>, vector<1x8x96xf32>
      %282 = vector.shape_cast %281 : vector<1x8x96xf32> to vector<8x96xf32>
      %cst_98 = arith.constant dense<0.000000e+00> : vector<8x96xf32>
      %283 = tpu.matmul %274, %15, %cst_98 {dimension_numbers = #tpu.dot_dimension_numbers<[1], [0], [0], [1], [0, 0, 1, 1], [], []>} : vector<8x32xf32>, vector<32x96xf32>, vector<8x96xf32> -> vector<8x96xf32>
      %284 = vector.extract_strided_slice %282 {offsets = [0, 0], sizes = [8, 32], strides = [1, 1]} : vector<8x96xf32> to vector<8x32xf32>
      %285 = vector.extract_strided_slice %283 {offsets = [0, 0], sizes = [8, 32], strides = [1, 1]} : vector<8x96xf32> to vector<8x32xf32>
      %286 = arith.addf %284, %285 : vector<8x32xf32>
      %287 = arith.negf %286 : vector<8x32xf32>
      %288 = math.exp %287 : vector<8x32xf32>
      %cst_99 = arith.constant 1.000000e+00 : f32
      %289 = vector.broadcast %cst_99 : f32 to vector<8x32xf32>
      %290 = arith.addf %289, %288 : vector<8x32xf32>
      %291 = arith.divf %289, %290 : vector<8x32xf32>
      %292 = vector.extract_strided_slice %282 {offsets = [0, 32], sizes = [8, 32], strides = [1, 1]} : vector<8x96xf32> to vector<8x32xf32>
      %293 = vector.extract_strided_slice %283 {offsets = [0, 32], sizes = [8, 32], strides = [1, 1]} : vector<8x96xf32> to vector<8x32xf32>
      %294 = arith.addf %292, %293 : vector<8x32xf32>
      %295 = arith.negf %294 : vector<8x32xf32>
      %296 = math.exp %295 : vector<8x32xf32>
      %cst_100 = arith.constant 1.000000e+00 : f32
      %297 = vector.broadcast %cst_100 : f32 to vector<8x32xf32>
      %298 = arith.addf %297, %296 : vector<8x32xf32>
      %299 = arith.divf %297, %298 : vector<8x32xf32>
      %300 = vector.extract_strided_slice %282 {offsets = [0, 64], sizes = [8, 32], strides = [1, 1]} : vector<8x96xf32> to vector<8x32xf32>
      %301 = vector.extract_strided_slice %283 {offsets = [0, 64], sizes = [8, 32], strides = [1, 1]} : vector<8x96xf32> to vector<8x32xf32>
      %302 = arith.addf %301, %19 : vector<8x32xf32>
      %303 = arith.mulf %291, %302 : vector<8x32xf32>
      %304 = arith.addf %300, %303 : vector<8x32xf32>
      %305 = math.tanh %304 : vector<8x32xf32>
      %cst_101 = arith.constant 1.000000e+00 : f32
      %306 = vector.broadcast %cst_101 : f32 to vector<8x32xf32>
      %307 = arith.subf %306, %299 : vector<8x32xf32>
      %308 = arith.mulf %307, %305 : vector<8x32xf32>
      %309 = arith.mulf %299, %274 : vector<8x32xf32>
      %310 = arith.addf %308, %309 : vector<8x32xf32>
      %c0_102 = arith.constant 0 : index
      %311 = arith.index_cast %279 : i32 to index
      %c0_103 = arith.constant 0 : index
      %c0_104 = arith.constant 0 : index
      %312 = vector.load %arg8[%c0_102, %311, %c0_103, %c0_104] : memref<1x8x8x32xf32, #tpu.memory_space<vmem>>, vector<1x1x8x32xf32>
      %313 = vector.shape_cast %312 : vector<1x1x8x32xf32> to vector<8x32xf32>
      %314 = vector.shape_cast %310 : vector<8x32xf32> to vector<1x1x8x32xf32>
      tpu.vector_store %arg8[%c0_102, %311, %c0_103, %c0_104], %314 {strides = array<i32>} : memref<1x8x8x32xf32, #tpu.memory_space<vmem>>, vector<1x1x8x32xf32>,
      %c8_i32 = arith.constant 8 : i32
      %c0_105 = arith.constant 0 : index
      %c0_106 = arith.constant 0 : index
      %315 = vector.load %arg9[%c0_105, %c0_106] : memref<8x32xf32, #tpu.memory_space<vmem>>, vector<8x32xf32>
      tpu.vector_store %arg9[%c0_105, %c0_106], %310 {strides = array<i32>} : memref<8x32xf32, #tpu.memory_space<vmem>>, vector<8x32xf32>,
    } else {
    }
    return
  }
  func.func @transform_0(%arg0: i32, %arg1: i32) -> (i32, i32, i32) {
    %c0_i32 = arith.constant 0 : i32
    %c0_i32_0 = arith.constant 0 : i32
    %c0_i32_1 = arith.constant 0 : i32
    return %arg0, %c0_i32, %c0_i32_0 : i32, i32, i32
  }
  func.func @transform_1(%arg0: i32, %arg1: i32) -> (i32, i32, i32) {
    %c2_i32 = arith.constant 2 : i32
    %0 = arith.muli %c2_i32, %arg1 : i32
    %c0_i32 = arith.constant 0 : i32
    %1 = arith.subi %c0_i32, %0 : i32
    %2 = arith.muli %arg0, %1 : i32
    %3 = arith.addi %arg1, %2 : i32
    %c0_i32_0 = arith.constant 0 : i32
    %c0_i32_1 = arith.constant 0 : i32
    %c0_i32_2 = arith.constant 0 : i32
    return %3, %c0_i32_0, %c0_i32_1 : i32, i32, i32
  }
  func.func @transform_2(%arg0: i32, %arg1: i32) -> (i32, i32, i32) {
    %c0_i32 = arith.constant 0 : i32
    %c0_i32_0 = arith.constant 0 : i32
    %c0_i32_1 = arith.constant 0 : i32
    return %arg0, %c0_i32, %c0_i32_0 : i32, i32, i32
  }
  func.func @transform_3(%arg0: i32, %arg1: i32) -> (i32, i32, i32) {
    %c0_i32 = arith.constant 0 : i32
    %c0_i32_0 = arith.constant 0 : i32
    %c0_i32_1 = arith.constant 0 : i32
    return %arg0, %c0_i32, %c0_i32_0 : i32, i32, i32
  }
  func.func @transform_4(%arg0: i32, %arg1: i32) -> (i32, i32, i32) {
    %c0_i32 = arith.constant 0 : i32
    %c0_i32_0 = arith.constant 0 : i32
    %c0_i32_1 = arith.constant 0 : i32
    return %arg0, %c0_i32, %c0_i32_0 : i32, i32, i32
  }
  func.func @transform_5(%arg0: i32, %arg1: i32) -> (i32, i32, i32) {
    %c0_i32 = arith.constant 0 : i32
    %c0_i32_0 = arith.constant 0 : i32
    %c0_i32_1 = arith.constant 0 : i32
    return %arg0, %c0_i32, %c0_i32_0 : i32, i32, i32
  }
  func.func @transform_6(%arg0: i32, %arg1: i32) -> (i32, i32, i32, i32) {
    %c2_i32 = arith.constant 2 : i32
    %0 = arith.muli %c2_i32, %arg1 : i32
    %c0_i32 = arith.constant 0 : i32
    %1 = arith.subi %c0_i32, %0 : i32
    %2 = arith.muli %arg0, %1 : i32
    %3 = arith.addi %arg1, %2 : i32
    %c0_i32_0 = arith.constant 0 : i32
    %c0_i32_1 = arith.constant 0 : i32
    %c0_i32_2 = arith.constant 0 : i32
    return %arg0, %3, %c0_i32_0, %c0_i32_1 : i32, i32, i32, i32
  }
}

</mosaic_0001>

<bundles_post_ra>
// kernel: forward.3
= control target key start
LH: loop header
LB: loop body
LE: loop exit
PB: predicated region body
PF: predicated region fallthrough
CT: control target
= control target key end

     0   :  { %vm73_vm0 = vcmask 261120   ;;  %vm382_vm1 = vcmask 523264   ;;  %vm450_vm2 = vcmask 1041409   ;;  %vm452_vm3 = vcmask 1042434   ;;  %s991_s3 = inlined_call_operand.vmem [shape: f32[32,64], index: 3, kind: input, shape index: {}]   ;;  %s992_s2 = inlined_call_operand.vmem [shape: f32[32,64], index: 2, kind: input, shape index: {}]   ;;  %s993_s1 = inlined_call_operand.vmem [shape: f32[2,8,8,32], index: 1, kind: input, shape index: {}, may-alias: {0,1}]   ;;  %s994_s0 = inlined_call_operand.vmem [shape: f32[2,8,8,32], index: 0, kind: input, shape index: {}, may-alias: {0,1}]   ;;  %s995_s4 = inlined_call_operand.vmem [shape: f32[1,64], index: 4, kind: input, shape index: {}]   ;;  %s996_s5 = inlined_call_operand.vmem [shape: f32[1,8,32], index: 5, kind: output, shape index: {0}]   ;;  %s997_s6 = inlined_call_operand.vmem [shape: f32[1,8,32], index: 6, kind: output, shape index: {1}]  }
   0x1   :  { %v96_v0 = vld [vmem:[%s991_s3] sm:$0xff]  ;;  %v97_v1 = vld [vmem:[%s991_s3 + $0x8] sm:$0xff]  ;;  %v98_v5 = vld [vmem:[%s991_s3 + $0x10] sm:$0xff]  ;;  %vm454_vm4 = vcmask 1043459   ;;  %vm456_vm5 = vcmask 1044484   ;;  %vm458_vm6 = vcmask 1045509  }
   0x2   :  { %v92_v2 = vld [vmem:[%s992_s2] sm:$0xff]  ;;  %v698_v3 = vpack.c.bf16 %v97_v1, %v96_v0  ;;  %v93_v4 = vld [vmem:[%s992_s2 + $0x8] sm:$0xff]  ;;  %v99_v6 = vld [vmem:[%s991_s3 + $0x18] sm:$0xff]  ;;  %vm460_vm7 = vcmask 1046534   ;;  %vm462_vm8 = vcmask 1047559   ;;  %vm466_vm10 = vcmask 64512  }
   0x3   :  { %v706_v7 = vpack.c.bf16 %v93_v4, %v92_v2  ;;  %v702_v8 = vpack.c.bf16 %v99_v6, %v98_v5  ;;  %v94_v9 = vld [vmem:[%s992_s2 + $0x10] sm:$0xff]  ;;  %v95_v10 = vld [vmem:[%s992_s2 + $0x18] sm:$0xff]  ;;  %v806_v11 = vld [vmem:[%s993_s1 + $0x40] sm:$0xff] }
   0x4   :  { %699 = vmatprep.subr.bf16.mxu1 %v698_v3  ;;  %v710_v12 = vpack.c.bf16 %v95_v10, %v94_v9  ;;  %666 = vmatprep.mubr.msk.f32.mxu1 %vm73_vm0, %v806_v11  ;;  %v813_v13 = vld [vmem:[%s994_s0] sm:$0xff]  ;;  %v820_v14 = vld [vmem:[%s993_s1 + $0x48] sm:$0xff]  ;;  %v830_v16 = vld [vmem:[%s993_s1 + $0x50] sm:$0xff] }
   0x5   :  { %707 = vmatprep.subr.bf16.mxu0 %v706_v7  ;;  %701 = vmatpush3.bf16.msra.mxu1 %v698_v3  ;;  %v825_v15 = vld [vmem:[%s994_s0 + $0x8] sm:$0xff]  ;;  %v835_v17 = vld [vmem:[%s994_s0 + $0x10] sm:$0xff]  ;;  %v846_v18 = vld [vmem:[%s993_s1 + $0x58] sm:$0xff] }
   0x6   :  { %709 = vmatpush3.bf16.msra.mxu0 %v706_v7  ;;  %703 = vmatprep.subr.bf16.mxu1 %v702_v8  ;;  %v853_v19 = vld [vmem:[%s994_s0 + $0x18] sm:$0xff]  ;;  %v858_v20 = vld [vmem:[%s993_s1 + $0x60] sm:$0xff]  ;;  %v874_v22 = vld [vmem:[%s993_s1 + $0x68] sm:$0xff] }
   0x7   :  { %711 = vmatprep.subr.bf16.mxu0 %v710_v12  ;;  %686 = vmatprep.mubr.msk.f32.mxu0 %vm73_vm0, %v813_v13  ;;  %v863_v21 = vld [vmem:[%s994_s0 + $0x20] sm:$0xff]  ;;  %v881_v23 = vld [vmem:[%s994_s0 + $0x28] sm:$0xff]  ;;  %v886_v24 = vld [vmem:[%s993_s1 + $0x70] sm:$0xff] }
   0x8   :  { %v891_v25 = vld [vmem:[%s994_s0 + $0x30] sm:$0xff]  ;;  %v902_v26 = vld [vmem:[%s993_s1 + $0x78] sm:$0xff]  ;;  %v633_v47 = vld [vmem:[%s995_s4] ss:$0 sm:$0xff] }
   0x9   :  { %705 = vmatpush3.bf16.msra.mxu1 %v702_v8  ;;  %v909_v27 = vld [vmem:[%s994_s0 + $0x38] sm:$0xff] }
   0xa   :  { %713 = vmatpush3.bf16.msra.mxu0 %v710_v12 }
   0xc   :  { %667 = vmatmul.mubr.msk.f32.vlgmr.msra.gmra.mrb[0].mxu1 %vm73_vm0, %v820_v14 }
   0xd   :  { %687 = vmatmul.mubr.msk.f32.vlgmr.msra.gmra.mrb[0].mxu0 %vm73_vm0, %v825_v15  ;;  %669 = vmatprep.mubr.msk.f32.mxu1 %vm73_vm0, %v830_v16 }
   0xe   :  { %689 = vmatprep.mubr.msk.f32.mxu0 %vm73_vm0, %v835_v17 }
  0x10   :  { %670 = vmatmul.mubr.msk.f32.gmra.mrb[2].mxu1 %vm73_vm0, %v846_v18 }
  0x11   :  { %690 = vmatmul.mubr.msk.f32.gmra.mrb[2].mxu0 %vm73_vm0, %v853_v19  ;;  %672 = vmatprep.mubr.msk.f32.mxu1 %vm73_vm0, %v858_v20 }
  0x12   :  { %692 = vmatprep.mubr.msk.f32.mxu0 %vm73_vm0, %v863_v21 }
  0x14   :  { %673 = vmatmul.mubr.msk.f32.gmra.mrb[4].mxu1 %vm73_vm0, %v874_v22 }
  0x15   :  { %693 = vmatmul.mubr.msk.f32.gmra.mrb[4].mxu0 %vm73_vm0, %v881_v23  ;;  %675 = vmatprep.mubr.msk.f32.mxu1 %vm73_vm0, %v886_v24 }
  0x16   :  { %695 = vmatprep.mubr.msk.f32.mxu0 %vm73_vm0, %v891_v25 }
  0x18   :  { %676 = vmatmul.mubr.msk.f32.gmra.mrb[6].mxu1 %vm73_vm0, %v902_v26 }
  0x19   :  { %696 = vmatmul.mubr.msk.f32.gmra.mrb[6].mxu0 %vm73_vm0, %v909_v27 }
  0xdf   :  { %v668_v28 = vpop.f32.mrb[0].mxu1 }
  0xe0   :  { %v688_v29 = vpop.f32.mrb[0].mxu0  ;;  %v191_v30 = vpop.f32.mrb[1].mxu1 }
  0xe1   :  { %v326_v31 = vadd.f32 %v688_v29, %v668_v28  ;;  %v320_v32 = vpop.f32.mrb[1].mxu0  ;;  %v407_v29 = vlaneseq }
  0xe2   :  { %v321_v33 = vadd.f32 %v320_v32, %v191_v30 }
  0xe3   :  { %723 = vtanh.f32 %v326_v31  ;;  %v671_v34 = vpop.f32.mrb[2].mxu1  ;;  %v408_v30 = vand.u32 127, %v407_v29  ;;  %v926_v31 = vshrl.u32 %v407_v29, 7 }
  0xe4   :  { %725 = vtanh.f32 %v321_v33  ;;  %v691_v35 = vpop.f32.mrb[2].mxu0  ;;  %v201_v36 = vpop.f32.mrb[3].mxu1 }
  0xe5   :  { %v336_v37 = vadd.f32 %v691_v35, %v671_v34  ;;  %v330_v38 = vpop.f32.mrb[3].mxu0  ;;  %v420_v33 = vsub.s32 %v408_v30, %v926_v31  ;;  %vm409_vm9 = vcmp.lt.s32.totalorder %v408_v30, 2 }
  0xe6   :  { %v331_v39 = vadd.f32 %v330_v38, %v201_v36 }
  0xe7   :  { %727 = vtanh.f32 %v336_v37  ;;  %v674_v40 = vpop.f32.mrb[4].mxu1 }
  0xe8   :  { %729 = vtanh.f32 %v331_v39  ;;  %v694_v41 = vpop.f32.mrb[4].mxu0  ;;  %v211_v42 = vpop.f32.mrb[5].mxu1 }
  0xe9   :  { %v346_v43 = vadd.f32 %v694_v41, %v674_v40  ;;  %v340_v44 = vpop.f32.mrb[5].mxu0 }
  0xea   :  { %v341_v45 = vadd.f32 %v340_v44, %v211_v42 }
  0xeb   :  { %731 = vtanh.f32 %v346_v43  ;;  %v677_v46 = vpop.f32.mrb[6].mxu1 }
  0xec   :  { %733 = vtanh.f32 %v341_v45  ;;  %v697_v48 = vpop.f32.mrb[6].mxu0  ;;  %v221_v49 = vpop.f32.mrb[7].mxu1 }
  0xed   :  { %v724_v50 = vpop.eup %723  ;;  %v356_v51 = vadd.f32 %v697_v48, %v677_v46  ;;  %v350_v52 = vpop.f32.mrb[7].mxu0 }
  0xee   :  { %v726_v53 = vpop.eup %725  ;;  %v351_v54 = vadd.f32 %v350_v52, %v221_v49  ;;  %v375_v55 = vmul.f32 %v724_v50, %v633_v47 }
  0xef   :  { %735 = vtanh.f32 %v356_v51  ;;  %v374_v57 = vmul.f32 %v726_v53, %v633_v47 }
  0xf0   :  { %737 = vtanh.f32 %v351_v54  ;;  %v386_v56 = vsel %vm382_vm1, %v375_v55, 0.0 }
  0xf1   :  { %v728_v58 = vpop.eup %727  ;;  %387 = vadd.xlane.f32.xlu0 %v386_v56  ;;  %v383_v62 = vsel %vm382_vm1, %v374_v57, 0.0 }
  0xf2   :  { %v730_v59 = vpop.eup %729  ;;  %v377_v60 = vmul.f32 %v728_v58, %v633_v47 }
  0xf3   :  { %v376_v63 = vmul.f32 %v730_v59, %v633_v47 }
  0xf4   :  { %v392_v61 = vsel %vm382_vm1, %v377_v60, 0.0 }
  0xf5   :  { %v732_v0 = vpop.eup %731  ;;  %393 = vadd.xlane.f32.xlu1 %v392_v61  ;;  %384 = vadd.xlane.f32.xlu0 %v383_v62  ;;  %v389_v3 = vsel %vm382_vm1, %v376_v63, 0.0 }
  0xf6   :  { %v734_v1 = vpop.eup %733  ;;  %v379_v4 = vmul.f32 %v732_v0, %v633_v47  ;;  %v488_v0 = vsub.s32 1, %v926_v31 }
  0xf7   :  { %v378_v2 = vmul.f32 %v734_v1, %v633_v47  ;;  %v481_v1 = vsub.s32 0, %v926_v31 }
  0xf8   :  { %v398_v9 = vsel %vm382_vm1, %v379_v4, 0.0 }
  0xf9   :  { %v736_v5 = vpop.eup %735  ;;  %390 = vadd.xlane.f32.xlu1 %v389_v3  ;;  %v395_v6 = vsel %vm382_vm1, %v378_v2, 0.0 }
  0xfa   :  { %v738_v7 = vpop.eup %737  ;;  %396 = vadd.xlane.f32.xlu0 %v395_v6  ;;  %v381_v10 = vmul.f32 %v736_v5, %v633_v47  ;;  %v495_v6 = vsub.s32 2, %v926_v31 }
  0xfb   :  { %v380_v8 = vmul.f32 %v738_v7, %v633_v47  ;;  %v509_v7 = vsub.s32 4, %v926_v31 }
  0xfc   :  { %v404_v28 = vsel %vm382_vm1, %v381_v10, 0.0 }
  0xfd   :  { %399 = vadd.xlane.f32.xlu1 %v398_v9  ;;  %v401_v12 = vsel %vm382_vm1, %v380_v8, 0.0  ;;  %v743_v8 = vmov 0.0  }
  0xfe   :  { %402 = vadd.xlane.f32.xlu0 %v401_v12  ;;  %74 = vst.msk [vmem:[%s996_s5] sm:$0xff] %vm73_vm0, %v743_v8  ;;  %75 = vst.msk [vmem:[%s997_s6] sm:$0xff] %vm73_vm0, %v743_v8  ;;  %v502_v12 = vsub.s32 3, %v926_v31 }
 0x101   :  { %405 = vadd.xlane.f32.xlu1 %v404_v28  ;;  %v523_v28 = vsub.s32 6, %v926_v31 }
 0x105   :  { %v560_v8 = vld [vmem:[%s997_s6] sm:$0xff] }
 0x17e   :  { %v388_v32 = vpop.xlane.xlu0 %387 }
 0x17f   :  { %v425_v37 = vrot.slane %v388_v32, %v420_v33  ;;  %v516_v32 = vsub.s32 5, %v926_v31 }
 0x182   :  { %v394_v34 = vpop.xlane.xlu1 %393  ;;  %v385_v35 = vpop.xlane.xlu0 %384 }
 0x183   :  { %v421_v36 = vrot.slane %v385_v35, %v420_v33  ;;  %v433_v41 = vrot.slane %v394_v34, %v420_v33  ;;  %v530_v34 = vsub.s32 7, %v926_v31 }
 0x185   :  { %v451_v42 = vsel %vm450_vm2, %v425_v37, %v421_v36 }
 0x186   :  { %v391_v38 = vpop.xlane.xlu1 %390 }
 0x187   :  { %v429_v39 = vrot.slane %v391_v38, %v420_v33  ;;  %v397_v40 = vpop.xlane.xlu0 %396 }
 0x188   :  { %v437_v43 = vrot.slane %v397_v40, %v420_v33 }
 0x189   :  { %v453_v44 = vsel %vm452_vm3, %v429_v39, %v451_v42 }
 0x18a   :  { %v455_v45 = vsel %vm454_vm4, %v433_v41, %v453_v44  ;;  %v400_v46 = vpop.xlane.xlu1 %399 }
 0x18b   :  { %v457_v47 = vsel %vm456_vm5, %v437_v43, %v455_v45  ;;  %v441_v48 = vrot.slane %v400_v46, %v420_v33  ;;  %v403_v49 = vpop.xlane.xlu0 %402 }
 0x18c   :  { %v445_v50 = vrot.slane %v403_v49, %v420_v33 }
 0x18d   :  { %v459_v51 = vsel %vm458_vm6, %v441_v48, %v457_v47 }
 0x18e   :  { %v406_v52 = vpop.xlane.xlu1 %405  ;;  %v461_v54 = vsel %vm460_vm7, %v445_v50, %v459_v51 }
 0x18f   :  { %v449_v53 = vrot.slane %v406_v52, %v420_v33 }
 0x191   :  { %v463_v55 = vsel %vm462_vm8, %v449_v53, %v461_v54 }
 0x192   :  { %v465_v56 = vsel %vm409_vm9, %v463_v55, -1e+30 }
 0x193   :  { %v467_v57 = vsel %vm466_vm10, %v465_v56, -inf }
 0x194   :  { %468 = vmax.xlane.f32.xlu0 %v467_v57 }
 0x221   :  { %v469_v58 = vpop.xlane.xlu0 %468 }
 0x222   :  { %v470_v59 = vsub.f32 %v465_v56, %v469_v58 }
 0x224   :  { %v471_v60 = vmul.f32 1.442695, %v470_v59 }
 0x226   :  { %739 = vpow2.f32 %v471_v60 }
 0x230   :  { %v740_v61 = vpop.eup %739 }
 0x231   :  { %v473_v62 = vsel %vm466_vm10, %v740_v61, 0.0 }
 0x232   :  { %474 = vadd.xlane.f32.xlu1 %v473_v62 }
 0x2bf   :  { %v475_v63 = vpop.xlane.xlu1 %474 }
 0x2c0   :  { %741 = vrcp.f32 %v475_v63 }
 0x2ca   :  { %v742_v2 = vpop.eup %741 }
 0x2cb   :  { %v477_v3 = vmul.f32 %v742_v2, %v740_v61 }
 0x2cd   :  { %v489_v4 = vrot.slane %v477_v3, %v488_v0  ;;  %v482_v5 = vrot.slane %v477_v3, %v481_v1  ;;  %v496_v9 = vrot.slane %v477_v3, %v495_v6  ;;  %v510_v10 = vrot.slane %v477_v3, %v509_v7 }
 0x2ce   :  { %v503_v29 = vrot.slane %v477_v3, %v502_v12  ;;  %v524_v30 = vrot.slane %v477_v3, %v523_v28  ;;  %v517_v33 = vrot.slane %v477_v3, %v516_v32  ;;  %v531_v35 = vrot.slane %v477_v3, %v530_v34 }
 0x2cf   :  { %491 = vbcast.lane.b32.xlu1 %v489_v4, 256  ;;  %484 = vbcast.lane.b32.xlu0 %v482_v5, 256 }
 0x2d3   :  { %498 = vbcast.lane.b32.xlu1 %v496_v9, 256  ;;  %512 = vbcast.lane.b32.xlu0 %v510_v10, 256 }
 0x2d7   :  { %505 = vbcast.lane.b32.xlu1 %v503_v29, 256  ;;  %526 = vbcast.lane.b32.xlu0 %v524_v30, 256 }
 0x2db   :  { %519 = vbcast.lane.b32.xlu1 %v517_v33, 256 }
 0x2df   :  { %533 = vbcast.lane.b32.xlu1 %v531_v35, 256 }
 0x341   :  { %v492_v36 = vpop.permute.xlu1 %491  ;;  %v485_v37 = vpop.permute.xlu0 %484 }
 0x342   :  { %v536_v38 = vmul.f32 %v492_v36, %v825_v15  ;;  %v562_v39 = vmul.f32 %v820_v14, %v492_v36  ;;  %v535_v40 = vmul.f32 %v485_v37, %v813_v13  ;;  %v561_v41 = vmul.f32 %v806_v11, %v485_v37 }
 0x344   :  { %v544_v42 = vsel %vm73_vm0, %v536_v38, 0.0  ;;  %v570_v43 = vsel %vm73_vm0, %v562_v39, 0.0  ;;  %v543_v31 = vsel %vm73_vm0, %v535_v40, 0.0  ;;  %v569_v46 = vsel %vm73_vm0, %v561_v41, 0.0 }
 0x345   :  { %v499_v44 = vpop.permute.xlu1 %498  ;;  %v513_v45 = vpop.permute.xlu0 %512  ;;  %v545_v48 = vadd.f32 %v544_v42, %v543_v31  ;;  %v571_v11 = vadd.f32 %v570_v43, %v569_v46 }
 0x346   :  { %v537_v47 = vmul.f32 %v499_v44, %v835_v17  ;;  %v563_v15 = vmul.f32 %v830_v16, %v499_v44  ;;  %v539_v49 = vmul.f32 %v513_v45, %v863_v21  ;;  %v565_v50 = vmul.f32 %v858_v20, %v513_v45 }
 0x348   :  { %v546_v14 = vsel %vm73_vm0, %v537_v47, 0.0  ;;  %v572_v13 = vsel %vm73_vm0, %v563_v15, 0.0  ;;  %v550_v57 = vsel %vm73_vm0, %v539_v49, 0.0  ;;  %v576_v58 = vsel %vm73_vm0, %v565_v50, 0.0 }
 0x349   :  { %v506_v51 = vpop.permute.xlu1 %505  ;;  %v547_v54 = vadd.f32 %v546_v14, %v545_v48  ;;  %v573_v55 = vadd.f32 %v572_v13, %v571_v11  ;;  %v527_v17 = vpop.permute.xlu0 %526 }
 0x34a   :  { %v538_v52 = vmul.f32 %v506_v51, %v853_v19  ;;  %v564_v53 = vmul.f32 %v846_v18, %v506_v51  ;;  %v541_v20 = vmul.f32 %v527_v17, %v891_v25  ;;  %v567_v19 = vmul.f32 %v886_v24, %v527_v17 }
 0x34c   :  { %v548_v16 = vsel %vm73_vm0, %v538_v52, 0.0  ;;  %v574_v56 = vsel %vm73_vm0, %v564_v53, 0.0  ;;  %v554_v5 = vsel %vm73_vm0, %v541_v20, 0.0  ;;  %v580_v6 = vsel %vm73_vm0, %v567_v19, 0.0 }
 0x34d   :  { %v549_v59 = vadd.f32 %v548_v16, %v547_v54  ;;  %v575_v21 = vadd.f32 %v574_v56, %v573_v55  ;;  %v520_v60 = vpop.permute.xlu1 %519 }
 0x34e   :  { %v540_v18 = vmul.f32 %v520_v60, %v881_v23  ;;  %v566_v61 = vmul.f32 %v874_v22, %v520_v60  ;;  %v478_v22 = vld [vmem:[%s996_s5] sm:$0xff] }
 0x34f   :  { %v551_v62 = vadd.f32 %v550_v57, %v549_v59  ;;  %v577_v63 = vadd.f32 %v576_v58, %v575_v21 }
 0x350   :  { %v552_v0 = vsel %vm73_vm0, %v540_v18, 0.0  ;;  %v578_v1 = vsel %vm73_vm0, %v566_v61, 0.0 }
 0x351   :  { %v553_v2 = vadd.f32 %v552_v0, %v551_v62  ;;  %v579_v3 = vadd.f32 %v578_v1, %v577_v63  ;;  %v534_v4 = vpop.permute.xlu1 %533 }
 0x352   :  { %v542_v25 = vmul.f32 %v534_v4, %v909_v27  ;;  %v568_v24 = vmul.f32 %v902_v26, %v534_v4 }
 0x353   :  { %v555_v23 = vadd.f32 %v554_v5, %v553_v2  ;;  %v581_v7 = vadd.f32 %v580_v6, %v579_v3 }
 0x354   :  { %v556_v9 = vsel %vm73_vm0, %v542_v25, 0.0  ;;  %v582_v10 = vsel %vm73_vm0, %v568_v24, 0.0 }
 0x355   :  { %v557_v12 = vadd.f32 %v556_v9, %v555_v23  ;;  %v583_v28 = vadd.f32 %v582_v10, %v581_v7 }
 0x357   :  { %v558_v29 = vadd.f32 %v557_v12, %v478_v22  ;;  %v584_v27 = vadd.f32 %v583_v28, %v560_v8 }
 0x359   :  { %559 = vst.msk [vmem:[%s996_s5] sm:$0xff] %vm73_vm0, %v558_v29  ;;  %585 = vst.msk [vmem:[%s997_s6] sm:$0xff] %vm73_vm0, %v584_v27 }

// kernel: forward.2
= control target key start
LH: loop header
LB: loop body
LE: loop exit
PB: predicated region body
PF: predicated region fallthrough
CT: control target
= control target key end

     0   :  { %s3141_s21 = smov 0   ;;  %s3143_s22 = smov 0   ;;  %s3502_s0 = inlined_call_operand.vmem [shape: f32[2,8,32], index: 0, kind: input, shape index: {}]   ;;  %s3503_s1 = inlined_call_operand.vmem [shape: f32[8,8,32], index: 1, kind: input, shape index: {}]   ;;  %s3504_s2 = inlined_call_operand.vmem [shape: f32[2,32,96], index: 2, kind: input, shape index: {}]   ;;  %s3505_s3 = inlined_call_operand.vmem [shape: f32[2,1,96], index: 3, kind: input, shape index: {}]   ;;  %s3506_s4 = inlined_call_operand.vmem [shape: f32[2,32,96], index: 4, kind: input, shape index: {}]   ;;  %s3507_s5 = inlined_call_operand.vmem [shape: f32[2,1,32], index: 5, kind: input, shape index: {}]   ;;  %s3508_s6 = inlined_call_operand.vmem [shape: f32[2,8,8,32], index: 6, kind: output, shape index: {}]  }
   0x1   :  { %s3145_s23 = smov 0  }
   0x2 LB: > { %s28_s24 = sadd.s32 1, %s3088_s22  ;;  %p2471_p0 = scmp.ge.s32.totalorder %s3092_s23, 1  ;;  %s3092_s23 = sphi %s3145_s23, %s16_s23   ;;  %s3088_s22 = sphi %s3143_s22, %s3510_s22   ;;  %s3084_s21 = sphi %s3141_s21, %s3509_s21  }
   0x3   : > { %p30_p1 = scmp.ge.s32.totalorder %s28_s24, 2  ;;  %p296_p2 = scmp.lt.s32.totalorder %s3092_s23, 3 }
   0x5   : > { %s3512_s24 = smov (%p30_p1, %s28_s24), 0  ;;  %p297_p3 = pnand %p2471_p0, %p296_p2 }
   0x6   : > { %p358_p4 = scmp.lt.s32.totalorder (!%p297_p3), %s3084_s21, 1  ;;  %vm415_vm0 = vcmask (!%p297_p3), 261120   ;;  %v417_v0 = vld [vmem:[%s3503_s1] sm:$0xff] (!%p297_p3)  ;;  %v418_v14 = vld [vmem:[%s3503_s1 + $0x8] sm:$0xff] (!%p297_p3)  ;;  %v419_v16 = vld [vmem:[%s3503_s1 + $0x10] sm:$0xff] (!%p297_p3)  ;;  %vm566_vm1 = vcmask (!%p297_p3), 785408  }
   0x7   : > { %300 = sbr.rel (%p297_p3) target bundleno = 11342 (0x2c4e), region = 44  ;;  %v421_v1 = vld [vmem:[%s3503_s1 + $0x20] sm:$0xff] (!%p297_p3)  ;;  %2642 = vmatprep.mubr.msk.f32.mxu0 (!%p297_p3), %vm415_vm0, %v417_v0  ;;  %v422_v15 = vld [vmem:[%s3503_s1 + $0x28] sm:$0xff] (!%p297_p3)  ;;  %v423_v17 = vld [vmem:[%s3503_s1 + $0x30] sm:$0xff] (!%p297_p3)  ;;  %p2489_p5 = scmp.ne.s32.totalorder (!%p297_p3), %s3084_s21, 0 }
   0x8   : > { %2648 = vmatprep.mubr.msk.f32.mxu1 (!%p297_p3), %vm415_vm0, %v421_v1  ;;  %v420_v18 = vld [vmem:[%s3503_s1 + $0x18] sm:$0xff] (!%p297_p3) }
   0x9   : > { %v424_v19 = vld [vmem:[%s3503_s1 + $0x38] sm:$0xff] (!%p297_p3) }
   0xe   : > { %s3171_s29 = scalar_select %p358_p4, %s3084_s21, 1 }
   0xf   : > { %v3094_v38 = vmov (!%p2489_p5), 0.0|0.0   ;;  %vm3096_vm2 = vmmov (!%p2489_p5), 0   ;;  %v3097_v40 = vmov (!%p2489_p5), 0.0   ;;  %s3099_s25 = smov (!%p2489_p5), 96  }
  0x10   : > { %s2472_s30 = sshll.u32 %s3171_s29, 3  ;;  %s2539_s7 = sshll.u32 %s3171_s29, 5 }
  0x11   : > { %s361_s10 = scalar_lea.vmem %s3502_s0, %s2472_s30  ;;  %s380_s13 = scalar_lea.vmem %s3504_s2, %s2539_s7 }
  0x12   : > { %s388_s16 = scalar_lea.vmem %s3506_s4, %s2539_s7  ;;  %s391_s19 = scalar_lea.vmem %s3507_s5, %s3171_s29  ;;  %v414_v2 = vld [vmem:[%s361_s10] sm:$0xff]  ;;  %v426_v4 = vld [vmem:[%s380_s13 + $0x8] sm:$0xff]  ;;  %v427_v11 = vld [vmem:[%s380_s13 + $0x10] sm:$0xff] }
  0x13   : > { %v425_v3 = vld [vmem:[%s380_s13] sm:$0xff]  ;;  %s2541_s20 = sshll.u32 %s3171_s29, 6  ;;  %v3191_v7 = vld [vmem:[%s388_s16 + $0x8] sm:$0xff]  ;;  %v3193_v8 = vld [vmem:[%s388_s16 + $0x10] sm:$0xff]  ;;  %416 = vst.msk [vmem:[#allocation2] sm:$0xff] %vm415_vm0, %v414_v2 }
  0x14   : > { %v2830_v5 = vpack.c.bf16 %v426_v4, %v425_v3  ;;  %v3189_v6 = vld [vmem:[%s388_s16] sm:$0xff]  ;;  %s3199_s27 = scalar_lea.vmem %s3508_s6, %s2541_s20  ;;  %v3201_v9 = vld [vmem:[%s388_s16 + $0x18] sm:$0xff]  ;;  %s3098_s20 = smov (!%p2489_p5), 32  }
  0x15   : > { %v3203_v10 = vld [vmem:[%s391_s19] ss:$0 sm:$0xff]  ;;  %v428_v12 = vld [vmem:[%s380_s13 + $0x18] sm:$0xff]  ;;  %s383_s19 = scalar_lea.vmem %s3505_s3, %s3171_s29  ;;  %v3244_v37 = vpack.c.bf16 (!%p2489_p5), %v3191_v7, %v3189_v6  ;;  %s3095_s29 = smov (!%p2489_p5), 64   ;;  %v3252_v39 = vpack.c.bf16 (!%p2489_p5), %v3201_v9, %v3193_v8 }
  0x16   : > { %2831 = vmatprep.subr.bf16.mxu0 %v2830_v5  ;;  %2934 = vmatprep.subr.bf16.mxu1 %v2830_v5  ;;  %v2834_v13 = vpack.c.bf16 %v428_v12, %v427_v11  ;;  %v2479_v20 = vld [vmem:[%s383_s19] ss:$0 sm:$0xff] }
  0x17   : > { %2833 = vmatpush3.bf16.msra.mxu0 %v2830_v5  ;;  %2936 = vmatpush3.bf16.msra.mxu1 %v2830_v5 }
  0x18   : > { %2835 = vmatprep.subr.bf16.mxu0 %v2834_v13  ;;  %2935 = vmatprep.subr.bf16.mxu1 %v2834_v13 }
  0x19   : > { %671 = vrot.lane.b32.xlu0 (!%p2489_p5), %v3203_v10, %s3095_s29 }
  0x1a   : > { %v589_v41 = vld [vmem:[#allocation2] sm:$0xff] (!%p2489_p5) }
  0x1b   : > { %2837 = vmatpush3.bf16.msra.mxu0 %v2834_v13  ;;  %2937 = vmatpush3.bf16.msra.mxu1 %v2834_v13 }
  0x1c   : > { %2838 = vmatprep.subr.bf16.mxu0 (!%p2489_p5), %v3094_v38  ;;  %2844 = vmatprep.subr.bf16.mxu1 (!%p2489_p5), %v3094_v38 }
  0x1e   : > { %2643 = vmatmul.mubr.msk.f32.vlgmr.msra.gmra.mrb[0].mxu0 %vm415_vm0, %v418_v14  ;;  %2649 = vmatmul.mubr.msk.f32.vlgmr.msra.gmra.mrb[0].mxu1 %vm415_vm0, %v422_v15 }
  0x1f   : > { %2645 = vmatprep.mubr.msk.f32.mxu0 %vm415_vm0, %v419_v16  ;;  %2651 = vmatprep.mubr.msk.f32.mxu1 %vm415_vm0, %v423_v17 }
  0x20   : > { %2840 = vmatpush3.bf16.msra.mxu0 (!%p2489_p5), %v3244_v37  ;;  %2846 = vmatpush3.bf16.msra.mxu1 (!%p2489_p5), %v3244_v37 }
  0x21   : > { %2841 = vmatprep.subr.bf16.mxu0 (!%p2489_p5), %v3094_v38  ;;  %2847 = vmatprep.subr.bf16.mxu1 (!%p2489_p5), %v3094_v38 }
  0x22   : > { %2646 = vmatmul.mubr.msk.f32.gmra.mrb[2].mxu0 %vm415_vm0, %v420_v18  ;;  %2652 = vmatmul.mubr.msk.f32.gmra.mrb[2].mxu1 %vm415_vm0, %v424_v19 }
  0x23   : > { %2662 = vmatprep.mubr.msk.f32.mxu0 (!%p2489_p5), %vm3096_vm2, %v3097_v40  ;;  %2673 = vmatprep.mubr.msk.f32.mxu1 (!%p2489_p5), %vm3096_vm2, %v3097_v40 }
  0x24   : > { %2843 = vmatpush3.bf16.msra.mxu0 (!%p2489_p5), %v3252_v39  ;;  %2849 = vmatpush3.bf16.msra.mxu1 (!%p2489_p5), %v3252_v39 }
  0x25   : > { %2850 = vmatprep.subr.bf16.mxu0 (!%p2489_p5), %v3094_v38  ;;  %2856 = vmatprep.subr.bf16.mxu1 (!%p2489_p5), %v3094_v38 }
  0x8b   : > { %v3273_v42 = vpop.permute.xlu0 (!%p2489_p5), %671 }
  0xf1   : > { %v2644_v21 = vpop.f32.mrb[0].mxu0  ;;  %v2650_v22 = vpop.f32.mrb[0].mxu1 }
  0xf2   : > { %v533_v23 = vadd.f32 %v2644_v21, %v2479_v20  ;;  %v553_v24 = vadd.f32 %v2650_v22, %v2479_v20  ;;  %v527_v25 = vpop.f32.mrb[1].mxu0  ;;  %v547_v26 = vpop.f32.mrb[1].mxu1  ;;  %2663 = vmatmul.mubr.msk.f32.vlgmr.msra.gmra.mrb[0].mxu0 (!%p2489_p5), %vm415_vm0, %v589_v41 }
  0xf3   : > { %v528_v27 = vadd.f32 %v2479_v20, %v527_v25  ;;  %v548_v28 = vadd.f32 %v2479_v20, %v547_v26  ;;  %588 = sbr.rel (%p2489_p5) target bundleno = 5787 (0x169b), region = 52  ;;  %2852 = vmatpush3.bf16.msra.mxu0 (!%p2489_p5), %v3244_v37  ;;  %2684 = vmatprep.mubr.msk.f32.mxu0 (!%p2489_p5), %vm3096_vm2, %v3097_v40 }
  0xf4   : > { %568 = vst.msk [vmem:[#allocation3 + $0x8] sm:$0xff] %vm566_vm1, %v533_v23  ;;  %572 = vst.msk [vmem:[#allocation3 + $0x28] sm:$0xff] %vm566_vm1, %v553_v24  ;;  %2853 = vmatprep.subr.bf16.mxu0 (!%p2489_p5), %v3094_v38 }
  0xf5   : > { %567 = vst.msk [vmem:[#allocation3] sm:$0xff] %vm566_vm1, %v528_v27  ;;  %571 = vst.msk [vmem:[#allocation3 + $0x20] sm:$0xff] %vm566_vm1, %v548_v28  ;;  %v2647_v29 = vpop.f32.mrb[2].mxu0  ;;  %v2653_v30 = vpop.f32.mrb[2].mxu1 }
  0xf6   : > { %v543_v31 = vadd.f32 %v2647_v29, %v2479_v20  ;;  %v563_v32 = vadd.f32 %v2653_v30, %v2479_v20  ;;  %v537_v33 = vpop.f32.mrb[3].mxu0  ;;  %v557_v34 = vpop.f32.mrb[3].mxu1 }
  0xf7   : > { %v538_v35 = vadd.f32 %v2479_v20, %v537_v33  ;;  %v558_v36 = vadd.f32 %v2479_v20, %v557_v34  ;;  %2855 = vmatpush3.bf16.msra.mxu0 (!%p2489_p5), %v3252_v39 }
  0xf8   : > { %570 = vst.msk [vmem:[#allocation3 + $0x18] sm:$0xff] %vm566_vm1, %v543_v31  ;;  %574 = vst.msk [vmem:[#allocation3 + $0x38] sm:$0xff] %vm566_vm1, %v563_v32  ;;  %2862 = vmatprep.subr.bf16.mxu0 (!%p2489_p5), %v3094_v38 }
  0xf9   : > { %569 = vst.msk [vmem:[#allocation3 + $0x10] sm:$0xff] %vm566_vm1, %v538_v35  ;;  %573 = vst.msk [vmem:[#allocation3 + $0x30] sm:$0xff] %vm566_vm1, %v558_v36 }
  0xfb   : > { %v703_v3 = vld [vmem:[#allocation3 + $0x8] sm:$0xff] }
  0xfc   : > { %v590_v46 = vld [vmem:[#allocation3] sm:$0xff] }
 0x100   : > { %v810_v28 = vld [vmem:[#allocation3 + $0x10] sm:$0xff] }
 0x1c5   : > { %v660_v43 = vpop.f32.mrb[0].mxu0 }
 0x1c6   : > { %v674_v44 = vadd.f32 %v3273_v42, %v660_v43  ;;  %v2664_v45 = vpop.f32.mrb[1].mxu0  ;;  %v664_v47 = vadd.f32 %v660_v43, %v590_v46 }
 0x1c8   : > { %676 = vrot.lane.b32.xlu0 %v674_v44, %s3095_s29  ;;  %v2491_v48 = vmul.f32 -1.442695, %v664_v47 }
 0x1ca   : > { %2974 = vpow2.f32 %v2491_v48 }
 0x1cc   : > { %692 = vrot.lane.b32.xlu0 %v589_v41, %s3098_s20 }
 0x1d4   : > { %v2975_v49 = vpop.eup %2974 }
 0x1d5   : > { %v668_v50 = vadd.f32 1.0, %v2975_v49 }
 0x1d7   : > { %2976 = vrcp.f32 %v668_v50 }
 0x1e1   : > { %v2977_v51 = vpop.eup %2976 }
 0x1e2   : > { %v686_v58 = vsub.f32 1.0, %v2977_v51 }
 0x23a   : > { %v677_v52 = vpop.permute.xlu0 %676 }
 0x23b   : > { %v679_v53 = vmul.f32 %v2977_v51, %v677_v52 }
 0x23d   : > { %681 = vrot.lane.b32.xlu1 %v679_v53, %s3095_s29  ;;  %v917_v53 = vld [vmem:[#allocation3 + $0x18] sm:$0xff] }
 0x23e   : > { %v693_v57 = vpop.permute.xlu0 %692 }
 0x23f   : > { %v695_v60 = vmul.f32 %v2977_v51, %v693_v57 }
 0x2af   : > { %v682_v54 = vpop.permute.xlu1 %681 }
 0x2b0   : > { %v684_v55 = vadd.f32 %v682_v54, %v590_v46 }
 0x2b2   : > { %2978 = vtanh.f32 %v684_v55 }
 0x2bc   : > { %v2979_v56 = vpop.eup %2978 }
 0x2bd   : > { %688 = vrot.lane.b32.xlu1 %v2979_v56, %s3099_s25 }
 0x32f   : > { %v689_v59 = vpop.permute.xlu1 %688 }
 0x330   : > { %v691_v61 = vmul.f32 %v689_v59, %v686_v58 }
 0x332   : > { %v696_v62 = vadd.f32 %v695_v60, %v691_v61 }
 0x334   : > { %698 = vrot.lane.b32.xlu1 %v696_v62, %s3099_s25 }
 0x3a6   : > { %v699_v63 = vpop.permute.xlu1 %698 }
 0x3a7   : > { %701 = vst.msk [vmem:[%s3199_s27] sm:$0xff] %vm415_vm0, %v699_v63  ;;  %2674 = vmatmul.mubr.msk.f32.vlgmr.msra.gmra.mrb[0].mxu1 %vm415_vm0, %v699_v63 }
 0x3a8   : > { %2858 = vmatpush3.bf16.msra.mxu1 %v3244_v37  ;;  %2695 = vmatprep.mubr.msk.f32.mxu1 %vm3096_vm2, %v3097_v40 }
 0x3a9   : > { %2859 = vmatprep.subr.bf16.mxu1 %v3094_v38 }
 0x3ac   : > { %2861 = vmatpush3.bf16.msra.mxu1 %v3252_v39 }
 0x3ad   : > { %2868 = vmatprep.subr.bf16.mxu1 %v3094_v38 }
 0x47a   : > { %v772_v0 = vpop.f32.mrb[0].mxu1 }
 0x47b   : > { %v783_v1 = vadd.f32 %v772_v0, %v3273_v42  ;;  %v2675_v2 = vpop.f32.mrb[1].mxu1  ;;  %v776_v4 = vadd.f32 %v772_v0, %v703_v3 }
 0x47d   : > { %785 = vrot.lane.b32.xlu0 %v783_v1, %s3095_s29  ;;  %v2493_v5 = vmul.f32 -1.442695, %v776_v4 }
 0x47f   : > { %2980 = vpow2.f32 %v2493_v5 }
 0x489   : > { %v2981_v11 = vpop.eup %2980 }
 0x48a   : > { %v780_v12 = vadd.f32 1.0, %v2981_v11 }
 0x48c   : > { %2982 = vrcp.f32 %v780_v12 }
 0x496   : > { %v2983_v13 = vpop.eup %2982 }
 0x497   : > { %v795_v19 = vsub.f32 1.0, %v2983_v13  ;;  %v801_v21 = vmul.f32 %v2983_v13, %v696_v62 }
 0x4ef   : > { %v786_v14 = vpop.permute.xlu0 %785 }
 0x4f0   : > { %v788_v15 = vmul.f32 %v2983_v13, %v786_v14  ;;  %v1024_v14 = vld [vmem:[#allocation3 + $0x20] sm:$0xff] }
 0x4f2   : > { %790 = vrot.lane.b32.xlu1 %v788_v15, %s3095_s29 }
 0x564   : > { %v791_v16 = vpop.permute.xlu1 %790 }
 0x565   : > { %v793_v17 = vadd.f32 %v791_v16, %v703_v3 }
 0x567   : > { %2984 = vtanh.f32 %v793_v17 }
 0x571   : > { %v2985_v18 = vpop.eup %2984 }
 0x572   : > { %797 = vrot.lane.b32.xlu0 %v2985_v18, %s3099_s25 }
 0x5e4   : > { %v798_v20 = vpop.permute.xlu0 %797 }
 0x5e5   : > { %v800_v22 = vmul.f32 %v798_v20, %v795_v19 }
 0x5e7   : > { %v802_v23 = vadd.f32 %v801_v21, %v800_v22 }
 0x5e9   : > { %804 = vrot.lane.b32.xlu1 %v802_v23, %s3099_s25 }
 0x65b   : > { %v805_v24 = vpop.permute.xlu1 %804 }
 0x65c   : > { %2494 = vst.msk [vmem:[%s3199_s27 + $0x8] sm:$0xff] %vm415_vm0, %v805_v24  ;;  %2685 = vmatmul.mubr.msk.f32.vlgmr.msra.gmra.mrb[2].mxu0 %vm415_vm0, %v805_v24 }
 0x65d   : > { %2864 = vmatpush3.bf16.msra.mxu0 %v3244_v37  ;;  %2706 = vmatprep.mubr.msk.f32.mxu0 %vm3096_vm2, %v3097_v40 }
 0x65e   : > { %2865 = vmatprep.subr.bf16.mxu0 %v3094_v38 }
 0x661   : > { %2867 = vmatpush3.bf16.msra.mxu0 %v3252_v39 }
 0x662   : > { %2874 = vmatprep.subr.bf16.mxu0 %v3094_v38 }
 0x72f   : > { %v879_v25 = vpop.f32.mrb[2].mxu0 }
 0x730   : > { %v890_v26 = vadd.f32 %v879_v25, %v3273_v42  ;;  %v2686_v27 = vpop.f32.mrb[3].mxu0  ;;  %v883_v29 = vadd.f32 %v879_v25, %v810_v28 }
 0x732   : > { %892 = vrot.lane.b32.xlu0 %v890_v26, %s3095_s29  ;;  %v2496_v30 = vmul.f32 -1.442695, %v883_v29 }
 0x734   : > { %2986 = vpow2.f32 %v2496_v30 }
 0x73e   : > { %v2987_v31 = vpop.eup %2986 }
 0x73f   : > { %v887_v32 = vadd.f32 1.0, %v2987_v31 }
 0x741   : > { %2988 = vrcp.f32 %v887_v32 }
 0x74b   : > { %v2989_v33 = vpop.eup %2988 }
 0x74c   : > { %v902_v44 = vsub.f32 1.0, %v2989_v33  ;;  %v908_v46 = vmul.f32 %v2989_v33, %v802_v23 }
 0x7a4   : > { %v893_v34 = vpop.permute.xlu0 %892 }
 0x7a5   : > { %v895_v35 = vmul.f32 %v2989_v33, %v893_v34  ;;  %v1131_v34 = vld [vmem:[#allocation3 + $0x28] sm:$0xff] }
 0x7a7   : > { %897 = vrot.lane.b32.xlu1 %v895_v35, %s3095_s29 }
 0x819   : > { %v898_v36 = vpop.permute.xlu1 %897 }
 0x81a   : > { %v900_v41 = vadd.f32 %v898_v36, %v810_v28 }
 0x81c   : > { %2990 = vtanh.f32 %v900_v41 }
 0x826   : > { %v2991_v43 = vpop.eup %2990 }
 0x827   : > { %904 = vrot.lane.b32.xlu0 %v2991_v43, %s3099_s25 }
 0x899   : > { %v905_v45 = vpop.permute.xlu0 %904 }
 0x89a   : > { %v907_v47 = vmul.f32 %v905_v45, %v902_v44 }
 0x89c   : > { %v909_v48 = vadd.f32 %v908_v46, %v907_v47 }
 0x89e   : > { %911 = vrot.lane.b32.xlu1 %v909_v48, %s3099_s25 }
 0x910   : > { %v912_v49 = vpop.permute.xlu1 %911 }
 0x911   : > { %2497 = vst.msk [vmem:[%s3199_s27 + $0x10] sm:$0xff] %vm415_vm0, %v912_v49  ;;  %2696 = vmatmul.mubr.msk.f32.vlgmr.msra.gmra.mrb[2].mxu1 %vm415_vm0, %v912_v49 }
 0x912   : > { %2870 = vmatpush3.bf16.msra.mxu1 %v3244_v37  ;;  %2717 = vmatprep.mubr.msk.f32.mxu1 %vm3096_vm2, %v3097_v40 }
 0x913   : > { %2871 = vmatprep.subr.bf16.mxu1 %v3094_v38 }
 0x916   : > { %2873 = vmatpush3.bf16.msra.mxu1 %v3252_v39 }
 0x917   : > { %2880 = vmatprep.subr.bf16.mxu1 %v3094_v38 }
 0x9e4   : > { %v986_v50 = vpop.f32.mrb[2].mxu1 }
 0x9e5   : > { %v997_v51 = vadd.f32 %v986_v50, %v3273_v42  ;;  %v2697_v52 = vpop.f32.mrb[3].mxu1  ;;  %v990_v54 = vadd.f32 %v986_v50, %v917_v53 }
 0x9e7   : > { %999 = vrot.lane.b32.xlu0 %v997_v51, %s3095_s29  ;;  %v2499_v55 = vmul.f32 -1.442695, %v990_v54 }
 0x9e9   : > { %2992 = vpow2.f32 %v2499_v55  ;;  %v1238_v55 = vld [vmem:[#allocation3 + $0x30] sm:$0xff] }
 0x9f3   : > { %v2993_v56 = vpop.eup %2992 }
 0x9f4   : > { %v994_v57 = vadd.f32 1.0, %v2993_v56 }
 0x9f6   : > { %2994 = vrcp.f32 %v994_v57 }
 0xa00   : > { %v2995_v58 = vpop.eup %2994 }
 0xa01   : > { %v1009_v0 = vsub.f32 1.0, %v2995_v58  ;;  %v1015_v2 = vmul.f32 %v2995_v58, %v909_v48 }
 0xa59   : > { %v1000_v59 = vpop.permute.xlu0 %999 }
 0xa5a   : > { %v1002_v60 = vmul.f32 %v2995_v58, %v1000_v59 }
 0xa5c   : > { %1004 = vrot.lane.b32.xlu1 %v1002_v60, %s3095_s29 }
 0xace   : > { %v1005_v61 = vpop.permute.xlu1 %1004 }
 0xacf   : > { %v1007_v62 = vadd.f32 %v1005_v61, %v917_v53 }
 0xad1   : > { %2996 = vtanh.f32 %v1007_v62 }
 0xadb   : > { %v2997_v63 = vpop.eup %2996 }
 0xadc   : > { %1011 = vrot.lane.b32.xlu0 %v2997_v63, %s3099_s25 }
 0xb4e   : > { %v1012_v1 = vpop.permute.xlu0 %1011 }
 0xb4f   : > { %v1014_v3 = vmul.f32 %v1012_v1, %v1009_v0 }
 0xb51   : > { %v1016_v4 = vadd.f32 %v1015_v2, %v1014_v3 }
 0xb53   : > { %1018 = vrot.lane.b32.xlu1 %v1016_v4, %s3099_s25 }
 0xbc5   : > { %v1019_v5 = vpop.permute.xlu1 %1018 }
 0xbc6   : > { %2500 = vst.msk [vmem:[%s3199_s27 + $0x18] sm:$0xff] %vm415_vm0, %v1019_v5  ;;  %2707 = vmatmul.mubr.msk.f32.vlgmr.msra.gmra.mrb[4].mxu0 %vm415_vm0, %v1019_v5 }
 0xbc7   : > { %2876 = vmatpush3.bf16.msra.mxu0 %v3244_v37  ;;  %2728 = vmatprep.mubr.msk.f32.mxu0 %vm3096_vm2, %v3097_v40 }
 0xbc8   : > { %2877 = vmatprep.subr.bf16.mxu0 %v3094_v38 }
 0xbcb   : > { %2879 = vmatpush3.bf16.msra.mxu0 %v3252_v39 }
 0xc99   : > { %v1093_v11 = vpop.f32.mrb[4].mxu0 }
 0xc9a   : > { %v1104_v12 = vadd.f32 %v1093_v11, %v3273_v42  ;;  %v2708_v13 = vpop.f32.mrb[5].mxu0  ;;  %v1097_v15 = vadd.f32 %v1093_v11, %v1024_v14 }
 0xc9c   : > { %1106 = vrot.lane.b32.xlu0 %v1104_v12, %s3095_s29  ;;  %v2502_v16 = vmul.f32 -1.442695, %v1097_v15 }
 0xc9e   : > { %2998 = vpow2.f32 %v2502_v16  ;;  %v1345_v16 = vld [vmem:[#allocation3 + $0x38] sm:$0xff] }
 0xca8   : > { %v2999_v17 = vpop.eup %2998 }
 0xca9   : > { %v1101_v18 = vadd.f32 1.0, %v2999_v17 }
 0xcab   : > { %3000 = vrcp.f32 %v1101_v18 }
 0xcb5   : > { %v3001_v19 = vpop.eup %3000 }
 0xcb6   : > { %v1116_v25 = vsub.f32 1.0, %v3001_v19  ;;  %v1122_v27 = vmul.f32 %v3001_v19, %v1016_v4 }
 0xd0e   : > { %v1107_v20 = vpop.permute.xlu0 %1106 }
 0xd0f   : > { %v1109_v21 = vmul.f32 %v3001_v19, %v1107_v20 }
 0xd11   : > { %1111 = vrot.lane.b32.xlu1 %v1109_v21, %s3095_s29 }
 0xd83   : > { %v1112_v22 = vpop.permute.xlu1 %1111 }
 0xd84   : > { %v1114_v23 = vadd.f32 %v1112_v22, %v1024_v14 }
 0xd86   : > { %3002 = vtanh.f32 %v1114_v23 }
 0xd90   : > { %v3003_v24 = vpop.eup %3002 }
 0xd91   : > { %1118 = vrot.lane.b32.xlu0 %v3003_v24, %s3099_s25 }
 0xe03   : > { %v1119_v26 = vpop.permute.xlu0 %1118 }
 0xe04   : > { %v1121_v28 = vmul.f32 %v1119_v26, %v1116_v25 }
 0xe06   : > { %v1123_v29 = vadd.f32 %v1122_v27, %v1121_v28 }
 0xe08   : > { %1125 = vrot.lane.b32.xlu1 %v1123_v29, %s3099_s25 }
 0xe7a   : > { %v1126_v30 = vpop.permute.xlu1 %1125 }
 0xe7b   : > { %2503 = vst.msk [vmem:[%s3199_s27 + $0x20] sm:$0xff] %vm415_vm0, %v1126_v30  ;;  %2718 = vmatmul.mubr.msk.f32.vlgmr.msra.gmra.mrb[4].mxu1 %vm415_vm0, %v1126_v30 }
 0xe7c   : > { %2882 = vmatpush3.bf16.msra.mxu1 %v3244_v37  ;;  %2739 = vmatprep.mubr.msk.f32.mxu1 %vm3096_vm2, %v3097_v40 }
 0xe7d   : > { %2883 = vmatprep.subr.bf16.mxu1 %v3094_v38 }
 0xe80   : > { %2885 = vmatpush3.bf16.msra.mxu1 %v3252_v39 }
 0xf4e   : > { %v1200_v31 = vpop.f32.mrb[4].mxu1 }
 0xf4f   : > { %v1211_v32 = vadd.f32 %v1200_v31, %v3273_v42  ;;  %v2719_v33 = vpop.f32.mrb[5].mxu1  ;;  %v1204_v35 = vadd.f32 %v1200_v31, %v1131_v34 }
 0xf51   : > { %1213 = vrot.lane.b32.xlu0 %v1211_v32, %s3095_s29  ;;  %v2505_v36 = vmul.f32 -1.442695, %v1204_v35 }
 0xf53   : > { %3004 = vpow2.f32 %v2505_v36 }
 0xf5d   : > { %v3005_v41 = vpop.eup %3004 }
 0xf5e   : > { %v1208_v43 = vadd.f32 1.0, %v3005_v41 }
 0xf60   : > { %3006 = vrcp.f32 %v1208_v43 }
 0xf6a   : > { %v3007_v37 = vpop.eup %3006 }
 0xf6b   : > { %v1223_v46 = vsub.f32 1.0, %v3007_v37  ;;  %v1229_v48 = vmul.f32 %v3007_v37, %v1123_v29 }
 0xfc3   : > { %v1214_v40 = vpop.permute.xlu0 %1213 }
 0xfc4   : > { %v1216_v44 = vmul.f32 %v3007_v37, %v1214_v40 }
 0xfc6   : > { %1218 = vrot.lane.b32.xlu1 %v1216_v44, %s3095_s29 }
0x1038   : > { %v1219_v38 = vpop.permute.xlu1 %1218 }
0x1039   : > { %v1221_v39 = vadd.f32 %v1219_v38, %v1131_v34 }
0x103b   : > { %3008 = vtanh.f32 %v1221_v39 }
0x1045   : > { %v3009_v45 = vpop.eup %3008 }
0x1046   : > { %1225 = vrot.lane.b32.xlu0 %v3009_v45, %s3099_s25 }
0x10b8   : > { %v1226_v47 = vpop.permute.xlu0 %1225 }
0x10b9   : > { %v1228_v49 = vmul.f32 %v1226_v47, %v1223_v46 }
0x10bb   : > { %v1230_v50 = vadd.f32 %v1229_v48, %v1228_v49 }
0x10bd   : > { %1232 = vrot.lane.b32.xlu1 %v1230_v50, %s3099_s25 }
0x112f   : > { %v1233_v51 = vpop.permute.xlu1 %1232 }
0x1130   : > { %2506 = vst.msk [vmem:[%s3199_s27 + $0x28] sm:$0xff] %vm415_vm0, %v1233_v51  ;;  %2729 = vmatmul.mubr.msk.f32.vlgmr.msra.gmra.mrb[6].mxu0 %vm415_vm0, %v1233_v51 }
0x1203   : > { %v1307_v52 = vpop.f32.mrb[6].mxu0 }
0x1204   : > { %v1318_v53 = vadd.f32 %v1307_v52, %v3273_v42  ;;  %v2730_v54 = vpop.f32.mrb[7].mxu0  ;;  %v1311_v56 = vadd.f32 %v1307_v52, %v1238_v55 }
0x1206   : > { %1320 = vrot.lane.b32.xlu0 %v1318_v53, %s3095_s29  ;;  %v2508_v57 = vmul.f32 -1.442695, %v1311_v56 }
0x1208   : > { %3010 = vpow2.f32 %v2508_v57 }
0x1212   : > { %v3011_v58 = vpop.eup %3010 }
0x1213   : > { %v1315_v59 = vadd.f32 1.0, %v3011_v58 }
0x1215   : > { %3012 = vrcp.f32 %v1315_v59 }
0x121f   : > { %v3013_v60 = vpop.eup %3012 }
0x1220   : > { %v1330_v2 = vsub.f32 1.0, %v3013_v60  ;;  %v1336_v4 = vmul.f32 %v3013_v60, %v1230_v50 }
0x1278   : > { %v1321_v61 = vpop.permute.xlu0 %1320 }
0x1279   : > { %v1323_v62 = vmul.f32 %v3013_v60, %v1321_v61 }
0x127b   : > { %1325 = vrot.lane.b32.xlu1 %v1323_v62, %s3095_s29 }
0x12ed   : > { %v1326_v63 = vpop.permute.xlu1 %1325 }
0x12ee   : > { %v1328_v0 = vadd.f32 %v1326_v63, %v1238_v55 }
0x12f0   : > { %3014 = vtanh.f32 %v1328_v0 }
0x12fa   : > { %v3015_v1 = vpop.eup %3014 }
0x12fb   : > { %1332 = vrot.lane.b32.xlu0 %v3015_v1, %s3099_s25 }
0x136d   : > { %v1333_v3 = vpop.permute.xlu0 %1332 }
0x136e   : > { %v1335_v5 = vmul.f32 %v1333_v3, %v1330_v2 }
0x1370   : > { %v1337_v11 = vadd.f32 %v1336_v4, %v1335_v5 }
0x1372   : > { %1339 = vrot.lane.b32.xlu1 %v1337_v11, %s3099_s25 }
0x13e4   : > { %v1340_v12 = vpop.permute.xlu1 %1339 }
0x13e5   : > { %2509 = vst.msk [vmem:[%s3199_s27 + $0x30] sm:$0xff] %vm415_vm0, %v1340_v12  ;;  %2740 = vmatmul.mubr.msk.f32.vlgmr.msra.gmra.mrb[6].mxu1 %vm415_vm0, %v1340_v12 }
0x14b8   : > { %v1414_v13 = vpop.f32.mrb[6].mxu1 }
0x14b9   : > { %v1425_v14 = vadd.f32 %v1414_v13, %v3273_v42  ;;  %v2741_v15 = vpop.f32.mrb[7].mxu1  ;;  %v1418_v17 = vadd.f32 %v1414_v13, %v1345_v16 }
0x14bb   : > { %1427 = vrot.lane.b32.xlu0 %v1425_v14, %s3095_s29  ;;  %v2511_v18 = vmul.f32 -1.442695, %v1418_v17 }
0x14bd   : > { %3016 = vpow2.f32 %v2511_v18 }
0x14c7   : > { %v3017_v19 = vpop.eup %3016 }
0x14c8   : > { %v1422_v20 = vadd.f32 1.0, %v3017_v19 }
0x14ca   : > { %3018 = vrcp.f32 %v1422_v20 }
0x14d4   : > { %v3019_v21 = vpop.eup %3018 }
0x14d5   : > { %v1437_v26 = vsub.f32 1.0, %v3019_v21  ;;  %v1443_v28 = vmul.f32 %v3019_v21, %v1337_v11 }
0x152d   : > { %v1428_v22 = vpop.permute.xlu0 %1427 }
0x152e   : > { %v1430_v23 = vmul.f32 %v3019_v21, %v1428_v22 }
0x1530   : > { %1432 = vrot.lane.b32.xlu1 %v1430_v23, %s3095_s29 }
0x15a2   : > { %v1433_v24 = vpop.permute.xlu1 %1432 }
0x15a3   : > { %v1435_v25 = vadd.f32 %v1433_v24, %v1345_v16 }
0x15a5   : > { %3020 = vtanh.f32 %v1435_v25 }
0x15af   : > { %v3021_v42 = vpop.eup %3020 }
0x15b0   : > { %1439 = vrot.lane.b32.xlu0 %v3021_v42, %s3099_s25 }
0x1622   : > { %v1440_v27 = vpop.permute.xlu0 %1439 }
0x1623   : > { %v1442_v29 = vmul.f32 %v1440_v27, %v1437_v26 }
0x1625   : > { %v1444_v30 = vadd.f32 %v1443_v28, %v1442_v29 }
0x1627   : > { %1446 = vrot.lane.b32.xlu1 %v1444_v30, %s3099_s25 }
0x1699   : > { %v1447_v31 = vpop.permute.xlu1 %1446 }
0x169a   : > { %2512 = vst.msk [vmem:[%s3199_s27 + $0x38] sm:$0xff] %vm415_vm0, %v1447_v31  ;;  %1451 = vst.msk [vmem:[#allocation2] sm:$0xff] %vm415_vm0, %v1447_v31 }
0x169b PF: > { %p2513_p6 = scmp.ne.s32.totalorder %s3084_s21, 1 }
0x169c   : > { %v3370_v32 = vpack.c.bf16 (!%p2513_p6), %v3191_v7, %v3189_v6  ;;  %v3100_v33 = vmov (!%p2513_p6), 0.0|0.0   ;;  %s3101_s26 = smov (!%p2513_p6), 64   ;;  %v3378_v34 = vpack.c.bf16 (!%p2513_p6), %v3201_v9, %v3193_v8  ;;  %vm3102_vm3 = vmmov (!%p2513_p6), 0   ;;  %s3104_s21 = smov (!%p2513_p6), 32   ;;  %v1679_v19 = vld [vmem:[#allocation3 + $0x28] sm:$0xff] (!%p2513_p6) }
0x169d   : > { %1455 = sbr.rel (%p2513_p6) target bundleno = 11342 (0x2c4e), region = 56  ;;  %2886 = vmatprep.subr.bf16.mxu0 (!%p2513_p6), %v3100_v33  ;;  %1539 = vrot.lane.b32.xlu0 (!%p2513_p6), %v3203_v10, %s3101_s26  ;;  %v3103_v35 = vmov (!%p2513_p6), 0.0   ;;  %s3105_s28 = smov (!%p2513_p6), 96  }
0x169e   : > { %2888 = vmatpush3.bf16.msra.mxu0 (!%p2513_p6), %v3370_v32  ;;  %2750 = vmatprep.mubr.msk.f32.mxu0 (!%p2513_p6), %vm3102_vm3, %v3103_v35 }
0x169f   : > { %2889 = vmatprep.subr.bf16.mxu0 (!%p2513_p6), %v3100_v33  ;;  %2892 = vmatprep.subr.bf16.mxu1 (!%p2513_p6), %v3100_v33 }
0x16a0   : > { %2894 = vmatpush3.bf16.msra.mxu1 (!%p2513_p6), %v3370_v32  ;;  %2761 = vmatprep.mubr.msk.f32.mxu1 (!%p2513_p6), %vm3102_vm3, %v3103_v35  ;;  %v1458_v36 = vld [vmem:[#allocation3 + $0x38] sm:$0xff] (!%p2513_p6) }
0x16a1   : > { %2895 = vmatprep.subr.bf16.mxu1 (!%p2513_p6), %v3100_v33  ;;  %v1456_v6 = vld [vmem:[#allocation2] sm:$0xff] (!%p2513_p6)  ;;  %v1572_v58 = vld [vmem:[#allocation3 + $0x30] sm:$0xff] (!%p2513_p6) }
0x16a2   : > { %2891 = vmatpush3.bf16.msra.mxu0 (!%p2513_p6), %v3378_v34 }
0x16a3   : > { %2898 = vmatprep.subr.bf16.mxu0 (!%p2513_p6), %v3100_v33 }
0x16a4   : > { %2897 = vmatpush3.bf16.msra.mxu1 %v3378_v34 }
0x16a5   : > { %2751 = vmatmul.mubr.msk.f32.vlgmr.msra.gmra.mrb[0].mxu0 %vm415_vm0, %v1456_v6  ;;  %2904 = vmatprep.subr.bf16.mxu1 %v3100_v33 }
0x16a6   : > { %2900 = vmatpush3.bf16.msra.mxu0 %v3370_v32  ;;  %2772 = vmatprep.mubr.msk.f32.mxu0 %vm3102_vm3, %v3103_v35 }
0x16a7   : > { %2901 = vmatprep.subr.bf16.mxu0 %v3100_v33 }
0x16aa   : > { %2903 = vmatpush3.bf16.msra.mxu0 %v3378_v34 }
0x16ab   : > { %2910 = vmatprep.subr.bf16.mxu0 %v3100_v33 }
0x170f   : > { %v3399_v7 = vpop.permute.xlu0 %1539 }
0x1778   : > { %v1528_v8 = vpop.f32.mrb[0].mxu0 }
0x1779   : > { %v1542_v9 = vadd.f32 %v3399_v7, %v1528_v8  ;;  %v2752_v10 = vpop.f32.mrb[1].mxu0  ;;  %v1532_v41 = vadd.f32 %v1528_v8, %v1458_v36 }
0x177b   : > { %1544 = vrot.lane.b32.xlu0 %v1542_v9, %s3101_s26  ;;  %v2515_v43 = vmul.f32 -1.442695, %v1532_v41 }
0x177d   : > { %3022 = vpow2.f32 %v2515_v43  ;;  %v1786_v43 = vld [vmem:[#allocation3 + $0x20] sm:$0xff] }
0x177f   : > { %1560 = vrot.lane.b32.xlu0 %v1456_v6, %s3104_s21 }
0x1787   : > { %v3023_v37 = vpop.eup %3022 }
0x1788   : > { %v1536_v40 = vadd.f32 1.0, %v3023_v37 }
0x178a   : > { %3024 = vrcp.f32 %v1536_v40 }
0x1794   : > { %v3025_v44 = vpop.eup %3024 }
0x1795   : > { %v1554_v49 = vsub.f32 1.0, %v3025_v44 }
0x17ed   : > { %v1545_v38 = vpop.permute.xlu0 %1544 }
0x17ee   : > { %v1547_v39 = vmul.f32 %v3025_v44, %v1545_v38 }
0x17f0   : > { %1549 = vrot.lane.b32.xlu1 %v1547_v39, %s3101_s26 }
0x17f1   : > { %v1561_v48 = vpop.permute.xlu0 %1560 }
0x17f2   : > { %v1563_v51 = vmul.f32 %v3025_v44, %v1561_v48 }
0x1862   : > { %v1550_v45 = vpop.permute.xlu1 %1549 }
0x1863   : > { %v1552_v46 = vadd.f32 %v1550_v45, %v1458_v36 }
0x1865   : > { %3026 = vtanh.f32 %v1552_v46 }
0x186f   : > { %v3027_v47 = vpop.eup %3026 }
0x1870   : > { %1556 = vrot.lane.b32.xlu1 %v3027_v47, %s3105_s28 }
0x18e2   : > { %v1557_v50 = vpop.permute.xlu1 %1556 }
0x18e3   : > { %v1559_v52 = vmul.f32 %v1557_v50, %v1554_v49 }
0x18e5   : > { %v1564_v53 = vadd.f32 %v1563_v51, %v1559_v52 }
0x18e7   : > { %1566 = vrot.lane.b32.xlu1 %v1564_v53, %s3105_s28 }
0x1959   : > { %v1567_v54 = vpop.permute.xlu1 %1566 }
0x195a   : > { %2516 = vst.msk [vmem:[%s3199_s27 + $0x38] sm:$0xff] %vm415_vm0, %v1567_v54  ;;  %2762 = vmatmul.mubr.msk.f32.vlgmr.msra.gmra.mrb[0].mxu1 %vm415_vm0, %v1567_v54 }
0x195b   : > { %2906 = vmatpush3.bf16.msra.mxu1 %v3370_v32  ;;  %2783 = vmatprep.mubr.msk.f32.mxu1 %vm3102_vm3, %v3103_v35 }
0x195c   : > { %2907 = vmatprep.subr.bf16.mxu1 %v3100_v33 }
0x195f   : > { %2909 = vmatpush3.bf16.msra.mxu1 %v3378_v34 }
0x1960   : > { %2916 = vmatprep.subr.bf16.mxu1 %v3100_v33 }
0x1a2d   : > { %v1641_v55 = vpop.f32.mrb[0].mxu1 }
0x1a2e   : > { %v1652_v56 = vadd.f32 %v1641_v55, %v3399_v7  ;;  %v2763_v57 = vpop.f32.mrb[1].mxu1  ;;  %v1645_v59 = vadd.f32 %v1641_v55, %v1572_v58 }
0x1a30   : > { %1654 = vrot.lane.b32.xlu0 %v1652_v56, %s3101_s26  ;;  %v2518_v60 = vmul.f32 -1.442695, %v1645_v59  ;;  %v1893_v59 = vld [vmem:[#allocation3 + $0x18] sm:$0xff] }
0x1a32   : > { %3028 = vpow2.f32 %v2518_v60 }
0x1a3c   : > { %v3029_v61 = vpop.eup %3028 }
0x1a3d   : > { %v1649_v62 = vadd.f32 1.0, %v3029_v61 }
0x1a3f   : > { %3030 = vrcp.f32 %v1649_v62 }
0x1a49   : > { %v3031_v63 = vpop.eup %3030 }
0x1a4a   : > { %v1664_v5 = vsub.f32 1.0, %v3031_v63  ;;  %v1670_v12 = vmul.f32 %v3031_v63, %v1564_v53 }
0x1aa2   : > { %v1655_v0 = vpop.permute.xlu0 %1654 }
0x1aa3   : > { %v1657_v1 = vmul.f32 %v3031_v63, %v1655_v0 }
0x1aa5   : > { %1659 = vrot.lane.b32.xlu1 %v1657_v1, %s3101_s26 }
0x1b17   : > { %v1660_v2 = vpop.permute.xlu1 %1659 }
0x1b18   : > { %v1662_v3 = vadd.f32 %v1660_v2, %v1572_v58 }
0x1b1a   : > { %3032 = vtanh.f32 %v1662_v3 }
0x1b24   : > { %v3033_v4 = vpop.eup %3032 }
0x1b25   : > { %1666 = vrot.lane.b32.xlu0 %v3033_v4, %s3105_s28 }
0x1b97   : > { %v1667_v11 = vpop.permute.xlu0 %1666 }
0x1b98   : > { %v1669_v13 = vmul.f32 %v1667_v11, %v1664_v5 }
0x1b9a   : > { %v1671_v14 = vadd.f32 %v1670_v12, %v1669_v13 }
0x1b9c   : > { %1673 = vrot.lane.b32.xlu1 %v1671_v14, %s3105_s28 }
0x1c0e   : > { %v1674_v15 = vpop.permute.xlu1 %1673 }
0x1c0f   : > { %2519 = vst.msk [vmem:[%s3199_s27 + $0x30] sm:$0xff] %vm415_vm0, %v1674_v15  ;;  %2773 = vmatmul.mubr.msk.f32.vlgmr.msra.gmra.mrb[2].mxu0 %vm415_vm0, %v1674_v15 }
0x1c10   : > { %2912 = vmatpush3.bf16.msra.mxu0 %v3370_v32  ;;  %2794 = vmatprep.mubr.msk.f32.mxu0 %vm3102_vm3, %v3103_v35 }
0x1c11   : > { %2913 = vmatprep.subr.bf16.mxu0 %v3100_v33 }
0x1c14   : > { %2915 = vmatpush3.bf16.msra.mxu0 %v3378_v34 }
0x1c15   : > { %2922 = vmatprep.subr.bf16.mxu0 %v3100_v33 }
0x1ce2   : > { %v1748_v16 = vpop.f32.mrb[2].mxu0 }
0x1ce3   : > { %v1759_v17 = vadd.f32 %v1748_v16, %v3399_v7  ;;  %v2774_v18 = vpop.f32.mrb[3].mxu0  ;;  %v1752_v20 = vadd.f32 %v1748_v16, %v1679_v19 }
0x1ce5   : > { %1761 = vrot.lane.b32.xlu0 %v1759_v17, %s3101_s26  ;;  %v2521_v21 = vmul.f32 -1.442695, %v1752_v20  ;;  %v2000_v20 = vld [vmem:[#allocation3 + $0x10] sm:$0xff] }
0x1ce7   : > { %3034 = vpow2.f32 %v2521_v21 }
0x1cf1   : > { %v3035_v22 = vpop.eup %3034 }
0x1cf2   : > { %v1756_v23 = vadd.f32 1.0, %v3035_v22 }
0x1cf4   : > { %3036 = vrcp.f32 %v1756_v23 }
0x1cfe   : > { %v3037_v24 = vpop.eup %3036 }
0x1cff   : > { %v1771_v29 = vsub.f32 1.0, %v3037_v24  ;;  %v1777_v31 = vmul.f32 %v3037_v24, %v1671_v14 }
0x1d57   : > { %v1762_v25 = vpop.permute.xlu0 %1761 }
0x1d58   : > { %v1764_v42 = vmul.f32 %v3037_v24, %v1762_v25 }
0x1d5a   : > { %1766 = vrot.lane.b32.xlu1 %v1764_v42, %s3101_s26 }
0x1dcc   : > { %v1767_v26 = vpop.permute.xlu1 %1766 }
0x1dcd   : > { %v1769_v27 = vadd.f32 %v1767_v26, %v1679_v19 }
0x1dcf   : > { %3038 = vtanh.f32 %v1769_v27 }
0x1dd9   : > { %v3039_v28 = vpop.eup %3038 }
0x1dda   : > { %1773 = vrot.lane.b32.xlu0 %v3039_v28, %s3105_s28 }
0x1e4c   : > { %v1774_v30 = vpop.permute.xlu0 %1773 }
0x1e4d   : > { %v1776_v6 = vmul.f32 %v1774_v30, %v1771_v29 }
0x1e4f   : > { %v1778_v8 = vadd.f32 %v1777_v31, %v1776_v6 }
0x1e51   : > { %1780 = vrot.lane.b32.xlu1 %v1778_v8, %s3105_s28 }
0x1ec3   : > { %v1781_v9 = vpop.permute.xlu1 %1780 }
0x1ec4   : > { %2522 = vst.msk [vmem:[%s3199_s27 + $0x28] sm:$0xff] %vm415_vm0, %v1781_v9  ;;  %2784 = vmatmul.mubr.msk.f32.vlgmr.msra.gmra.mrb[2].mxu1 %vm415_vm0, %v1781_v9 }
0x1ec5   : > { %2918 = vmatpush3.bf16.msra.mxu1 %v3370_v32  ;;  %2805 = vmatprep.mubr.msk.f32.mxu1 %vm3102_vm3, %v3103_v35 }
0x1ec6   : > { %2919 = vmatprep.subr.bf16.mxu1 %v3100_v33 }
0x1ec9   : > { %2921 = vmatpush3.bf16.msra.mxu1 %v3378_v34 }
0x1eca   : > { %2928 = vmatprep.subr.bf16.mxu1 %v3100_v33 }
0x1f97   : > { %v1855_v10 = vpop.f32.mrb[2].mxu1 }
0x1f98   : > { %v1866_v36 = vadd.f32 %v1855_v10, %v3399_v7  ;;  %v2785_v41 = vpop.f32.mrb[3].mxu1  ;;  %v1859_v37 = vadd.f32 %v1855_v10, %v1786_v43  ;;  %v2107_v10 = vld [vmem:[#allocation3 + $0x8] sm:$0xff] }
0x1f9a   : > { %1868 = vrot.lane.b32.xlu0 %v1866_v36, %s3101_s26  ;;  %v2524_v40 = vmul.f32 -1.442695, %v1859_v37 }
0x1f9c   : > { %3040 = vpow2.f32 %v2524_v40 }
0x1fa6   : > { %v3041_v44 = vpop.eup %3040 }
0x1fa7   : > { %v1863_v38 = vadd.f32 1.0, %v3041_v44 }
0x1fa9   : > { %3042 = vrcp.f32 %v1863_v38 }
0x1fb3   : > { %v3043_v39 = vpop.eup %3042 }
0x1fb4   : > { %v1878_v50 = vsub.f32 1.0, %v3043_v39  ;;  %v1884_v52 = vmul.f32 %v3043_v39, %v1778_v8 }
0x200c   : > { %v1869_v45 = vpop.permute.xlu0 %1868 }
0x200d   : > { %v1871_v46 = vmul.f32 %v3043_v39, %v1869_v45 }
0x200f   : > { %1873 = vrot.lane.b32.xlu1 %v1871_v46, %s3101_s26 }
0x2081   : > { %v1874_v47 = vpop.permute.xlu1 %1873 }
0x2082   : > { %v1876_v48 = vadd.f32 %v1874_v47, %v1786_v43 }
0x2084   : > { %3044 = vtanh.f32 %v1876_v48 }
0x208e   : > { %v3045_v49 = vpop.eup %3044 }
0x208f   : > { %1880 = vrot.lane.b32.xlu0 %v3045_v49, %s3105_s28 }
0x2101   : > { %v1881_v51 = vpop.permute.xlu0 %1880 }
0x2102   : > { %v1883_v53 = vmul.f32 %v1881_v51, %v1878_v50 }
0x2104   : > { %v1885_v54 = vadd.f32 %v1884_v52, %v1883_v53 }
0x2106   : > { %1887 = vrot.lane.b32.xlu1 %v1885_v54, %s3105_s28 }
0x2178   : > { %v1888_v55 = vpop.permute.xlu1 %1887 }
0x2179   : > { %2525 = vst.msk [vmem:[%s3199_s27 + $0x20] sm:$0xff] %vm415_vm0, %v1888_v55  ;;  %2795 = vmatmul.mubr.msk.f32.vlgmr.msra.gmra.mrb[4].mxu0 %vm415_vm0, %v1888_v55 }
0x217a   : > { %2924 = vmatpush3.bf16.msra.mxu0 %v3370_v32  ;;  %2816 = vmatprep.mubr.msk.f32.mxu0 %vm3102_vm3, %v3103_v35 }
0x217b   : > { %2925 = vmatprep.subr.bf16.mxu0 %v3100_v33 }
0x217e   : > { %2927 = vmatpush3.bf16.msra.mxu0 %v3378_v34 }
0x224c   : > { %v1962_v56 = vpop.f32.mrb[4].mxu0 }
0x224d   : > { %v1973_v57 = vadd.f32 %v1962_v56, %v3399_v7  ;;  %v2796_v58 = vpop.f32.mrb[5].mxu0  ;;  %v1966_v60 = vadd.f32 %v1962_v56, %v1893_v59  ;;  %v2213_v56 = vld [vmem:[#allocation3] sm:$0xff] }
0x224f   : > { %1975 = vrot.lane.b32.xlu0 %v1973_v57, %s3101_s26  ;;  %v2527_v61 = vmul.f32 -1.442695, %v1966_v60 }
0x2251   : > { %3046 = vpow2.f32 %v2527_v61 }
0x225b   : > { %v3047_v62 = vpop.eup %3046 }
0x225c   : > { %v1970_v63 = vadd.f32 1.0, %v3047_v62 }
0x225e   : > { %3048 = vrcp.f32 %v1970_v63 }
0x2268   : > { %v3049_v0 = vpop.eup %3048 }
0x2269   : > { %v1985_v11 = vsub.f32 1.0, %v3049_v0  ;;  %v1991_v13 = vmul.f32 %v3049_v0, %v1885_v54 }
0x22c1   : > { %v1976_v1 = vpop.permute.xlu0 %1975 }
0x22c2   : > { %v1978_v2 = vmul.f32 %v3049_v0, %v1976_v1 }
0x22c4   : > { %1980 = vrot.lane.b32.xlu1 %v1978_v2, %s3101_s26 }
0x2336   : > { %v1981_v3 = vpop.permute.xlu1 %1980 }
0x2337   : > { %v1983_v4 = vadd.f32 %v1981_v3, %v1893_v59 }
0x2339   : > { %3050 = vtanh.f32 %v1983_v4 }
0x2343   : > { %v3051_v5 = vpop.eup %3050 }
0x2344   : > { %1987 = vrot.lane.b32.xlu0 %v3051_v5, %s3105_s28 }
0x23b6   : > { %v1988_v12 = vpop.permute.xlu0 %1987 }
0x23b7   : > { %v1990_v14 = vmul.f32 %v1988_v12, %v1985_v11 }
0x23b9   : > { %v1992_v15 = vadd.f32 %v1991_v13, %v1990_v14 }
0x23bb   : > { %1994 = vrot.lane.b32.xlu1 %v1992_v15, %s3105_s28 }
0x242d   : > { %v1995_v16 = vpop.permute.xlu1 %1994 }
0x242e   : > { %2528 = vst.msk [vmem:[%s3199_s27 + $0x18] sm:$0xff] %vm415_vm0, %v1995_v16  ;;  %2806 = vmatmul.mubr.msk.f32.vlgmr.msra.gmra.mrb[4].mxu1 %vm415_vm0, %v1995_v16 }
0x242f   : > { %2930 = vmatpush3.bf16.msra.mxu1 %v3370_v32  ;;  %2827 = vmatprep.mubr.msk.f32.mxu1 %vm3102_vm3, %v3103_v35 }
0x2430   : > { %2931 = vmatprep.subr.bf16.mxu1 %v3100_v33 }
0x2433   : > { %2933 = vmatpush3.bf16.msra.mxu1 %v3378_v34 }
0x2501   : > { %v2069_v17 = vpop.f32.mrb[4].mxu1 }
0x2502   : > { %v2080_v18 = vadd.f32 %v2069_v17, %v3399_v7  ;;  %v2807_v19 = vpop.f32.mrb[5].mxu1  ;;  %v2073_v21 = vadd.f32 %v2069_v17, %v2000_v20 }
0x2504   : > { %2082 = vrot.lane.b32.xlu0 %v2080_v18, %s3101_s26  ;;  %v2530_v22 = vmul.f32 -1.442695, %v2073_v21 }
0x2506   : > { %3052 = vpow2.f32 %v2530_v22 }
0x2510   : > { %v3053_v23 = vpop.eup %3052 }
0x2511   : > { %v2077_v24 = vadd.f32 1.0, %v3053_v23 }
0x2513   : > { %3054 = vrcp.f32 %v2077_v24 }
0x251d   : > { %v3055_v32 = vpop.eup %3054 }
0x251e   : > { %v2092_v26 = vsub.f32 1.0, %v3055_v32  ;;  %v2098_v28 = vmul.f32 %v3055_v32, %v1992_v15 }
0x2576   : > { %v2083_v35 = vpop.permute.xlu0 %2082 }
0x2577   : > { %v2085_v25 = vmul.f32 %v3055_v32, %v2083_v35 }
0x2579   : > { %2087 = vrot.lane.b32.xlu1 %v2085_v25, %s3101_s26 }
0x25eb   : > { %v2088_v33 = vpop.permute.xlu1 %2087 }
0x25ec   : > { %v2090_v34 = vadd.f32 %v2088_v33, %v2000_v20 }
0x25ee   : > { %3056 = vtanh.f32 %v2090_v34 }
0x25f8   : > { %v3057_v42 = vpop.eup %3056 }
0x25f9   : > { %2094 = vrot.lane.b32.xlu0 %v3057_v42, %s3105_s28 }
0x266b   : > { %v2095_v27 = vpop.permute.xlu0 %2094 }
0x266c   : > { %v2097_v29 = vmul.f32 %v2095_v27, %v2092_v26 }
0x266e   : > { %v2099_v30 = vadd.f32 %v2098_v28, %v2097_v29 }
0x2670   : > { %2101 = vrot.lane.b32.xlu1 %v2099_v30, %s3105_s28 }
0x26e2   : > { %v2102_v31 = vpop.permute.xlu1 %2101 }
0x26e3   : > { %2531 = vst.msk [vmem:[%s3199_s27 + $0x10] sm:$0xff] %vm415_vm0, %v2102_v31  ;;  %2817 = vmatmul.mubr.msk.f32.vlgmr.msra.gmra.mrb[6].mxu0 %vm415_vm0, %v2102_v31 }
0x27b6   : > { %v2176_v6 = vpop.f32.mrb[6].mxu0 }
0x27b7   : > { %v2187_v8 = vadd.f32 %v2176_v6, %v3399_v7  ;;  %v2818_v9 = vpop.f32.mrb[7].mxu0  ;;  %v2180_v36 = vadd.f32 %v2176_v6, %v2107_v10 }
0x27b9   : > { %2189 = vrot.lane.b32.xlu0 %v2187_v8, %s3101_s26  ;;  %v2533_v41 = vmul.f32 -1.442695, %v2180_v36 }
0x27bb   : > { %3058 = vpow2.f32 %v2533_v41 }
0x27c5   : > { %v3059_v43 = vpop.eup %3058 }
0x27c6   : > { %v2184_v37 = vadd.f32 1.0, %v3059_v43 }
0x27c8   : > { %3060 = vrcp.f32 %v2184_v37 }
0x27d2   : > { %v3061_v40 = vpop.eup %3060 }
0x27d3   : > { %v2199_v47 = vsub.f32 1.0, %v3061_v40  ;;  %v2205_v49 = vmul.f32 %v3061_v40, %v2099_v30 }
0x282b   : > { %v2190_v44 = vpop.permute.xlu0 %2189 }
0x282c   : > { %v2192_v38 = vmul.f32 %v3061_v40, %v2190_v44 }
0x282e   : > { %2194 = vrot.lane.b32.xlu1 %v2192_v38, %s3101_s26 }
0x28a0   : > { %v2195_v39 = vpop.permute.xlu1 %2194 }
0x28a1   : > { %v2197_v45 = vadd.f32 %v2195_v39, %v2107_v10 }
0x28a3   : > { %3062 = vtanh.f32 %v2197_v45 }
0x28ad   : > { %v3063_v46 = vpop.eup %3062 }
0x28ae   : > { %2201 = vrot.lane.b32.xlu0 %v3063_v46, %s3105_s28 }
0x2920   : > { %v2202_v48 = vpop.permute.xlu0 %2201 }
0x2921   : > { %v2204_v50 = vmul.f32 %v2202_v48, %v2199_v47 }
0x2923   : > { %v2206_v51 = vadd.f32 %v2205_v49, %v2204_v50 }
0x2925   : > { %2208 = vrot.lane.b32.xlu1 %v2206_v51, %s3105_s28 }
0x2997   : > { %v2209_v52 = vpop.permute.xlu1 %2208 }
0x2998   : > { %2534 = vst.msk [vmem:[%s3199_s27 + $0x8] sm:$0xff] %vm415_vm0, %v2209_v52  ;;  %2828 = vmatmul.mubr.msk.f32.vlgmr.msra.gmra.mrb[6].mxu1 %vm415_vm0, %v2209_v52 }
0x2a6b   : > { %v2282_v53 = vpop.f32.mrb[6].mxu1 }
0x2a6c   : > { %v2293_v54 = vadd.f32 %v2282_v53, %v3399_v7  ;;  %v2829_v55 = vpop.f32.mrb[7].mxu1  ;;  %v2286_v57 = vadd.f32 %v2282_v53, %v2213_v56 }
0x2a6e   : > { %2295 = vrot.lane.b32.xlu0 %v2293_v54, %s3101_s26  ;;  %v2536_v58 = vmul.f32 -1.442695, %v2286_v57 }
0x2a70   : > { %3064 = vpow2.f32 %v2536_v58 }
0x2a7a   : > { %v3065_v59 = vpop.eup %3064 }
0x2a7b   : > { %v2290_v60 = vadd.f32 1.0, %v3065_v59 }
0x2a7d   : > { %3066 = vrcp.f32 %v2290_v60 }
0x2a87   : > { %v3067_v61 = vpop.eup %3066 }
0x2a88   : > { %v2305_v2 = vsub.f32 1.0, %v3067_v61  ;;  %v2311_v4 = vmul.f32 %v3067_v61, %v2206_v51 }
0x2ae0   : > { %v2296_v62 = vpop.permute.xlu0 %2295 }
0x2ae1   : > { %v2298_v63 = vmul.f32 %v3067_v61, %v2296_v62 }
0x2ae3   : > { %2300 = vrot.lane.b32.xlu1 %v2298_v63, %s3101_s26 }
0x2b55   : > { %v2301_v0 = vpop.permute.xlu1 %2300 }
0x2b56   : > { %v2303_v1 = vadd.f32 %v2301_v0, %v2213_v56 }
0x2b58   : > { %3068 = vtanh.f32 %v2303_v1 }
0x2b62   : > { %v3069_v7 = vpop.eup %3068 }
0x2b63   : > { %2307 = vrot.lane.b32.xlu0 %v3069_v7, %s3105_s28 }
0x2bd5   : > { %v2308_v3 = vpop.permute.xlu0 %2307 }
0x2bd6   : > { %v2310_v5 = vmul.f32 %v2308_v3, %v2305_v2 }
0x2bd8   : > { %v2312_v11 = vadd.f32 %v2311_v4, %v2310_v5 }
0x2bda   : > { %2314 = vrot.lane.b32.xlu1 %v2312_v11, %s3105_s28 }
0x2c4c   : > { %v2315_v12 = vpop.permute.xlu1 %2314 }
0x2c4d   : > { %2317 = vst.msk [vmem:[%s3199_s27] sm:$0xff] %vm415_vm0, %v2315_v12  ;;  %2318 = vst.msk [vmem:[#allocation2] sm:$0xff] %vm415_vm0, %v2315_v12 }
0x2c4e PF: > { %s16_s23 = sadd.s32 1, %s3092_s23   ;;  %s3509_s21 = smov %s3088_s22 }
0x2c4f   : > { %p13_p7 = scmp.ge.s32.totalorder %s16_s23, 4   ;;  %s3510_s22 = smov %s3512_s24 }
0x2c51   :  { %15 = sbr.rel (!%p13_p7) target bundleno = 2 (0x2), region = 129 }

</bundles_post_ra>
